<compile_context>
chip_gen: v6e
topology: v6e:2x2x1
jax: 0.10.0
libtpu: 0.0.40
codegen_flags: <defaults>
</compile_context>

<pallas_src>
import functools

import jax
import jax.numpy as jnp
from jax.experimental import pallas as pl
from jax.experimental.pallas import tpu as pltpu


# ----------------------------------------------------------------------------
# Pallas kernel
# ----------------------------------------------------------------------------
def _make_slot_kernel(T, B, E, H, L, D, C_pad):
    """Kernel closed over the static model configuration.

    D = number of directions (1 or 2).  Fused widths: S = D*H (state),
    G = 4*S (gates; column order [i | f | o | g], each S-wide gate block is
    [dir0 | dir1]).
    """
    S = D * H
    G = 4 * S

    def kernel(*refs):
        emb_ref = refs[0]                          # (T, B, E) time-major
        w_refs = refs[1:1 + 3 * L]                 # per layer: wih, whh, bias
        fcw_ref = refs[1 + 3 * L]                  # (S, C_pad)
        fcb_ref = refs[2 + 3 * L]                  # (1, C_pad)
        out_ref = refs[3 + 3 * L]                  # (T, B, C_pad)
        bufs = refs[4 + 3 * L:]                    # 2*D scratch refs (T, B, H)

        def out_buf(layer, d):                     # ping-pong pairs across layers
            return bufs[(layer % 2) * D + d]

        for l in range(L):
            wih = w_refs[3 * l][...]               # (D*in_l, G)
            whh = w_refs[3 * l + 1][...]           # (S, G)
            bias = w_refs[3 * l + 2][...]          # (1, G)
            in_l = E if l == 0 else S

            # ---- hoisted input->hidden projection: big (T*B, .) matmuls,
            #      entirely outside the serial recurrence.
            if l == 0:
                x_parts = [emb_ref[...].reshape(T * B, E)]
            else:
                x_parts = [out_buf(l - 1, d)[...].reshape(T * B, H)
                           for d in range(D)]
            part = in_l // len(x_parts)
            projs = []                             # per direction: (T, B, G)
            for d in range(D):
                acc = None
                for p, x_part in enumerate(x_parts):
                    rows = wih[d * in_l + p * part:d * in_l + (p + 1) * part, :]
                    m = jnp.dot(x_part, rows, preferred_element_type=jnp.float32)
                    acc = m if acc is None else acc + m
                projs.append(acc.reshape(T, B, G))
            if D == 2:
                # fused step s: fwd consumes time s, bwd consumes time T-1-s
                xp = [projs[0][s] + projs[1][T - 1 - s] + bias for s in range(T)]
            else:
                xp = [projs[0][s] + bias for s in range(T)]

            # ---- fused-direction recurrence: T serial steps, one small
            #      h @ Whh matmul + gate math each.  Static unroll (T is tiny);
            #      for large T switch to lax.fori_loop(..., unroll=k).
            h = jnp.zeros((B, S), jnp.float32)
            c = jnp.zeros((B, S), jnp.float32)
            for s in range(T):
                gates = xp[s] + jnp.dot(h, whh, preferred_element_type=jnp.float32)
                sig = jax.nn.sigmoid(gates[:, :3 * S])      # [i | f | o]
                g_g = jnp.tanh(gates[:, 3 * S:])            # [g]
                c = sig[:, S:2 * S] * c + sig[:, :S] * g_g
                h = sig[:, 2 * S:3 * S] * jnp.tanh(c)
                out_buf(l, 0)[s] = h[:, :H]                 # fwd output @ time s
                if D == 2:
                    out_buf(l, 1)[T - 1 - s] = h[:, H:]     # bwd output @ time T-1-s

        # ---- final per-token Linear: flattened, lane-dense (C padded to 128),
        #      bidirectional concat folded into the weight row-split.
        fcw = fcw_ref[...]
        fwd_last = out_buf(L - 1, 0)[...].reshape(T * B, H)
        logits = jnp.dot(fwd_last, fcw[:H, :], preferred_element_type=jnp.float32)
        if D == 2:
            bwd_last = out_buf(L - 1, 1)[...].reshape(T * B, H)
            logits = logits + jnp.dot(bwd_last, fcw[H:, :],
                                      preferred_element_type=jnp.float32)
        logits = logits + fcb_ref[...]
        out_ref[...] = logits.reshape(T, B, C_pad).astype(out_ref.dtype)

    return kernel


# ----------------------------------------------------------------------------
# Wrapper (glue: embedding gather, pallas_call plumbing, un-padding)
# ----------------------------------------------------------------------------
@functools.partial(jax.jit, static_argnames=("hidden_size", "num_layers",
                                             "bidirectional", "num_class"))
def slot_classifier_forward(tokens, params, *, hidden_size, num_layers,
                            bidirectional, num_class):
    B, T = tokens.shape
    E = params["embeddings"].shape[1]
    H = hidden_size
    D = 2 if bidirectional else 1
    C_pad = params["fc_w_pad"].shape[1]

    # Dropout == identity (eval mode).  padding_idx only affects gradients.
    # Gather the embeddings directly in time-major order.
    emb_tm = params["embeddings"][tokens.T]        # (T, B, E)

    in_arrays = [emb_tm]
    for l in range(num_layers):
        wih, whh, bias = params["lstm"][l]
        in_arrays += [wih, whh, bias]
    in_arrays += [params["fc_w_pad"], params["fc_b_pad"]]

    kernel = _make_slot_kernel(T, B, E, H, num_layers, D, C_pad)

    out_tm = pl.pallas_call(
        kernel,
        out_shape=jax.ShapeDtypeStruct((T, B, C_pad), jnp.float32),
        in_specs=[pl.BlockSpec(memory_space=pltpu.MemorySpace.VMEM)]
        * len(in_arrays),
        out_specs=pl.BlockSpec(memory_space=pltpu.MemorySpace.VMEM),
        scratch_shapes=[pltpu.VMEM((T, B, H), jnp.float32)
                        for _ in range(2 * D)],
    )(*in_arrays)

    # back to (B, T, C): drop the lane padding, then transpose (tiny XLA ops).
    return jnp.transpose(out_tm[..., :num_class], (1, 0, 2))


# ----------------------------------------------------------------------------
# Parameter construction (PyTorch layout) + packing into the fused kernel layout
# ----------------------------------------------------------------------------
def init_raw_params(key, vocab, embed_dim, hidden_size, num_layers,
                    bidirectional, num_class):
    """Raw parameters in torch.nn.LSTM / Linear layout (gate order i,f,g,o)."""
    D = 2 if bidirectional else 1
    H = hidden_size
    k = 1.0 / jnp.sqrt(H)
    keys = iter(jax.random.split(key, 64))

    params = {}
    params["embeddings"] = jax.random.normal(
        next(keys), (vocab, embed_dim), jnp.float32) * 0.1

    lstm = []
    for l in range(num_layers):
        in_dim = embed_dim if l == 0 else H * D
        dirs = []
        for _ in range(D):
            w_ih = jax.random.uniform(next(keys), (4 * H, in_dim),
                                      jnp.float32, -k, k)
            w_hh = jax.random.uniform(next(keys), (4 * H, H),
                                      jnp.float32, -k, k)
            b_ih = jax.random.uniform(next(keys), (4 * H,), jnp.float32, -k, k)
            b_hh = jax.random.uniform(next(keys), (4 * H,), jnp.float32, -k, k)
            dirs.append((w_ih, w_hh, b_ih, b_hh))
        lstm.append(dirs)
    params["lstm"] = lstm

    fc_in = H * D
    kf = 1.0 / jnp.sqrt(fc_in)
    params["fc_w"] = jax.random.uniform(next(keys), (num_class, fc_in),
                                        jnp.float32, -kf, kf)
    params["fc_b"] = jax.random.uniform(next(keys), (num_class,),
                                        jnp.float32, -kf, kf)
    return params


_PT_GATE = {"i": 0, "f": 1, "g": 2, "o": 3}          # torch packing order
_FUSED_GATE_ORDER = ("i", "f", "o", "g")             # sigmoid gates first, tanh last


def pack_params(raw, hidden_size, bidirectional, lane_pad=128):
    """Repack raw params into the fused, direction-interleaved kernel layout."""
    H = hidden_size
    D = 2 if bidirectional else 1
    S = D * H
    G = 4 * S

    packed = {"embeddings": raw["embeddings"]}
    lstm = []
    for dirs in raw["lstm"]:
        in_dim = dirs[0][0].shape[1]
        wih = jnp.zeros((D * in_dim, G), jnp.float32)
        whh = jnp.zeros((S, G), jnp.float32)
        bias = jnp.zeros((G,), jnp.float32)
        for d, (w_ih, w_hh, b_ih, b_hh) in enumerate(dirs):
            for k, gate in enumerate(_FUSED_GATE_ORDER):
                src = _PT_GATE[gate]
                c0 = (k * D + d) * H
                wih = wih.at[d * in_dim:(d + 1) * in_dim, c0:c0 + H].set(
                    w_ih[src * H:(src + 1) * H, :].T)
                whh = whh.at[d * H:(d + 1) * H, c0:c0 + H].set(
                    w_hh[src * H:(src + 1) * H, :].T)
                bias = bias.at[c0:c0 + H].set(
                    b_ih[src * H:(src + 1) * H] + b_hh[src * H:(src + 1) * H])
        lstm.append((wih, whh, bias.reshape(1, G)))
    packed["lstm"] = lstm

    C = raw["fc_w"].shape[0]
    C_pad = ((C + lane_pad - 1) // lane_pad) * lane_pad
    packed["fc_w_pad"] = jnp.zeros((S, C_pad), jnp.float32).at[:, :C].set(
        raw["fc_w"].T)
    packed["fc_b_pad"] = jnp.zeros((1, C_pad), jnp.float32).at[0, :C].set(
        raw["fc_b"])
    return packed


# ----------------------------------------------------------------------------
# Pure-JAX reference (mirrors torch.nn.LSTM / Linear semantics) for checking
# ----------------------------------------------------------------------------
def reference_forward(tokens, raw, hidden_size, num_layers, bidirectional,
                      num_class):
    H = hidden_size
    D = 2 if bidirectional else 1
    x = raw["embeddings"][tokens]                  # (B, T, E)
    Bsz, T, _ = x.shape
    for l in range(num_layers):
        dir_outs = []
        for d in range(D):
            w_ih, w_hh, b_ih, b_hh = raw["lstm"][l][d]
            h = jnp.zeros((Bsz, H), jnp.float32)
            c = jnp.zeros((Bsz, H), jnp.float32)
            hs = [None] * T
            order = range(T) if d == 0 else range(T - 1, -1, -1)
            for t in order:
                g = x[:, t] @ w_ih.T + h @ w_hh.T + b_ih + b_hh
                i = jax.nn.sigmoid(g[:, :H])
                f = jax.nn.sigmoid(g[:, H:2 * H])
                gg = jnp.tanh(g[:, 2 * H:3 * H])
                o = jax.nn.sigmoid(g[:, 3 * H:])
                c = f * c + i * gg
                h = o * jnp.tanh(c)
                hs[t] = h
            dir_outs.append(jnp.stack(hs, axis=1))
        x = jnp.concatenate(dir_outs, axis=-1)
    return x @ raw["fc_w"].T + raw["fc_b"]


# ----------------------------------------------------------------------------
if __name__ == "__main__":
    VOCAB = 20
    EMBED_DIM = 16
    HIDDEN = 32
    NUM_LAYERS = 2
    BIDIRECTIONAL = True
    NUM_CLASS = 9
    PAD_IDX = 0
    B, T = 2, 8

    key = jax.random.PRNGKey(0)
    k_params, k_tok = jax.random.split(key)
    raw = init_raw_params(k_params, VOCAB, EMBED_DIM, HIDDEN, NUM_LAYERS,
                          BIDIRECTIONAL, NUM_CLASS)
    packed = pack_params(raw, HIDDEN, BIDIRECTIONAL)
    tokens = jax.random.randint(k_tok, (B, T), 0, VOCAB, dtype=jnp.int32)

    out = slot_classifier_forward(
        tokens, packed,
        hidden_size=HIDDEN, num_layers=NUM_LAYERS,
        bidirectional=BIDIRECTIONAL, num_class=NUM_CLASS)
    out = jax.block_until_ready(out)

    ref = reference_forward(tokens, raw, HIDDEN, NUM_LAYERS,
                            BIDIRECTIONAL, NUM_CLASS)
    assert out.shape == (B, T, NUM_CLASS)
    assert jnp.allclose(out, ref, atol=1e-4, rtol=1e-4), "mismatch vs reference"

    print("KERNEL_OK")
</pallas_src>

<mosaic_0001>
module attributes {stable_mosaic.version = 11 : i64} {
  func.func @kernel(%arg0: memref<8x2x16xf32, #tpu.memory_space<vmem>>, %arg1: memref<32x256xf32, #tpu.memory_space<vmem>>, %arg2: memref<64x256xf32, #tpu.memory_space<vmem>>, %arg3: memref<1x256xf32, #tpu.memory_space<vmem>>, %arg4: memref<128x256xf32, #tpu.memory_space<vmem>>, %arg5: memref<64x256xf32, #tpu.memory_space<vmem>>, %arg6: memref<1x256xf32, #tpu.memory_space<vmem>>, %arg7: memref<64x128xf32, #tpu.memory_space<vmem>>, %arg8: memref<1x128xf32, #tpu.memory_space<vmem>>, %arg9: memref<8x2x128xf32, #tpu.memory_space<vmem>>, %arg10: memref<8x2x32xf32, #tpu.memory_space<vmem>>, %arg11: memref<8x2x32xf32, #tpu.memory_space<vmem>>, %arg12: memref<8x2x32xf32, #tpu.memory_space<vmem>>, %arg13: memref<8x2x32xf32, #tpu.memory_space<vmem>>) attributes {dimension_semantics = [], scalar_prefetch = 0 : i64, scratch_operands = 4 : i64, tpu.core_type = #tpu.core_type<tc>} {
    %c0 = arith.constant 0 : index
    %c0_0 = arith.constant 0 : index
    %0 = vector.load %arg1[%c0, %c0_0] : memref<32x256xf32, #tpu.memory_space<vmem>>, vector<32x256xf32>
    %c0_1 = arith.constant 0 : index
    %c0_2 = arith.constant 0 : index
    %1 = vector.load %arg2[%c0_1, %c0_2] : memref<64x256xf32, #tpu.memory_space<vmem>>, vector<64x256xf32>
    %c0_3 = arith.constant 0 : index
    %c0_4 = arith.constant 0 : index
    %2 = vector.load %arg3[%c0_3, %c0_4] : memref<1x256xf32, #tpu.memory_space<vmem>>, vector<1x256xf32>
    %c0_5 = arith.constant 0 : index
    %c0_6 = arith.constant 0 : index
    %c0_7 = arith.constant 0 : index
    %3 = vector.load %arg0[%c0_5, %c0_6, %c0_7] : memref<8x2x16xf32, #tpu.memory_space<vmem>>, vector<8x2x16xf32>
    %4 = vector.shape_cast %3 : vector<8x2x16xf32> to vector<16x16xf32>
    %5 = vector.extract_strided_slice %0 {offsets = [0, 0], sizes = [16, 256], strides = [1, 1]} : vector<32x256xf32> to vector<16x256xf32>
    %cst = arith.constant dense<0.000000e+00> : vector<16x256xf32>
    %6 = tpu.matmul %4, %5, %cst {dimension_numbers = #tpu.dot_dimension_numbers<[1], [0], [0], [1], [0, 0, 1, 1], [], []>} : vector<16x16xf32>, vector<16x256xf32>, vector<16x256xf32> -> vector<16x256xf32>
    %7 = vector.shape_cast %6 : vector<16x256xf32> to vector<8x2x256xf32>
    %8 = vector.extract_strided_slice %0 {offsets = [16, 0], sizes = [16, 256], strides = [1, 1]} : vector<32x256xf32> to vector<16x256xf32>
    %cst_8 = arith.constant dense<0.000000e+00> : vector<16x256xf32>
    %9 = tpu.matmul %4, %8, %cst_8 {dimension_numbers = #tpu.dot_dimension_numbers<[1], [0], [0], [1], [0, 0, 1, 1], [], []>} : vector<16x16xf32>, vector<16x256xf32>, vector<16x256xf32> -> vector<16x256xf32>
    %10 = vector.shape_cast %9 : vector<16x256xf32> to vector<8x2x256xf32>
    %11 = vector.extract_strided_slice %7 {offsets = [0, 0, 0], sizes = [1, 2, 256], strides = [1, 1, 1]} : vector<8x2x256xf32> to vector<1x2x256xf32>
    %12 = vector.shape_cast %11 : vector<1x2x256xf32> to vector<2x256xf32>
    %13 = vector.extract_strided_slice %10 {offsets = [7, 0, 0], sizes = [1, 2, 256], strides = [1, 1, 1]} : vector<8x2x256xf32> to vector<1x2x256xf32>
    %14 = vector.shape_cast %13 : vector<1x2x256xf32> to vector<2x256xf32>
    %15 = arith.addf %12, %14 : vector<2x256xf32>
    %16 = vector.broadcast %2 : vector<1x256xf32> to vector<2x256xf32>
    %17 = arith.addf %15, %16 : vector<2x256xf32>
    %18 = vector.extract_strided_slice %7 {offsets = [1, 0, 0], sizes = [1, 2, 256], strides = [1, 1, 1]} : vector<8x2x256xf32> to vector<1x2x256xf32>
    %19 = vector.shape_cast %18 : vector<1x2x256xf32> to vector<2x256xf32>
    %20 = vector.extract_strided_slice %10 {offsets = [6, 0, 0], sizes = [1, 2, 256], strides = [1, 1, 1]} : vector<8x2x256xf32> to vector<1x2x256xf32>
    %21 = vector.shape_cast %20 : vector<1x2x256xf32> to vector<2x256xf32>
    %22 = arith.addf %19, %21 : vector<2x256xf32>
    %23 = vector.broadcast %2 : vector<1x256xf32> to vector<2x256xf32>
    %24 = arith.addf %22, %23 : vector<2x256xf32>
    %25 = vector.extract_strided_slice %7 {offsets = [2, 0, 0], sizes = [1, 2, 256], strides = [1, 1, 1]} : vector<8x2x256xf32> to vector<1x2x256xf32>
    %26 = vector.shape_cast %25 : vector<1x2x256xf32> to vector<2x256xf32>
    %27 = vector.extract_strided_slice %10 {offsets = [5, 0, 0], sizes = [1, 2, 256], strides = [1, 1, 1]} : vector<8x2x256xf32> to vector<1x2x256xf32>
    %28 = vector.shape_cast %27 : vector<1x2x256xf32> to vector<2x256xf32>
    %29 = arith.addf %26, %28 : vector<2x256xf32>
    %30 = vector.broadcast %2 : vector<1x256xf32> to vector<2x256xf32>
    %31 = arith.addf %29, %30 : vector<2x256xf32>
    %32 = vector.extract_strided_slice %7 {offsets = [3, 0, 0], sizes = [1, 2, 256], strides = [1, 1, 1]} : vector<8x2x256xf32> to vector<1x2x256xf32>
    %33 = vector.shape_cast %32 : vector<1x2x256xf32> to vector<2x256xf32>
    %34 = vector.extract_strided_slice %10 {offsets = [4, 0, 0], sizes = [1, 2, 256], strides = [1, 1, 1]} : vector<8x2x256xf32> to vector<1x2x256xf32>
    %35 = vector.shape_cast %34 : vector<1x2x256xf32> to vector<2x256xf32>
    %36 = arith.addf %33, %35 : vector<2x256xf32>
    %37 = vector.broadcast %2 : vector<1x256xf32> to vector<2x256xf32>
    %38 = arith.addf %36, %37 : vector<2x256xf32>
    %39 = vector.extract_strided_slice %7 {offsets = [4, 0, 0], sizes = [1, 2, 256], strides = [1, 1, 1]} : vector<8x2x256xf32> to vector<1x2x256xf32>
    %40 = vector.shape_cast %39 : vector<1x2x256xf32> to vector<2x256xf32>
    %41 = vector.extract_strided_slice %10 {offsets = [3, 0, 0], sizes = [1, 2, 256], strides = [1, 1, 1]} : vector<8x2x256xf32> to vector<1x2x256xf32>
    %42 = vector.shape_cast %41 : vector<1x2x256xf32> to vector<2x256xf32>
    %43 = arith.addf %40, %42 : vector<2x256xf32>
    %44 = vector.broadcast %2 : vector<1x256xf32> to vector<2x256xf32>
    %45 = arith.addf %43, %44 : vector<2x256xf32>
    %46 = vector.extract_strided_slice %7 {offsets = [5, 0, 0], sizes = [1, 2, 256], strides = [1, 1, 1]} : vector<8x2x256xf32> to vector<1x2x256xf32>
    %47 = vector.shape_cast %46 : vector<1x2x256xf32> to vector<2x256xf32>
    %48 = vector.extract_strided_slice %10 {offsets = [2, 0, 0], sizes = [1, 2, 256], strides = [1, 1, 1]} : vector<8x2x256xf32> to vector<1x2x256xf32>
    %49 = vector.shape_cast %48 : vector<1x2x256xf32> to vector<2x256xf32>
    %50 = arith.addf %47, %49 : vector<2x256xf32>
    %51 = vector.broadcast %2 : vector<1x256xf32> to vector<2x256xf32>
    %52 = arith.addf %50, %51 : vector<2x256xf32>
    %53 = vector.extract_strided_slice %7 {offsets = [6, 0, 0], sizes = [1, 2, 256], strides = [1, 1, 1]} : vector<8x2x256xf32> to vector<1x2x256xf32>
    %54 = vector.shape_cast %53 : vector<1x2x256xf32> to vector<2x256xf32>
    %55 = vector.extract_strided_slice %10 {offsets = [1, 0, 0], sizes = [1, 2, 256], strides = [1, 1, 1]} : vector<8x2x256xf32> to vector<1x2x256xf32>
    %56 = vector.shape_cast %55 : vector<1x2x256xf32> to vector<2x256xf32>
    %57 = arith.addf %54, %56 : vector<2x256xf32>
    %58 = vector.broadcast %2 : vector<1x256xf32> to vector<2x256xf32>
    %59 = arith.addf %57, %58 : vector<2x256xf32>
    %60 = vector.extract_strided_slice %7 {offsets = [7, 0, 0], sizes = [1, 2, 256], strides = [1, 1, 1]} : vector<8x2x256xf32> to vector<1x2x256xf32>
    %61 = vector.shape_cast %60 : vector<1x2x256xf32> to vector<2x256xf32>
    %62 = vector.extract_strided_slice %10 {offsets = [0, 0, 0], sizes = [1, 2, 256], strides = [1, 1, 1]} : vector<8x2x256xf32> to vector<1x2x256xf32>
    %63 = vector.shape_cast %62 : vector<1x2x256xf32> to vector<2x256xf32>
    %64 = arith.addf %61, %63 : vector<2x256xf32>
    %65 = vector.broadcast %2 : vector<1x256xf32> to vector<2x256xf32>
    %66 = arith.addf %64, %65 : vector<2x256xf32>
    %cst_9 = arith.constant 0.000000e+00 : f32
    %67 = vector.broadcast %cst_9 : f32 to vector<2x64xf32>
    %cst_10 = arith.constant 0.000000e+00 : f32
    %68 = vector.broadcast %cst_10 : f32 to vector<2x64xf32>
    %cst_11 = arith.constant dense<0.000000e+00> : vector<2x256xf32>
    %69 = tpu.matmul %67, %1, %cst_11 {dimension_numbers = #tpu.dot_dimension_numbers<[1], [0], [0], [1], [0, 0, 1, 1], [], []>} : vector<2x64xf32>, vector<64x256xf32>, vector<2x256xf32> -> vector<2x256xf32>
    %70 = arith.addf %17, %69 : vector<2x256xf32>
    %71 = vector.extract_strided_slice %70 {offsets = [0, 0], sizes = [2, 192], strides = [1, 1]} : vector<2x256xf32> to vector<2x192xf32>
    %72 = arith.negf %71 : vector<2x192xf32>
    %73 = math.exp %72 : vector<2x192xf32>
    %cst_12 = arith.constant 1.000000e+00 : f32
    %74 = vector.broadcast %cst_12 : f32 to vector<2x192xf32>
    %75 = arith.addf %74, %73 : vector<2x192xf32>
    %76 = arith.divf %74, %75 : vector<2x192xf32>
    %77 = vector.extract_strided_slice %70 {offsets = [0, 192], sizes = [2, 64], strides = [1, 1]} : vector<2x256xf32> to vector<2x64xf32>
    %78 = math.tanh %77 : vector<2x64xf32>
    %79 = vector.extract_strided_slice %76 {offsets = [0, 64], sizes = [2, 64], strides = [1, 1]} : vector<2x192xf32> to vector<2x64xf32>
    %80 = arith.mulf %79, %68 : vector<2x64xf32>
    %81 = vector.extract_strided_slice %76 {offsets = [0, 0], sizes = [2, 64], strides = [1, 1]} : vector<2x192xf32> to vector<2x64xf32>
    %82 = arith.mulf %81, %78 : vector<2x64xf32>
    %83 = arith.addf %80, %82 : vector<2x64xf32>
    %84 = vector.extract_strided_slice %76 {offsets = [0, 128], sizes = [2, 64], strides = [1, 1]} : vector<2x192xf32> to vector<2x64xf32>
    %85 = math.tanh %83 : vector<2x64xf32>
    %86 = arith.mulf %84, %85 : vector<2x64xf32>
    %87 = vector.extract_strided_slice %86 {offsets = [0, 0], sizes = [2, 32], strides = [1, 1]} : vector<2x64xf32> to vector<2x32xf32>
    %c0_13 = arith.constant 0 : index
    %c0_14 = arith.constant 0 : index
    %c0_15 = arith.constant 0 : index
    %88 = vector.load %arg10[%c0_13, %c0_14, %c0_15] : memref<8x2x32xf32, #tpu.memory_space<vmem>>, vector<1x2x32xf32>
    %89 = vector.shape_cast %88 : vector<1x2x32xf32> to vector<2x32xf32>
    %90 = vector.shape_cast %87 : vector<2x32xf32> to vector<1x2x32xf32>
    tpu.vector_store %arg10[%c0_13, %c0_14, %c0_15], %90 {strides = array<i32>} : memref<8x2x32xf32, #tpu.memory_space<vmem>>, vector<1x2x32xf32>,
    %91 = vector.extract_strided_slice %86 {offsets = [0, 32], sizes = [2, 32], strides = [1, 1]} : vector<2x64xf32> to vector<2x32xf32>
    %c7 = arith.constant 7 : index
    %c0_16 = arith.constant 0 : index
    %c0_17 = arith.constant 0 : index
    %92 = vector.load %arg11[%c7, %c0_16, %c0_17] : memref<8x2x32xf32, #tpu.memory_space<vmem>>, vector<1x2x32xf32>
    %93 = vector.shape_cast %92 : vector<1x2x32xf32> to vector<2x32xf32>
    %94 = vector.shape_cast %91 : vector<2x32xf32> to vector<1x2x32xf32>
    tpu.vector_store %arg11[%c7, %c0_16, %c0_17], %94 {strides = array<i32>} : memref<8x2x32xf32, #tpu.memory_space<vmem>>, vector<1x2x32xf32>,
    %cst_18 = arith.constant dense<0.000000e+00> : vector<2x256xf32>
    %95 = tpu.matmul %86, %1, %cst_18 {dimension_numbers = #tpu.dot_dimension_numbers<[1], [0], [0], [1], [0, 0, 1, 1], [], []>} : vector<2x64xf32>, vector<64x256xf32>, vector<2x256xf32> -> vector<2x256xf32>
    %96 = arith.addf %24, %95 : vector<2x256xf32>
    %97 = vector.extract_strided_slice %96 {offsets = [0, 0], sizes = [2, 192], strides = [1, 1]} : vector<2x256xf32> to vector<2x192xf32>
    %98 = arith.negf %97 : vector<2x192xf32>
    %99 = math.exp %98 : vector<2x192xf32>
    %cst_19 = arith.constant 1.000000e+00 : f32
    %100 = vector.broadcast %cst_19 : f32 to vector<2x192xf32>
    %101 = arith.addf %100, %99 : vector<2x192xf32>
    %102 = arith.divf %100, %101 : vector<2x192xf32>
    %103 = vector.extract_strided_slice %96 {offsets = [0, 192], sizes = [2, 64], strides = [1, 1]} : vector<2x256xf32> to vector<2x64xf32>
    %104 = math.tanh %103 : vector<2x64xf32>
    %105 = vector.extract_strided_slice %102 {offsets = [0, 64], sizes = [2, 64], strides = [1, 1]} : vector<2x192xf32> to vector<2x64xf32>
    %106 = arith.mulf %105, %83 : vector<2x64xf32>
    %107 = vector.extract_strided_slice %102 {offsets = [0, 0], sizes = [2, 64], strides = [1, 1]} : vector<2x192xf32> to vector<2x64xf32>
    %108 = arith.mulf %107, %104 : vector<2x64xf32>
    %109 = arith.addf %106, %108 : vector<2x64xf32>
    %110 = vector.extract_strided_slice %102 {offsets = [0, 128], sizes = [2, 64], strides = [1, 1]} : vector<2x192xf32> to vector<2x64xf32>
    %111 = math.tanh %109 : vector<2x64xf32>
    %112 = arith.mulf %110, %111 : vector<2x64xf32>
    %113 = vector.extract_strided_slice %112 {offsets = [0, 0], sizes = [2, 32], strides = [1, 1]} : vector<2x64xf32> to vector<2x32xf32>
    %c1 = arith.constant 1 : index
    %c0_20 = arith.constant 0 : index
    %c0_21 = arith.constant 0 : index
    %114 = vector.load %arg10[%c1, %c0_20, %c0_21] : memref<8x2x32xf32, #tpu.memory_space<vmem>>, vector<1x2x32xf32>
    %115 = vector.shape_cast %114 : vector<1x2x32xf32> to vector<2x32xf32>
    %116 = vector.shape_cast %113 : vector<2x32xf32> to vector<1x2x32xf32>
    tpu.vector_store %arg10[%c1, %c0_20, %c0_21], %116 {strides = array<i32>} : memref<8x2x32xf32, #tpu.memory_space<vmem>>, vector<1x2x32xf32>,
    %117 = vector.extract_strided_slice %112 {offsets = [0, 32], sizes = [2, 32], strides = [1, 1]} : vector<2x64xf32> to vector<2x32xf32>
    %c6 = arith.constant 6 : index
    %c0_22 = arith.constant 0 : index
    %c0_23 = arith.constant 0 : index
    %118 = vector.load %arg11[%c6, %c0_22, %c0_23] : memref<8x2x32xf32, #tpu.memory_space<vmem>>, vector<1x2x32xf32>
    %119 = vector.shape_cast %118 : vector<1x2x32xf32> to vector<2x32xf32>
    %120 = vector.shape_cast %117 : vector<2x32xf32> to vector<1x2x32xf32>
    tpu.vector_store %arg11[%c6, %c0_22, %c0_23], %120 {strides = array<i32>} : memref<8x2x32xf32, #tpu.memory_space<vmem>>, vector<1x2x32xf32>,
    %cst_24 = arith.constant dense<0.000000e+00> : vector<2x256xf32>
    %121 = tpu.matmul %112, %1, %cst_24 {dimension_numbers = #tpu.dot_dimension_numbers<[1], [0], [0], [1], [0, 0, 1, 1], [], []>} : vector<2x64xf32>, vector<64x256xf32>, vector<2x256xf32> -> vector<2x256xf32>
    %122 = arith.addf %31, %121 : vector<2x256xf32>
    %123 = vector.extract_strided_slice %122 {offsets = [0, 0], sizes = [2, 192], strides = [1, 1]} : vector<2x256xf32> to vector<2x192xf32>
    %124 = arith.negf %123 : vector<2x192xf32>
    %125 = math.exp %124 : vector<2x192xf32>
    %cst_25 = arith.constant 1.000000e+00 : f32
    %126 = vector.broadcast %cst_25 : f32 to vector<2x192xf32>
    %127 = arith.addf %126, %125 : vector<2x192xf32>
    %128 = arith.divf %126, %127 : vector<2x192xf32>
    %129 = vector.extract_strided_slice %122 {offsets = [0, 192], sizes = [2, 64], strides = [1, 1]} : vector<2x256xf32> to vector<2x64xf32>
    %130 = math.tanh %129 : vector<2x64xf32>
    %131 = vector.extract_strided_slice %128 {offsets = [0, 64], sizes = [2, 64], strides = [1, 1]} : vector<2x192xf32> to vector<2x64xf32>
    %132 = arith.mulf %131, %109 : vector<2x64xf32>
    %133 = vector.extract_strided_slice %128 {offsets = [0, 0], sizes = [2, 64], strides = [1, 1]} : vector<2x192xf32> to vector<2x64xf32>
    %134 = arith.mulf %133, %130 : vector<2x64xf32>
    %135 = arith.addf %132, %134 : vector<2x64xf32>
    %136 = vector.extract_strided_slice %128 {offsets = [0, 128], sizes = [2, 64], strides = [1, 1]} : vector<2x192xf32> to vector<2x64xf32>
    %137 = math.tanh %135 : vector<2x64xf32>
    %138 = arith.mulf %136, %137 : vector<2x64xf32>
    %139 = vector.extract_strided_slice %138 {offsets = [0, 0], sizes = [2, 32], strides = [1, 1]} : vector<2x64xf32> to vector<2x32xf32>
    %c2 = arith.constant 2 : index
    %c0_26 = arith.constant 0 : index
    %c0_27 = arith.constant 0 : index
    %140 = vector.load %arg10[%c2, %c0_26, %c0_27] : memref<8x2x32xf32, #tpu.memory_space<vmem>>, vector<1x2x32xf32>
    %141 = vector.shape_cast %140 : vector<1x2x32xf32> to vector<2x32xf32>
    %142 = vector.shape_cast %139 : vector<2x32xf32> to vector<1x2x32xf32>
    tpu.vector_store %arg10[%c2, %c0_26, %c0_27], %142 {strides = array<i32>} : memref<8x2x32xf32, #tpu.memory_space<vmem>>, vector<1x2x32xf32>,
    %143 = vector.extract_strided_slice %138 {offsets = [0, 32], sizes = [2, 32], strides = [1, 1]} : vector<2x64xf32> to vector<2x32xf32>
    %c5 = arith.constant 5 : index
    %c0_28 = arith.constant 0 : index
    %c0_29 = arith.constant 0 : index
    %144 = vector.load %arg11[%c5, %c0_28, %c0_29] : memref<8x2x32xf32, #tpu.memory_space<vmem>>, vector<1x2x32xf32>
    %145 = vector.shape_cast %144 : vector<1x2x32xf32> to vector<2x32xf32>
    %146 = vector.shape_cast %143 : vector<2x32xf32> to vector<1x2x32xf32>
    tpu.vector_store %arg11[%c5, %c0_28, %c0_29], %146 {strides = array<i32>} : memref<8x2x32xf32, #tpu.memory_space<vmem>>, vector<1x2x32xf32>,
    %cst_30 = arith.constant dense<0.000000e+00> : vector<2x256xf32>
    %147 = tpu.matmul %138, %1, %cst_30 {dimension_numbers = #tpu.dot_dimension_numbers<[1], [0], [0], [1], [0, 0, 1, 1], [], []>} : vector<2x64xf32>, vector<64x256xf32>, vector<2x256xf32> -> vector<2x256xf32>
    %148 = arith.addf %38, %147 : vector<2x256xf32>
    %149 = vector.extract_strided_slice %148 {offsets = [0, 0], sizes = [2, 192], strides = [1, 1]} : vector<2x256xf32> to vector<2x192xf32>
    %150 = arith.negf %149 : vector<2x192xf32>
    %151 = math.exp %150 : vector<2x192xf32>
    %cst_31 = arith.constant 1.000000e+00 : f32
    %152 = vector.broadcast %cst_31 : f32 to vector<2x192xf32>
    %153 = arith.addf %152, %151 : vector<2x192xf32>
    %154 = arith.divf %152, %153 : vector<2x192xf32>
    %155 = vector.extract_strided_slice %148 {offsets = [0, 192], sizes = [2, 64], strides = [1, 1]} : vector<2x256xf32> to vector<2x64xf32>
    %156 = math.tanh %155 : vector<2x64xf32>
    %157 = vector.extract_strided_slice %154 {offsets = [0, 64], sizes = [2, 64], strides = [1, 1]} : vector<2x192xf32> to vector<2x64xf32>
    %158 = arith.mulf %157, %135 : vector<2x64xf32>
    %159 = vector.extract_strided_slice %154 {offsets = [0, 0], sizes = [2, 64], strides = [1, 1]} : vector<2x192xf32> to vector<2x64xf32>
    %160 = arith.mulf %159, %156 : vector<2x64xf32>
    %161 = arith.addf %158, %160 : vector<2x64xf32>
    %162 = vector.extract_strided_slice %154 {offsets = [0, 128], sizes = [2, 64], strides = [1, 1]} : vector<2x192xf32> to vector<2x64xf32>
    %163 = math.tanh %161 : vector<2x64xf32>
    %164 = arith.mulf %162, %163 : vector<2x64xf32>
    %165 = vector.extract_strided_slice %164 {offsets = [0, 0], sizes = [2, 32], strides = [1, 1]} : vector<2x64xf32> to vector<2x32xf32>
    %c3 = arith.constant 3 : index
    %c0_32 = arith.constant 0 : index
    %c0_33 = arith.constant 0 : index
    %166 = vector.load %arg10[%c3, %c0_32, %c0_33] : memref<8x2x32xf32, #tpu.memory_space<vmem>>, vector<1x2x32xf32>
    %167 = vector.shape_cast %166 : vector<1x2x32xf32> to vector<2x32xf32>
    %168 = vector.shape_cast %165 : vector<2x32xf32> to vector<1x2x32xf32>
    tpu.vector_store %arg10[%c3, %c0_32, %c0_33], %168 {strides = array<i32>} : memref<8x2x32xf32, #tpu.memory_space<vmem>>, vector<1x2x32xf32>,
    %169 = vector.extract_strided_slice %164 {offsets = [0, 32], sizes = [2, 32], strides = [1, 1]} : vector<2x64xf32> to vector<2x32xf32>
    %c4 = arith.constant 4 : index
    %c0_34 = arith.constant 0 : index
    %c0_35 = arith.constant 0 : index
    %170 = vector.load %arg11[%c4, %c0_34, %c0_35] : memref<8x2x32xf32, #tpu.memory_space<vmem>>, vector<1x2x32xf32>
    %171 = vector.shape_cast %170 : vector<1x2x32xf32> to vector<2x32xf32>
    %172 = vector.shape_cast %169 : vector<2x32xf32> to vector<1x2x32xf32>
    tpu.vector_store %arg11[%c4, %c0_34, %c0_35], %172 {strides = array<i32>} : memref<8x2x32xf32, #tpu.memory_space<vmem>>, vector<1x2x32xf32>,
    %cst_36 = arith.constant dense<0.000000e+00> : vector<2x256xf32>
    %173 = tpu.matmul %164, %1, %cst_36 {dimension_numbers = #tpu.dot_dimension_numbers<[1], [0], [0], [1], [0, 0, 1, 1], [], []>} : vector<2x64xf32>, vector<64x256xf32>, vector<2x256xf32> -> vector<2x256xf32>
    %174 = arith.addf %45, %173 : vector<2x256xf32>
    %175 = vector.extract_strided_slice %174 {offsets = [0, 0], sizes = [2, 192], strides = [1, 1]} : vector<2x256xf32> to vector<2x192xf32>
    %176 = arith.negf %175 : vector<2x192xf32>
    %177 = math.exp %176 : vector<2x192xf32>
    %cst_37 = arith.constant 1.000000e+00 : f32
    %178 = vector.broadcast %cst_37 : f32 to vector<2x192xf32>
    %179 = arith.addf %178, %177 : vector<2x192xf32>
    %180 = arith.divf %178, %179 : vector<2x192xf32>
    %181 = vector.extract_strided_slice %174 {offsets = [0, 192], sizes = [2, 64], strides = [1, 1]} : vector<2x256xf32> to vector<2x64xf32>
    %182 = math.tanh %181 : vector<2x64xf32>
    %183 = vector.extract_strided_slice %180 {offsets = [0, 64], sizes = [2, 64], strides = [1, 1]} : vector<2x192xf32> to vector<2x64xf32>
    %184 = arith.mulf %183, %161 : vector<2x64xf32>
    %185 = vector.extract_strided_slice %180 {offsets = [0, 0], sizes = [2, 64], strides = [1, 1]} : vector<2x192xf32> to vector<2x64xf32>
    %186 = arith.mulf %185, %182 : vector<2x64xf32>
    %187 = arith.addf %184, %186 : vector<2x64xf32>
    %188 = vector.extract_strided_slice %180 {offsets = [0, 128], sizes = [2, 64], strides = [1, 1]} : vector<2x192xf32> to vector<2x64xf32>
    %189 = math.tanh %187 : vector<2x64xf32>
    %190 = arith.mulf %188, %189 : vector<2x64xf32>
    %191 = vector.extract_strided_slice %190 {offsets = [0, 0], sizes = [2, 32], strides = [1, 1]} : vector<2x64xf32> to vector<2x32xf32>
    %c4_38 = arith.constant 4 : index
    %c0_39 = arith.constant 0 : index
    %c0_40 = arith.constant 0 : index
    %192 = vector.load %arg10[%c4_38, %c0_39, %c0_40] : memref<8x2x32xf32, #tpu.memory_space<vmem>>, vector<1x2x32xf32>
    %193 = vector.shape_cast %192 : vector<1x2x32xf32> to vector<2x32xf32>
    %194 = vector.shape_cast %191 : vector<2x32xf32> to vector<1x2x32xf32>
    tpu.vector_store %arg10[%c4_38, %c0_39, %c0_40], %194 {strides = array<i32>} : memref<8x2x32xf32, #tpu.memory_space<vmem>>, vector<1x2x32xf32>,
    %195 = vector.extract_strided_slice %190 {offsets = [0, 32], sizes = [2, 32], strides = [1, 1]} : vector<2x64xf32> to vector<2x32xf32>
    %c3_41 = arith.constant 3 : index
    %c0_42 = arith.constant 0 : index
    %c0_43 = arith.constant 0 : index
    %196 = vector.load %arg11[%c3_41, %c0_42, %c0_43] : memref<8x2x32xf32, #tpu.memory_space<vmem>>, vector<1x2x32xf32>
    %197 = vector.shape_cast %196 : vector<1x2x32xf32> to vector<2x32xf32>
    %198 = vector.shape_cast %195 : vector<2x32xf32> to vector<1x2x32xf32>
    tpu.vector_store %arg11[%c3_41, %c0_42, %c0_43], %198 {strides = array<i32>} : memref<8x2x32xf32, #tpu.memory_space<vmem>>, vector<1x2x32xf32>,
    %cst_44 = arith.constant dense<0.000000e+00> : vector<2x256xf32>
    %199 = tpu.matmul %190, %1, %cst_44 {dimension_numbers = #tpu.dot_dimension_numbers<[1], [0], [0], [1], [0, 0, 1, 1], [], []>} : vector<2x64xf32>, vector<64x256xf32>, vector<2x256xf32> -> vector<2x256xf32>
    %200 = arith.addf %52, %199 : vector<2x256xf32>
    %201 = vector.extract_strided_slice %200 {offsets = [0, 0], sizes = [2, 192], strides = [1, 1]} : vector<2x256xf32> to vector<2x192xf32>
    %202 = arith.negf %201 : vector<2x192xf32>
    %203 = math.exp %202 : vector<2x192xf32>
    %cst_45 = arith.constant 1.000000e+00 : f32
    %204 = vector.broadcast %cst_45 : f32 to vector<2x192xf32>
    %205 = arith.addf %204, %203 : vector<2x192xf32>
    %206 = arith.divf %204, %205 : vector<2x192xf32>
    %207 = vector.extract_strided_slice %200 {offsets = [0, 192], sizes = [2, 64], strides = [1, 1]} : vector<2x256xf32> to vector<2x64xf32>
    %208 = math.tanh %207 : vector<2x64xf32>
    %209 = vector.extract_strided_slice %206 {offsets = [0, 64], sizes = [2, 64], strides = [1, 1]} : vector<2x192xf32> to vector<2x64xf32>
    %210 = arith.mulf %209, %187 : vector<2x64xf32>
    %211 = vector.extract_strided_slice %206 {offsets = [0, 0], sizes = [2, 64], strides = [1, 1]} : vector<2x192xf32> to vector<2x64xf32>
    %212 = arith.mulf %211, %208 : vector<2x64xf32>
    %213 = arith.addf %210, %212 : vector<2x64xf32>
    %214 = vector.extract_strided_slice %206 {offsets = [0, 128], sizes = [2, 64], strides = [1, 1]} : vector<2x192xf32> to vector<2x64xf32>
    %215 = math.tanh %213 : vector<2x64xf32>
    %216 = arith.mulf %214, %215 : vector<2x64xf32>
    %217 = vector.extract_strided_slice %216 {offsets = [0, 0], sizes = [2, 32], strides = [1, 1]} : vector<2x64xf32> to vector<2x32xf32>
    %c5_46 = arith.constant 5 : index
    %c0_47 = arith.constant 0 : index
    %c0_48 = arith.constant 0 : index
    %218 = vector.load %arg10[%c5_46, %c0_47, %c0_48] : memref<8x2x32xf32, #tpu.memory_space<vmem>>, vector<1x2x32xf32>
    %219 = vector.shape_cast %218 : vector<1x2x32xf32> to vector<2x32xf32>
    %220 = vector.shape_cast %217 : vector<2x32xf32> to vector<1x2x32xf32>
    tpu.vector_store %arg10[%c5_46, %c0_47, %c0_48], %220 {strides = array<i32>} : memref<8x2x32xf32, #tpu.memory_space<vmem>>, vector<1x2x32xf32>,
    %221 = vector.extract_strided_slice %216 {offsets = [0, 32], sizes = [2, 32], strides = [1, 1]} : vector<2x64xf32> to vector<2x32xf32>
    %c2_49 = arith.constant 2 : index
    %c0_50 = arith.constant 0 : index
    %c0_51 = arith.constant 0 : index
    %222 = vector.load %arg11[%c2_49, %c0_50, %c0_51] : memref<8x2x32xf32, #tpu.memory_space<vmem>>, vector<1x2x32xf32>
    %223 = vector.shape_cast %222 : vector<1x2x32xf32> to vector<2x32xf32>
    %224 = vector.shape_cast %221 : vector<2x32xf32> to vector<1x2x32xf32>
    tpu.vector_store %arg11[%c2_49, %c0_50, %c0_51], %224 {strides = array<i32>} : memref<8x2x32xf32, #tpu.memory_space<vmem>>, vector<1x2x32xf32>,
    %cst_52 = arith.constant dense<0.000000e+00> : vector<2x256xf32>
    %225 = tpu.matmul %216, %1, %cst_52 {dimension_numbers = #tpu.dot_dimension_numbers<[1], [0], [0], [1], [0, 0, 1, 1], [], []>} : vector<2x64xf32>, vector<64x256xf32>, vector<2x256xf32> -> vector<2x256xf32>
    %226 = arith.addf %59, %225 : vector<2x256xf32>
    %227 = vector.extract_strided_slice %226 {offsets = [0, 0], sizes = [2, 192], strides = [1, 1]} : vector<2x256xf32> to vector<2x192xf32>
    %228 = arith.negf %227 : vector<2x192xf32>
    %229 = math.exp %228 : vector<2x192xf32>
    %cst_53 = arith.constant 1.000000e+00 : f32
    %230 = vector.broadcast %cst_53 : f32 to vector<2x192xf32>
    %231 = arith.addf %230, %229 : vector<2x192xf32>
    %232 = arith.divf %230, %231 : vector<2x192xf32>
    %233 = vector.extract_strided_slice %226 {offsets = [0, 192], sizes = [2, 64], strides = [1, 1]} : vector<2x256xf32> to vector<2x64xf32>
    %234 = math.tanh %233 : vector<2x64xf32>
    %235 = vector.extract_strided_slice %232 {offsets = [0, 64], sizes = [2, 64], strides = [1, 1]} : vector<2x192xf32> to vector<2x64xf32>
    %236 = arith.mulf %235, %213 : vector<2x64xf32>
    %237 = vector.extract_strided_slice %232 {offsets = [0, 0], sizes = [2, 64], strides = [1, 1]} : vector<2x192xf32> to vector<2x64xf32>
    %238 = arith.mulf %237, %234 : vector<2x64xf32>
    %239 = arith.addf %236, %238 : vector<2x64xf32>
    %240 = vector.extract_strided_slice %232 {offsets = [0, 128], sizes = [2, 64], strides = [1, 1]} : vector<2x192xf32> to vector<2x64xf32>
    %241 = math.tanh %239 : vector<2x64xf32>
    %242 = arith.mulf %240, %241 : vector<2x64xf32>
    %243 = vector.extract_strided_slice %242 {offsets = [0, 0], sizes = [2, 32], strides = [1, 1]} : vector<2x64xf32> to vector<2x32xf32>
    %c6_54 = arith.constant 6 : index
    %c0_55 = arith.constant 0 : index
    %c0_56 = arith.constant 0 : index
    %244 = vector.load %arg10[%c6_54, %c0_55, %c0_56] : memref<8x2x32xf32, #tpu.memory_space<vmem>>, vector<1x2x32xf32>
    %245 = vector.shape_cast %244 : vector<1x2x32xf32> to vector<2x32xf32>
    %246 = vector.shape_cast %243 : vector<2x32xf32> to vector<1x2x32xf32>
    tpu.vector_store %arg10[%c6_54, %c0_55, %c0_56], %246 {strides = array<i32>} : memref<8x2x32xf32, #tpu.memory_space<vmem>>, vector<1x2x32xf32>,
    %247 = vector.extract_strided_slice %242 {offsets = [0, 32], sizes = [2, 32], strides = [1, 1]} : vector<2x64xf32> to vector<2x32xf32>
    %c1_57 = arith.constant 1 : index
    %c0_58 = arith.constant 0 : index
    %c0_59 = arith.constant 0 : index
    %248 = vector.load %arg11[%c1_57, %c0_58, %c0_59] : memref<8x2x32xf32, #tpu.memory_space<vmem>>, vector<1x2x32xf32>
    %249 = vector.shape_cast %248 : vector<1x2x32xf32> to vector<2x32xf32>
    %250 = vector.shape_cast %247 : vector<2x32xf32> to vector<1x2x32xf32>
    tpu.vector_store %arg11[%c1_57, %c0_58, %c0_59], %250 {strides = array<i32>} : memref<8x2x32xf32, #tpu.memory_space<vmem>>, vector<1x2x32xf32>,
    %cst_60 = arith.constant dense<0.000000e+00> : vector<2x256xf32>
    %251 = tpu.matmul %242, %1, %cst_60 {dimension_numbers = #tpu.dot_dimension_numbers<[1], [0], [0], [1], [0, 0, 1, 1], [], []>} : vector<2x64xf32>, vector<64x256xf32>, vector<2x256xf32> -> vector<2x256xf32>
    %252 = arith.addf %66, %251 : vector<2x256xf32>
    %253 = vector.extract_strided_slice %252 {offsets = [0, 0], sizes = [2, 192], strides = [1, 1]} : vector<2x256xf32> to vector<2x192xf32>
    %254 = arith.negf %253 : vector<2x192xf32>
    %255 = math.exp %254 : vector<2x192xf32>
    %cst_61 = arith.constant 1.000000e+00 : f32
    %256 = vector.broadcast %cst_61 : f32 to vector<2x192xf32>
    %257 = arith.addf %256, %255 : vector<2x192xf32>
    %258 = arith.divf %256, %257 : vector<2x192xf32>
    %259 = vector.extract_strided_slice %252 {offsets = [0, 192], sizes = [2, 64], strides = [1, 1]} : vector<2x256xf32> to vector<2x64xf32>
    %260 = math.tanh %259 : vector<2x64xf32>
    %261 = vector.extract_strided_slice %258 {offsets = [0, 64], sizes = [2, 64], strides = [1, 1]} : vector<2x192xf32> to vector<2x64xf32>
    %262 = arith.mulf %261, %239 : vector<2x64xf32>
    %263 = vector.extract_strided_slice %258 {offsets = [0, 0], sizes = [2, 64], strides = [1, 1]} : vector<2x192xf32> to vector<2x64xf32>
    %264 = arith.mulf %263, %260 : vector<2x64xf32>
    %265 = arith.addf %262, %264 : vector<2x64xf32>
    %266 = vector.extract_strided_slice %258 {offsets = [0, 128], sizes = [2, 64], strides = [1, 1]} : vector<2x192xf32> to vector<2x64xf32>
    %267 = math.tanh %265 : vector<2x64xf32>
    %268 = arith.mulf %266, %267 : vector<2x64xf32>
    %269 = vector.extract_strided_slice %268 {offsets = [0, 0], sizes = [2, 32], strides = [1, 1]} : vector<2x64xf32> to vector<2x32xf32>
    %c7_62 = arith.constant 7 : index
    %c0_63 = arith.constant 0 : index
    %c0_64 = arith.constant 0 : index
    %270 = vector.load %arg10[%c7_62, %c0_63, %c0_64] : memref<8x2x32xf32, #tpu.memory_space<vmem>>, vector<1x2x32xf32>
    %271 = vector.shape_cast %270 : vector<1x2x32xf32> to vector<2x32xf32>
    %272 = vector.shape_cast %269 : vector<2x32xf32> to vector<1x2x32xf32>
    tpu.vector_store %arg10[%c7_62, %c0_63, %c0_64], %272 {strides = array<i32>} : memref<8x2x32xf32, #tpu.memory_space<vmem>>, vector<1x2x32xf32>,
    %273 = vector.extract_strided_slice %268 {offsets = [0, 32], sizes = [2, 32], strides = [1, 1]} : vector<2x64xf32> to vector<2x32xf32>
    %c0_65 = arith.constant 0 : index
    %c0_66 = arith.constant 0 : index
    %c0_67 = arith.constant 0 : index
    %274 = vector.load %arg11[%c0_65, %c0_66, %c0_67] : memref<8x2x32xf32, #tpu.memory_space<vmem>>, vector<1x2x32xf32>
    %275 = vector.shape_cast %274 : vector<1x2x32xf32> to vector<2x32xf32>
    %276 = vector.shape_cast %273 : vector<2x32xf32> to vector<1x2x32xf32>
    tpu.vector_store %arg11[%c0_65, %c0_66, %c0_67], %276 {strides = array<i32>} : memref<8x2x32xf32, #tpu.memory_space<vmem>>, vector<1x2x32xf32>,
    %c0_68 = arith.constant 0 : index
    %c0_69 = arith.constant 0 : index
    %277 = vector.load %arg4[%c0_68, %c0_69] : memref<128x256xf32, #tpu.memory_space<vmem>>, vector<128x256xf32>
    %c0_70 = arith.constant 0 : index
    %c0_71 = arith.constant 0 : index
    %278 = vector.load %arg5[%c0_70, %c0_71] : memref<64x256xf32, #tpu.memory_space<vmem>>, vector<64x256xf32>
    %c0_72 = arith.constant 0 : index
    %c0_73 = arith.constant 0 : index
    %279 = vector.load %arg6[%c0_72, %c0_73] : memref<1x256xf32, #tpu.memory_space<vmem>>, vector<1x256xf32>
    %c0_74 = arith.constant 0 : index
    %c0_75 = arith.constant 0 : index
    %c0_76 = arith.constant 0 : index
    %280 = vector.load %arg10[%c0_74, %c0_75, %c0_76] : memref<8x2x32xf32, #tpu.memory_space<vmem>>, vector<8x2x32xf32>
    %281 = vector.shape_cast %280 : vector<8x2x32xf32> to vector<16x32xf32>
    %c0_77 = arith.constant 0 : index
    %c0_78 = arith.constant 0 : index
    %c0_79 = arith.constant 0 : index
    %282 = vector.load %arg11[%c0_77, %c0_78, %c0_79] : memref<8x2x32xf32, #tpu.memory_space<vmem>>, vector<8x2x32xf32>
    %283 = vector.shape_cast %282 : vector<8x2x32xf32> to vector<16x32xf32>
    %284 = vector.extract_strided_slice %277 {offsets = [0, 0], sizes = [32, 256], strides = [1, 1]} : vector<128x256xf32> to vector<32x256xf32>
    %cst_80 = arith.constant dense<0.000000e+00> : vector<16x256xf32>
    %285 = tpu.matmul %281, %284, %cst_80 {dimension_numbers = #tpu.dot_dimension_numbers<[1], [0], [0], [1], [0, 0, 1, 1], [], []>} : vector<16x32xf32>, vector<32x256xf32>, vector<16x256xf32> -> vector<16x256xf32>
    %286 = vector.extract_strided_slice %277 {offsets = [32, 0], sizes = [32, 256], strides = [1, 1]} : vector<128x256xf32> to vector<32x256xf32>
    %cst_81 = arith.constant dense<0.000000e+00> : vector<16x256xf32>
    %287 = tpu.matmul %283, %286, %cst_81 {dimension_numbers = #tpu.dot_dimension_numbers<[1], [0], [0], [1], [0, 0, 1, 1], [], []>} : vector<16x32xf32>, vector<32x256xf32>, vector<16x256xf32> -> vector<16x256xf32>
    %288 = arith.addf %285, %287 : vector<16x256xf32>
    %289 = vector.shape_cast %288 : vector<16x256xf32> to vector<8x2x256xf32>
    %290 = vector.extract_strided_slice %277 {offsets = [64, 0], sizes = [32, 256], strides = [1, 1]} : vector<128x256xf32> to vector<32x256xf32>
    %cst_82 = arith.constant dense<0.000000e+00> : vector<16x256xf32>
    %291 = tpu.matmul %281, %290, %cst_82 {dimension_numbers = #tpu.dot_dimension_numbers<[1], [0], [0], [1], [0, 0, 1, 1], [], []>} : vector<16x32xf32>, vector<32x256xf32>, vector<16x256xf32> -> vector<16x256xf32>
    %292 = vector.extract_strided_slice %277 {offsets = [96, 0], sizes = [32, 256], strides = [1, 1]} : vector<128x256xf32> to vector<32x256xf32>
    %cst_83 = arith.constant dense<0.000000e+00> : vector<16x256xf32>
    %293 = tpu.matmul %283, %292, %cst_83 {dimension_numbers = #tpu.dot_dimension_numbers<[1], [0], [0], [1], [0, 0, 1, 1], [], []>} : vector<16x32xf32>, vector<32x256xf32>, vector<16x256xf32> -> vector<16x256xf32>
    %294 = arith.addf %291, %293 : vector<16x256xf32>
    %295 = vector.shape_cast %294 : vector<16x256xf32> to vector<8x2x256xf32>
    %296 = vector.extract_strided_slice %289 {offsets = [0, 0, 0], sizes = [1, 2, 256], strides = [1, 1, 1]} : vector<8x2x256xf32> to vector<1x2x256xf32>
    %297 = vector.shape_cast %296 : vector<1x2x256xf32> to vector<2x256xf32>
    %298 = vector.extract_strided_slice %295 {offsets = [7, 0, 0], sizes = [1, 2, 256], strides = [1, 1, 1]} : vector<8x2x256xf32> to vector<1x2x256xf32>
    %299 = vector.shape_cast %298 : vector<1x2x256xf32> to vector<2x256xf32>
    %300 = arith.addf %297, %299 : vector<2x256xf32>
    %301 = vector.broadcast %279 : vector<1x256xf32> to vector<2x256xf32>
    %302 = arith.addf %300, %301 : vector<2x256xf32>
    %303 = vector.extract_strided_slice %289 {offsets = [1, 0, 0], sizes = [1, 2, 256], strides = [1, 1, 1]} : vector<8x2x256xf32> to vector<1x2x256xf32>
    %304 = vector.shape_cast %303 : vector<1x2x256xf32> to vector<2x256xf32>
    %305 = vector.extract_strided_slice %295 {offsets = [6, 0, 0], sizes = [1, 2, 256], strides = [1, 1, 1]} : vector<8x2x256xf32> to vector<1x2x256xf32>
    %306 = vector.shape_cast %305 : vector<1x2x256xf32> to vector<2x256xf32>
    %307 = arith.addf %304, %306 : vector<2x256xf32>
    %308 = vector.broadcast %279 : vector<1x256xf32> to vector<2x256xf32>
    %309 = arith.addf %307, %308 : vector<2x256xf32>
    %310 = vector.extract_strided_slice %289 {offsets = [2, 0, 0], sizes = [1, 2, 256], strides = [1, 1, 1]} : vector<8x2x256xf32> to vector<1x2x256xf32>
    %311 = vector.shape_cast %310 : vector<1x2x256xf32> to vector<2x256xf32>
    %312 = vector.extract_strided_slice %295 {offsets = [5, 0, 0], sizes = [1, 2, 256], strides = [1, 1, 1]} : vector<8x2x256xf32> to vector<1x2x256xf32>
    %313 = vector.shape_cast %312 : vector<1x2x256xf32> to vector<2x256xf32>
    %314 = arith.addf %311, %313 : vector<2x256xf32>
    %315 = vector.broadcast %279 : vector<1x256xf32> to vector<2x256xf32>
    %316 = arith.addf %314, %315 : vector<2x256xf32>
    %317 = vector.extract_strided_slice %289 {offsets = [3, 0, 0], sizes = [1, 2, 256], strides = [1, 1, 1]} : vector<8x2x256xf32> to vector<1x2x256xf32>
    %318 = vector.shape_cast %317 : vector<1x2x256xf32> to vector<2x256xf32>
    %319 = vector.extract_strided_slice %295 {offsets = [4, 0, 0], sizes = [1, 2, 256], strides = [1, 1, 1]} : vector<8x2x256xf32> to vector<1x2x256xf32>
    %320 = vector.shape_cast %319 : vector<1x2x256xf32> to vector<2x256xf32>
    %321 = arith.addf %318, %320 : vector<2x256xf32>
    %322 = vector.broadcast %279 : vector<1x256xf32> to vector<2x256xf32>
    %323 = arith.addf %321, %322 : vector<2x256xf32>
    %324 = vector.extract_strided_slice %289 {offsets = [4, 0, 0], sizes = [1, 2, 256], strides = [1, 1, 1]} : vector<8x2x256xf32> to vector<1x2x256xf32>
    %325 = vector.shape_cast %324 : vector<1x2x256xf32> to vector<2x256xf32>
    %326 = vector.extract_strided_slice %295 {offsets = [3, 0, 0], sizes = [1, 2, 256], strides = [1, 1, 1]} : vector<8x2x256xf32> to vector<1x2x256xf32>
    %327 = vector.shape_cast %326 : vector<1x2x256xf32> to vector<2x256xf32>
    %328 = arith.addf %325, %327 : vector<2x256xf32>
    %329 = vector.broadcast %279 : vector<1x256xf32> to vector<2x256xf32>
    %330 = arith.addf %328, %329 : vector<2x256xf32>
    %331 = vector.extract_strided_slice %289 {offsets = [5, 0, 0], sizes = [1, 2, 256], strides = [1, 1, 1]} : vector<8x2x256xf32> to vector<1x2x256xf32>
    %332 = vector.shape_cast %331 : vector<1x2x256xf32> to vector<2x256xf32>
    %333 = vector.extract_strided_slice %295 {offsets = [2, 0, 0], sizes = [1, 2, 256], strides = [1, 1, 1]} : vector<8x2x256xf32> to vector<1x2x256xf32>
    %334 = vector.shape_cast %333 : vector<1x2x256xf32> to vector<2x256xf32>
    %335 = arith.addf %332, %334 : vector<2x256xf32>
    %336 = vector.broadcast %279 : vector<1x256xf32> to vector<2x256xf32>
    %337 = arith.addf %335, %336 : vector<2x256xf32>
    %338 = vector.extract_strided_slice %289 {offsets = [6, 0, 0], sizes = [1, 2, 256], strides = [1, 1, 1]} : vector<8x2x256xf32> to vector<1x2x256xf32>
    %339 = vector.shape_cast %338 : vector<1x2x256xf32> to vector<2x256xf32>
    %340 = vector.extract_strided_slice %295 {offsets = [1, 0, 0], sizes = [1, 2, 256], strides = [1, 1, 1]} : vector<8x2x256xf32> to vector<1x2x256xf32>
    %341 = vector.shape_cast %340 : vector<1x2x256xf32> to vector<2x256xf32>
    %342 = arith.addf %339, %341 : vector<2x256xf32>
    %343 = vector.broadcast %279 : vector<1x256xf32> to vector<2x256xf32>
    %344 = arith.addf %342, %343 : vector<2x256xf32>
    %345 = vector.extract_strided_slice %289 {offsets = [7, 0, 0], sizes = [1, 2, 256], strides = [1, 1, 1]} : vector<8x2x256xf32> to vector<1x2x256xf32>
    %346 = vector.shape_cast %345 : vector<1x2x256xf32> to vector<2x256xf32>
    %347 = vector.extract_strided_slice %295 {offsets = [0, 0, 0], sizes = [1, 2, 256], strides = [1, 1, 1]} : vector<8x2x256xf32> to vector<1x2x256xf32>
    %348 = vector.shape_cast %347 : vector<1x2x256xf32> to vector<2x256xf32>
    %349 = arith.addf %346, %348 : vector<2x256xf32>
    %350 = vector.broadcast %279 : vector<1x256xf32> to vector<2x256xf32>
    %351 = arith.addf %349, %350 : vector<2x256xf32>
    %cst_84 = arith.constant 0.000000e+00 : f32
    %352 = vector.broadcast %cst_84 : f32 to vector<2x64xf32>
    %cst_85 = arith.constant 0.000000e+00 : f32
    %353 = vector.broadcast %cst_85 : f32 to vector<2x64xf32>
    %cst_86 = arith.constant dense<0.000000e+00> : vector<2x256xf32>
    %354 = tpu.matmul %352, %278, %cst_86 {dimension_numbers = #tpu.dot_dimension_numbers<[1], [0], [0], [1], [0, 0, 1, 1], [], []>} : vector<2x64xf32>, vector<64x256xf32>, vector<2x256xf32> -> vector<2x256xf32>
    %355 = arith.addf %302, %354 : vector<2x256xf32>
    %356 = vector.extract_strided_slice %355 {offsets = [0, 0], sizes = [2, 192], strides = [1, 1]} : vector<2x256xf32> to vector<2x192xf32>
    %357 = arith.negf %356 : vector<2x192xf32>
    %358 = math.exp %357 : vector<2x192xf32>
    %cst_87 = arith.constant 1.000000e+00 : f32
    %359 = vector.broadcast %cst_87 : f32 to vector<2x192xf32>
    %360 = arith.addf %359, %358 : vector<2x192xf32>
    %361 = arith.divf %359, %360 : vector<2x192xf32>
    %362 = vector.extract_strided_slice %355 {offsets = [0, 192], sizes = [2, 64], strides = [1, 1]} : vector<2x256xf32> to vector<2x64xf32>
    %363 = math.tanh %362 : vector<2x64xf32>
    %364 = vector.extract_strided_slice %361 {offsets = [0, 64], sizes = [2, 64], strides = [1, 1]} : vector<2x192xf32> to vector<2x64xf32>
    %365 = arith.mulf %364, %353 : vector<2x64xf32>
    %366 = vector.extract_strided_slice %361 {offsets = [0, 0], sizes = [2, 64], strides = [1, 1]} : vector<2x192xf32> to vector<2x64xf32>
    %367 = arith.mulf %366, %363 : vector<2x64xf32>
    %368 = arith.addf %365, %367 : vector<2x64xf32>
    %369 = vector.extract_strided_slice %361 {offsets = [0, 128], sizes = [2, 64], strides = [1, 1]} : vector<2x192xf32> to vector<2x64xf32>
    %370 = math.tanh %368 : vector<2x64xf32>
    %371 = arith.mulf %369, %370 : vector<2x64xf32>
    %372 = vector.extract_strided_slice %371 {offsets = [0, 0], sizes = [2, 32], strides = [1, 1]} : vector<2x64xf32> to vector<2x32xf32>
    %c0_88 = arith.constant 0 : index
    %c0_89 = arith.constant 0 : index
    %c0_90 = arith.constant 0 : index
    %373 = vector.load %arg12[%c0_88, %c0_89, %c0_90] : memref<8x2x32xf32, #tpu.memory_space<vmem>>, vector<1x2x32xf32>
    %374 = vector.shape_cast %373 : vector<1x2x32xf32> to vector<2x32xf32>
    %375 = vector.shape_cast %372 : vector<2x32xf32> to vector<1x2x32xf32>
    tpu.vector_store %arg12[%c0_88, %c0_89, %c0_90], %375 {strides = array<i32>} : memref<8x2x32xf32, #tpu.memory_space<vmem>>, vector<1x2x32xf32>,
    %376 = vector.extract_strided_slice %371 {offsets = [0, 32], sizes = [2, 32], strides = [1, 1]} : vector<2x64xf32> to vector<2x32xf32>
    %c7_91 = arith.constant 7 : index
    %c0_92 = arith.constant 0 : index
    %c0_93 = arith.constant 0 : index
    %377 = vector.load %arg13[%c7_91, %c0_92, %c0_93] : memref<8x2x32xf32, #tpu.memory_space<vmem>>, vector<1x2x32xf32>
    %378 = vector.shape_cast %377 : vector<1x2x32xf32> to vector<2x32xf32>
    %379 = vector.shape_cast %376 : vector<2x32xf32> to vector<1x2x32xf32>
    tpu.vector_store %arg13[%c7_91, %c0_92, %c0_93], %379 {strides = array<i32>} : memref<8x2x32xf32, #tpu.memory_space<vmem>>, vector<1x2x32xf32>,
    %cst_94 = arith.constant dense<0.000000e+00> : vector<2x256xf32>
    %380 = tpu.matmul %371, %278, %cst_94 {dimension_numbers = #tpu.dot_dimension_numbers<[1], [0], [0], [1], [0, 0, 1, 1], [], []>} : vector<2x64xf32>, vector<64x256xf32>, vector<2x256xf32> -> vector<2x256xf32>
    %381 = arith.addf %309, %380 : vector<2x256xf32>
    %382 = vector.extract_strided_slice %381 {offsets = [0, 0], sizes = [2, 192], strides = [1, 1]} : vector<2x256xf32> to vector<2x192xf32>
    %383 = arith.negf %382 : vector<2x192xf32>
    %384 = math.exp %383 : vector<2x192xf32>
    %cst_95 = arith.constant 1.000000e+00 : f32
    %385 = vector.broadcast %cst_95 : f32 to vector<2x192xf32>
    %386 = arith.addf %385, %384 : vector<2x192xf32>
    %387 = arith.divf %385, %386 : vector<2x192xf32>
    %388 = vector.extract_strided_slice %381 {offsets = [0, 192], sizes = [2, 64], strides = [1, 1]} : vector<2x256xf32> to vector<2x64xf32>
    %389 = math.tanh %388 : vector<2x64xf32>
    %390 = vector.extract_strided_slice %387 {offsets = [0, 64], sizes = [2, 64], strides = [1, 1]} : vector<2x192xf32> to vector<2x64xf32>
    %391 = arith.mulf %390, %368 : vector<2x64xf32>
    %392 = vector.extract_strided_slice %387 {offsets = [0, 0], sizes = [2, 64], strides = [1, 1]} : vector<2x192xf32> to vector<2x64xf32>
    %393 = arith.mulf %392, %389 : vector<2x64xf32>
    %394 = arith.addf %391, %393 : vector<2x64xf32>
    %395 = vector.extract_strided_slice %387 {offsets = [0, 128], sizes = [2, 64], strides = [1, 1]} : vector<2x192xf32> to vector<2x64xf32>
    %396 = math.tanh %394 : vector<2x64xf32>
    %397 = arith.mulf %395, %396 : vector<2x64xf32>
    %398 = vector.extract_strided_slice %397 {offsets = [0, 0], sizes = [2, 32], strides = [1, 1]} : vector<2x64xf32> to vector<2x32xf32>
    %c1_96 = arith.constant 1 : index
    %c0_97 = arith.constant 0 : index
    %c0_98 = arith.constant 0 : index
    %399 = vector.load %arg12[%c1_96, %c0_97, %c0_98] : memref<8x2x32xf32, #tpu.memory_space<vmem>>, vector<1x2x32xf32>
    %400 = vector.shape_cast %399 : vector<1x2x32xf32> to vector<2x32xf32>
    %401 = vector.shape_cast %398 : vector<2x32xf32> to vector<1x2x32xf32>
    tpu.vector_store %arg12[%c1_96, %c0_97, %c0_98], %401 {strides = array<i32>} : memref<8x2x32xf32, #tpu.memory_space<vmem>>, vector<1x2x32xf32>,
    %402 = vector.extract_strided_slice %397 {offsets = [0, 32], sizes = [2, 32], strides = [1, 1]} : vector<2x64xf32> to vector<2x32xf32>
    %c6_99 = arith.constant 6 : index
    %c0_100 = arith.constant 0 : index
    %c0_101 = arith.constant 0 : index
    %403 = vector.load %arg13[%c6_99, %c0_100, %c0_101] : memref<8x2x32xf32, #tpu.memory_space<vmem>>, vector<1x2x32xf32>
    %404 = vector.shape_cast %403 : vector<1x2x32xf32> to vector<2x32xf32>
    %405 = vector.shape_cast %402 : vector<2x32xf32> to vector<1x2x32xf32>
    tpu.vector_store %arg13[%c6_99, %c0_100, %c0_101], %405 {strides = array<i32>} : memref<8x2x32xf32, #tpu.memory_space<vmem>>, vector<1x2x32xf32>,
    %cst_102 = arith.constant dense<0.000000e+00> : vector<2x256xf32>
    %406 = tpu.matmul %397, %278, %cst_102 {dimension_numbers = #tpu.dot_dimension_numbers<[1], [0], [0], [1], [0, 0, 1, 1], [], []>} : vector<2x64xf32>, vector<64x256xf32>, vector<2x256xf32> -> vector<2x256xf32>
    %407 = arith.addf %316, %406 : vector<2x256xf32>
    %408 = vector.extract_strided_slice %407 {offsets = [0, 0], sizes = [2, 192], strides = [1, 1]} : vector<2x256xf32> to vector<2x192xf32>
    %409 = arith.negf %408 : vector<2x192xf32>
    %410 = math.exp %409 : vector<2x192xf32>
    %cst_103 = arith.constant 1.000000e+00 : f32
    %411 = vector.broadcast %cst_103 : f32 to vector<2x192xf32>
    %412 = arith.addf %411, %410 : vector<2x192xf32>
    %413 = arith.divf %411, %412 : vector<2x192xf32>
    %414 = vector.extract_strided_slice %407 {offsets = [0, 192], sizes = [2, 64], strides = [1, 1]} : vector<2x256xf32> to vector<2x64xf32>
    %415 = math.tanh %414 : vector<2x64xf32>
    %416 = vector.extract_strided_slice %413 {offsets = [0, 64], sizes = [2, 64], strides = [1, 1]} : vector<2x192xf32> to vector<2x64xf32>
    %417 = arith.mulf %416, %394 : vector<2x64xf32>
    %418 = vector.extract_strided_slice %413 {offsets = [0, 0], sizes = [2, 64], strides = [1, 1]} : vector<2x192xf32> to vector<2x64xf32>
    %419 = arith.mulf %418, %415 : vector<2x64xf32>
    %420 = arith.addf %417, %419 : vector<2x64xf32>
    %421 = vector.extract_strided_slice %413 {offsets = [0, 128], sizes = [2, 64], strides = [1, 1]} : vector<2x192xf32> to vector<2x64xf32>
    %422 = math.tanh %420 : vector<2x64xf32>
    %423 = arith.mulf %421, %422 : vector<2x64xf32>
    %424 = vector.extract_strided_slice %423 {offsets = [0, 0], sizes = [2, 32], strides = [1, 1]} : vector<2x64xf32> to vector<2x32xf32>
    %c2_104 = arith.constant 2 : index
    %c0_105 = arith.constant 0 : index
    %c0_106 = arith.constant 0 : index
    %425 = vector.load %arg12[%c2_104, %c0_105, %c0_106] : memref<8x2x32xf32, #tpu.memory_space<vmem>>, vector<1x2x32xf32>
    %426 = vector.shape_cast %425 : vector<1x2x32xf32> to vector<2x32xf32>
    %427 = vector.shape_cast %424 : vector<2x32xf32> to vector<1x2x32xf32>
    tpu.vector_store %arg12[%c2_104, %c0_105, %c0_106], %427 {strides = array<i32>} : memref<8x2x32xf32, #tpu.memory_space<vmem>>, vector<1x2x32xf32>,
    %428 = vector.extract_strided_slice %423 {offsets = [0, 32], sizes = [2, 32], strides = [1, 1]} : vector<2x64xf32> to vector<2x32xf32>
    %c5_107 = arith.constant 5 : index
    %c0_108 = arith.constant 0 : index
    %c0_109 = arith.constant 0 : index
    %429 = vector.load %arg13[%c5_107, %c0_108, %c0_109] : memref<8x2x32xf32, #tpu.memory_space<vmem>>, vector<1x2x32xf32>
    %430 = vector.shape_cast %429 : vector<1x2x32xf32> to vector<2x32xf32>
    %431 = vector.shape_cast %428 : vector<2x32xf32> to vector<1x2x32xf32>
    tpu.vector_store %arg13[%c5_107, %c0_108, %c0_109], %431 {strides = array<i32>} : memref<8x2x32xf32, #tpu.memory_space<vmem>>, vector<1x2x32xf32>,
    %cst_110 = arith.constant dense<0.000000e+00> : vector<2x256xf32>
    %432 = tpu.matmul %423, %278, %cst_110 {dimension_numbers = #tpu.dot_dimension_numbers<[1], [0], [0], [1], [0, 0, 1, 1], [], []>} : vector<2x64xf32>, vector<64x256xf32>, vector<2x256xf32> -> vector<2x256xf32>
    %433 = arith.addf %323, %432 : vector<2x256xf32>
    %434 = vector.extract_strided_slice %433 {offsets = [0, 0], sizes = [2, 192], strides = [1, 1]} : vector<2x256xf32> to vector<2x192xf32>
    %435 = arith.negf %434 : vector<2x192xf32>
    %436 = math.exp %435 : vector<2x192xf32>
    %cst_111 = arith.constant 1.000000e+00 : f32
    %437 = vector.broadcast %cst_111 : f32 to vector<2x192xf32>
    %438 = arith.addf %437, %436 : vector<2x192xf32>
    %439 = arith.divf %437, %438 : vector<2x192xf32>
    %440 = vector.extract_strided_slice %433 {offsets = [0, 192], sizes = [2, 64], strides = [1, 1]} : vector<2x256xf32> to vector<2x64xf32>
    %441 = math.tanh %440 : vector<2x64xf32>
    %442 = vector.extract_strided_slice %439 {offsets = [0, 64], sizes = [2, 64], strides = [1, 1]} : vector<2x192xf32> to vector<2x64xf32>
    %443 = arith.mulf %442, %420 : vector<2x64xf32>
    %444 = vector.extract_strided_slice %439 {offsets = [0, 0], sizes = [2, 64], strides = [1, 1]} : vector<2x192xf32> to vector<2x64xf32>
    %445 = arith.mulf %444, %441 : vector<2x64xf32>
    %446 = arith.addf %443, %445 : vector<2x64xf32>
    %447 = vector.extract_strided_slice %439 {offsets = [0, 128], sizes = [2, 64], strides = [1, 1]} : vector<2x192xf32> to vector<2x64xf32>
    %448 = math.tanh %446 : vector<2x64xf32>
    %449 = arith.mulf %447, %448 : vector<2x64xf32>
    %450 = vector.extract_strided_slice %449 {offsets = [0, 0], sizes = [2, 32], strides = [1, 1]} : vector<2x64xf32> to vector<2x32xf32>
    %c3_112 = arith.constant 3 : index
    %c0_113 = arith.constant 0 : index
    %c0_114 = arith.constant 0 : index
    %451 = vector.load %arg12[%c3_112, %c0_113, %c0_114] : memref<8x2x32xf32, #tpu.memory_space<vmem>>, vector<1x2x32xf32>
    %452 = vector.shape_cast %451 : vector<1x2x32xf32> to vector<2x32xf32>
    %453 = vector.shape_cast %450 : vector<2x32xf32> to vector<1x2x32xf32>
    tpu.vector_store %arg12[%c3_112, %c0_113, %c0_114], %453 {strides = array<i32>} : memref<8x2x32xf32, #tpu.memory_space<vmem>>, vector<1x2x32xf32>,
    %454 = vector.extract_strided_slice %449 {offsets = [0, 32], sizes = [2, 32], strides = [1, 1]} : vector<2x64xf32> to vector<2x32xf32>
    %c4_115 = arith.constant 4 : index
    %c0_116 = arith.constant 0 : index
    %c0_117 = arith.constant 0 : index
    %455 = vector.load %arg13[%c4_115, %c0_116, %c0_117] : memref<8x2x32xf32, #tpu.memory_space<vmem>>, vector<1x2x32xf32>
    %456 = vector.shape_cast %455 : vector<1x2x32xf32> to vector<2x32xf32>
    %457 = vector.shape_cast %454 : vector<2x32xf32> to vector<1x2x32xf32>
    tpu.vector_store %arg13[%c4_115, %c0_116, %c0_117], %457 {strides = array<i32>} : memref<8x2x32xf32, #tpu.memory_space<vmem>>, vector<1x2x32xf32>,
    %cst_118 = arith.constant dense<0.000000e+00> : vector<2x256xf32>
    %458 = tpu.matmul %449, %278, %cst_118 {dimension_numbers = #tpu.dot_dimension_numbers<[1], [0], [0], [1], [0, 0, 1, 1], [], []>} : vector<2x64xf32>, vector<64x256xf32>, vector<2x256xf32> -> vector<2x256xf32>
    %459 = arith.addf %330, %458 : vector<2x256xf32>
    %460 = vector.extract_strided_slice %459 {offsets = [0, 0], sizes = [2, 192], strides = [1, 1]} : vector<2x256xf32> to vector<2x192xf32>
    %461 = arith.negf %460 : vector<2x192xf32>
    %462 = math.exp %461 : vector<2x192xf32>
    %cst_119 = arith.constant 1.000000e+00 : f32
    %463 = vector.broadcast %cst_119 : f32 to vector<2x192xf32>
    %464 = arith.addf %463, %462 : vector<2x192xf32>
    %465 = arith.divf %463, %464 : vector<2x192xf32>
    %466 = vector.extract_strided_slice %459 {offsets = [0, 192], sizes = [2, 64], strides = [1, 1]} : vector<2x256xf32> to vector<2x64xf32>
    %467 = math.tanh %466 : vector<2x64xf32>
    %468 = vector.extract_strided_slice %465 {offsets = [0, 64], sizes = [2, 64], strides = [1, 1]} : vector<2x192xf32> to vector<2x64xf32>
    %469 = arith.mulf %468, %446 : vector<2x64xf32>
    %470 = vector.extract_strided_slice %465 {offsets = [0, 0], sizes = [2, 64], strides = [1, 1]} : vector<2x192xf32> to vector<2x64xf32>
    %471 = arith.mulf %470, %467 : vector<2x64xf32>
    %472 = arith.addf %469, %471 : vector<2x64xf32>
    %473 = vector.extract_strided_slice %465 {offsets = [0, 128], sizes = [2, 64], strides = [1, 1]} : vector<2x192xf32> to vector<2x64xf32>
    %474 = math.tanh %472 : vector<2x64xf32>
    %475 = arith.mulf %473, %474 : vector<2x64xf32>
    %476 = vector.extract_strided_slice %475 {offsets = [0, 0], sizes = [2, 32], strides = [1, 1]} : vector<2x64xf32> to vector<2x32xf32>
    %c4_120 = arith.constant 4 : index
    %c0_121 = arith.constant 0 : index
    %c0_122 = arith.constant 0 : index
    %477 = vector.load %arg12[%c4_120, %c0_121, %c0_122] : memref<8x2x32xf32, #tpu.memory_space<vmem>>, vector<1x2x32xf32>
    %478 = vector.shape_cast %477 : vector<1x2x32xf32> to vector<2x32xf32>
    %479 = vector.shape_cast %476 : vector<2x32xf32> to vector<1x2x32xf32>
    tpu.vector_store %arg12[%c4_120, %c0_121, %c0_122], %479 {strides = array<i32>} : memref<8x2x32xf32, #tpu.memory_space<vmem>>, vector<1x2x32xf32>,
    %480 = vector.extract_strided_slice %475 {offsets = [0, 32], sizes = [2, 32], strides = [1, 1]} : vector<2x64xf32> to vector<2x32xf32>
    %c3_123 = arith.constant 3 : index
    %c0_124 = arith.constant 0 : index
    %c0_125 = arith.constant 0 : index
    %481 = vector.load %arg13[%c3_123, %c0_124, %c0_125] : memref<8x2x32xf32, #tpu.memory_space<vmem>>, vector<1x2x32xf32>
    %482 = vector.shape_cast %481 : vector<1x2x32xf32> to vector<2x32xf32>
    %483 = vector.shape_cast %480 : vector<2x32xf32> to vector<1x2x32xf32>
    tpu.vector_store %arg13[%c3_123, %c0_124, %c0_125], %483 {strides = array<i32>} : memref<8x2x32xf32, #tpu.memory_space<vmem>>, vector<1x2x32xf32>,
    %cst_126 = arith.constant dense<0.000000e+00> : vector<2x256xf32>
    %484 = tpu.matmul %475, %278, %cst_126 {dimension_numbers = #tpu.dot_dimension_numbers<[1], [0], [0], [1], [0, 0, 1, 1], [], []>} : vector<2x64xf32>, vector<64x256xf32>, vector<2x256xf32> -> vector<2x256xf32>
    %485 = arith.addf %337, %484 : vector<2x256xf32>
    %486 = vector.extract_strided_slice %485 {offsets = [0, 0], sizes = [2, 192], strides = [1, 1]} : vector<2x256xf32> to vector<2x192xf32>
    %487 = arith.negf %486 : vector<2x192xf32>
    %488 = math.exp %487 : vector<2x192xf32>
    %cst_127 = arith.constant 1.000000e+00 : f32
    %489 = vector.broadcast %cst_127 : f32 to vector<2x192xf32>
    %490 = arith.addf %489, %488 : vector<2x192xf32>
    %491 = arith.divf %489, %490 : vector<2x192xf32>
    %492 = vector.extract_strided_slice %485 {offsets = [0, 192], sizes = [2, 64], strides = [1, 1]} : vector<2x256xf32> to vector<2x64xf32>
    %493 = math.tanh %492 : vector<2x64xf32>
    %494 = vector.extract_strided_slice %491 {offsets = [0, 64], sizes = [2, 64], strides = [1, 1]} : vector<2x192xf32> to vector<2x64xf32>
    %495 = arith.mulf %494, %472 : vector<2x64xf32>
    %496 = vector.extract_strided_slice %491 {offsets = [0, 0], sizes = [2, 64], strides = [1, 1]} : vector<2x192xf32> to vector<2x64xf32>
    %497 = arith.mulf %496, %493 : vector<2x64xf32>
    %498 = arith.addf %495, %497 : vector<2x64xf32>
    %499 = vector.extract_strided_slice %491 {offsets = [0, 128], sizes = [2, 64], strides = [1, 1]} : vector<2x192xf32> to vector<2x64xf32>
    %500 = math.tanh %498 : vector<2x64xf32>
    %501 = arith.mulf %499, %500 : vector<2x64xf32>
    %502 = vector.extract_strided_slice %501 {offsets = [0, 0], sizes = [2, 32], strides = [1, 1]} : vector<2x64xf32> to vector<2x32xf32>
    %c5_128 = arith.constant 5 : index
    %c0_129 = arith.constant 0 : index
    %c0_130 = arith.constant 0 : index
    %503 = vector.load %arg12[%c5_128, %c0_129, %c0_130] : memref<8x2x32xf32, #tpu.memory_space<vmem>>, vector<1x2x32xf32>
    %504 = vector.shape_cast %503 : vector<1x2x32xf32> to vector<2x32xf32>
    %505 = vector.shape_cast %502 : vector<2x32xf32> to vector<1x2x32xf32>
    tpu.vector_store %arg12[%c5_128, %c0_129, %c0_130], %505 {strides = array<i32>} : memref<8x2x32xf32, #tpu.memory_space<vmem>>, vector<1x2x32xf32>,
    %506 = vector.extract_strided_slice %501 {offsets = [0, 32], sizes = [2, 32], strides = [1, 1]} : vector<2x64xf32> to vector<2x32xf32>
    %c2_131 = arith.constant 2 : index
    %c0_132 = arith.constant 0 : index
    %c0_133 = arith.constant 0 : index
    %507 = vector.load %arg13[%c2_131, %c0_132, %c0_133] : memref<8x2x32xf32, #tpu.memory_space<vmem>>, vector<1x2x32xf32>
    %508 = vector.shape_cast %507 : vector<1x2x32xf32> to vector<2x32xf32>
    %509 = vector.shape_cast %506 : vector<2x32xf32> to vector<1x2x32xf32>
    tpu.vector_store %arg13[%c2_131, %c0_132, %c0_133], %509 {strides = array<i32>} : memref<8x2x32xf32, #tpu.memory_space<vmem>>, vector<1x2x32xf32>,
    %cst_134 = arith.constant dense<0.000000e+00> : vector<2x256xf32>
    %510 = tpu.matmul %501, %278, %cst_134 {dimension_numbers = #tpu.dot_dimension_numbers<[1], [0], [0], [1], [0, 0, 1, 1], [], []>} : vector<2x64xf32>, vector<64x256xf32>, vector<2x256xf32> -> vector<2x256xf32>
    %511 = arith.addf %344, %510 : vector<2x256xf32>
    %512 = vector.extract_strided_slice %511 {offsets = [0, 0], sizes = [2, 192], strides = [1, 1]} : vector<2x256xf32> to vector<2x192xf32>
    %513 = arith.negf %512 : vector<2x192xf32>
    %514 = math.exp %513 : vector<2x192xf32>
    %cst_135 = arith.constant 1.000000e+00 : f32
    %515 = vector.broadcast %cst_135 : f32 to vector<2x192xf32>
    %516 = arith.addf %515, %514 : vector<2x192xf32>
    %517 = arith.divf %515, %516 : vector<2x192xf32>
    %518 = vector.extract_strided_slice %511 {offsets = [0, 192], sizes = [2, 64], strides = [1, 1]} : vector<2x256xf32> to vector<2x64xf32>
    %519 = math.tanh %518 : vector<2x64xf32>
    %520 = vector.extract_strided_slice %517 {offsets = [0, 64], sizes = [2, 64], strides = [1, 1]} : vector<2x192xf32> to vector<2x64xf32>
    %521 = arith.mulf %520, %498 : vector<2x64xf32>
    %522 = vector.extract_strided_slice %517 {offsets = [0, 0], sizes = [2, 64], strides = [1, 1]} : vector<2x192xf32> to vector<2x64xf32>
    %523 = arith.mulf %522, %519 : vector<2x64xf32>
    %524 = arith.addf %521, %523 : vector<2x64xf32>
    %525 = vector.extract_strided_slice %517 {offsets = [0, 128], sizes = [2, 64], strides = [1, 1]} : vector<2x192xf32> to vector<2x64xf32>
    %526 = math.tanh %524 : vector<2x64xf32>
    %527 = arith.mulf %525, %526 : vector<2x64xf32>
    %528 = vector.extract_strided_slice %527 {offsets = [0, 0], sizes = [2, 32], strides = [1, 1]} : vector<2x64xf32> to vector<2x32xf32>
    %c6_136 = arith.constant 6 : index
    %c0_137 = arith.constant 0 : index
    %c0_138 = arith.constant 0 : index
    %529 = vector.load %arg12[%c6_136, %c0_137, %c0_138] : memref<8x2x32xf32, #tpu.memory_space<vmem>>, vector<1x2x32xf32>
    %530 = vector.shape_cast %529 : vector<1x2x32xf32> to vector<2x32xf32>
    %531 = vector.shape_cast %528 : vector<2x32xf32> to vector<1x2x32xf32>
    tpu.vector_store %arg12[%c6_136, %c0_137, %c0_138], %531 {strides = array<i32>} : memref<8x2x32xf32, #tpu.memory_space<vmem>>, vector<1x2x32xf32>,
    %532 = vector.extract_strided_slice %527 {offsets = [0, 32], sizes = [2, 32], strides = [1, 1]} : vector<2x64xf32> to vector<2x32xf32>
    %c1_139 = arith.constant 1 : index
    %c0_140 = arith.constant 0 : index
    %c0_141 = arith.constant 0 : index
    %533 = vector.load %arg13[%c1_139, %c0_140, %c0_141] : memref<8x2x32xf32, #tpu.memory_space<vmem>>, vector<1x2x32xf32>
    %534 = vector.shape_cast %533 : vector<1x2x32xf32> to vector<2x32xf32>
    %535 = vector.shape_cast %532 : vector<2x32xf32> to vector<1x2x32xf32>
    tpu.vector_store %arg13[%c1_139, %c0_140, %c0_141], %535 {strides = array<i32>} : memref<8x2x32xf32, #tpu.memory_space<vmem>>, vector<1x2x32xf32>,
    %cst_142 = arith.constant dense<0.000000e+00> : vector<2x256xf32>
    %536 = tpu.matmul %527, %278, %cst_142 {dimension_numbers = #tpu.dot_dimension_numbers<[1], [0], [0], [1], [0, 0, 1, 1], [], []>} : vector<2x64xf32>, vector<64x256xf32>, vector<2x256xf32> -> vector<2x256xf32>
    %537 = arith.addf %351, %536 : vector<2x256xf32>
    %538 = vector.extract_strided_slice %537 {offsets = [0, 0], sizes = [2, 192], strides = [1, 1]} : vector<2x256xf32> to vector<2x192xf32>
    %539 = arith.negf %538 : vector<2x192xf32>
    %540 = math.exp %539 : vector<2x192xf32>
    %cst_143 = arith.constant 1.000000e+00 : f32
    %541 = vector.broadcast %cst_143 : f32 to vector<2x192xf32>
    %542 = arith.addf %541, %540 : vector<2x192xf32>
    %543 = arith.divf %541, %542 : vector<2x192xf32>
    %544 = vector.extract_strided_slice %537 {offsets = [0, 192], sizes = [2, 64], strides = [1, 1]} : vector<2x256xf32> to vector<2x64xf32>
    %545 = math.tanh %544 : vector<2x64xf32>
    %546 = vector.extract_strided_slice %543 {offsets = [0, 64], sizes = [2, 64], strides = [1, 1]} : vector<2x192xf32> to vector<2x64xf32>
    %547 = arith.mulf %546, %524 : vector<2x64xf32>
    %548 = vector.extract_strided_slice %543 {offsets = [0, 0], sizes = [2, 64], strides = [1, 1]} : vector<2x192xf32> to vector<2x64xf32>
    %549 = arith.mulf %548, %545 : vector<2x64xf32>
    %550 = arith.addf %547, %549 : vector<2x64xf32>
    %551 = vector.extract_strided_slice %543 {offsets = [0, 128], sizes = [2, 64], strides = [1, 1]} : vector<2x192xf32> to vector<2x64xf32>
    %552 = math.tanh %550 : vector<2x64xf32>
    %553 = arith.mulf %551, %552 : vector<2x64xf32>
    %554 = vector.extract_strided_slice %553 {offsets = [0, 0], sizes = [2, 32], strides = [1, 1]} : vector<2x64xf32> to vector<2x32xf32>
    %c7_144 = arith.constant 7 : index
    %c0_145 = arith.constant 0 : index
    %c0_146 = arith.constant 0 : index
    %555 = vector.load %arg12[%c7_144, %c0_145, %c0_146] : memref<8x2x32xf32, #tpu.memory_space<vmem>>, vector<1x2x32xf32>
    %556 = vector.shape_cast %555 : vector<1x2x32xf32> to vector<2x32xf32>
    %557 = vector.shape_cast %554 : vector<2x32xf32> to vector<1x2x32xf32>
    tpu.vector_store %arg12[%c7_144, %c0_145, %c0_146], %557 {strides = array<i32>} : memref<8x2x32xf32, #tpu.memory_space<vmem>>, vector<1x2x32xf32>,
    %558 = vector.extract_strided_slice %553 {offsets = [0, 32], sizes = [2, 32], strides = [1, 1]} : vector<2x64xf32> to vector<2x32xf32>
    %c0_147 = arith.constant 0 : index
    %c0_148 = arith.constant 0 : index
    %c0_149 = arith.constant 0 : index
    %559 = vector.load %arg13[%c0_147, %c0_148, %c0_149] : memref<8x2x32xf32, #tpu.memory_space<vmem>>, vector<1x2x32xf32>
    %560 = vector.shape_cast %559 : vector<1x2x32xf32> to vector<2x32xf32>
    %561 = vector.shape_cast %558 : vector<2x32xf32> to vector<1x2x32xf32>
    tpu.vector_store %arg13[%c0_147, %c0_148, %c0_149], %561 {strides = array<i32>} : memref<8x2x32xf32, #tpu.memory_space<vmem>>, vector<1x2x32xf32>,
    %c0_150 = arith.constant 0 : index
    %c0_151 = arith.constant 0 : index
    %562 = vector.load %arg7[%c0_150, %c0_151] : memref<64x128xf32, #tpu.memory_space<vmem>>, vector<64x128xf32>
    %c0_152 = arith.constant 0 : index
    %c0_153 = arith.constant 0 : index
    %c0_154 = arith.constant 0 : index
    %563 = vector.load %arg12[%c0_152, %c0_153, %c0_154] : memref<8x2x32xf32, #tpu.memory_space<vmem>>, vector<8x2x32xf32>
    %564 = vector.shape_cast %563 : vector<8x2x32xf32> to vector<16x32xf32>
    %565 = vector.extract_strided_slice %562 {offsets = [0, 0], sizes = [32, 128], strides = [1, 1]} : vector<64x128xf32> to vector<32x128xf32>
    %cst_155 = arith.constant dense<0.000000e+00> : vector<16x128xf32>
    %566 = tpu.matmul %564, %565, %cst_155 {dimension_numbers = #tpu.dot_dimension_numbers<[1], [0], [0], [1], [0, 0, 1, 1], [], []>} : vector<16x32xf32>, vector<32x128xf32>, vector<16x128xf32> -> vector<16x128xf32>
    %c0_156 = arith.constant 0 : index
    %c0_157 = arith.constant 0 : index
    %c0_158 = arith.constant 0 : index
    %567 = vector.load %arg13[%c0_156, %c0_157, %c0_158] : memref<8x2x32xf32, #tpu.memory_space<vmem>>, vector<8x2x32xf32>
    %568 = vector.shape_cast %567 : vector<8x2x32xf32> to vector<16x32xf32>
    %569 = vector.extract_strided_slice %562 {offsets = [32, 0], sizes = [32, 128], strides = [1, 1]} : vector<64x128xf32> to vector<32x128xf32>
    %cst_159 = arith.constant dense<0.000000e+00> : vector<16x128xf32>
    %570 = tpu.matmul %568, %569, %cst_159 {dimension_numbers = #tpu.dot_dimension_numbers<[1], [0], [0], [1], [0, 0, 1, 1], [], []>} : vector<16x32xf32>, vector<32x128xf32>, vector<16x128xf32> -> vector<16x128xf32>
    %571 = arith.addf %566, %570 : vector<16x128xf32>
    %c0_160 = arith.constant 0 : index
    %c0_161 = arith.constant 0 : index
    %572 = vector.load %arg8[%c0_160, %c0_161] : memref<1x128xf32, #tpu.memory_space<vmem>>, vector<1x128xf32>
    %573 = vector.broadcast %572 : vector<1x128xf32> to vector<16x128xf32>
    %574 = arith.addf %571, %573 : vector<16x128xf32>
    %575 = vector.shape_cast %574 : vector<16x128xf32> to vector<8x2x128xf32>
    %c0_162 = arith.constant 0 : index
    %c0_163 = arith.constant 0 : index
    %c0_164 = arith.constant 0 : index
    %576 = vector.load %arg9[%c0_162, %c0_163, %c0_164] : memref<8x2x128xf32, #tpu.memory_space<vmem>>, vector<8x2x128xf32>
    tpu.vector_store %arg9[%c0_162, %c0_163, %c0_164], %575 {strides = array<i32>} : memref<8x2x128xf32, #tpu.memory_space<vmem>>, vector<8x2x128xf32>,
    return
  }
}

</mosaic_0001>

<bundles_post_ra>
// kernel: slot_classifier_forward.1
= control target key start
LH: loop header
LB: loop body
LE: loop exit
PB: predicated region body
PF: predicated region fallthrough
CT: control target
= control target key end

     0   :  { %14 = vsyncpa [#allocation7], 0  ;;  %s4567_s0 = inlined_call_operand.vmem [shape: f32[8,2,16], index: 0, kind: input, shape index: {}]   ;;  %s4568_s1 = inlined_call_operand.vmem [shape: f32[32,256], index: 1, kind: input, shape index: {}]   ;;  %s4569_s2 = inlined_call_operand.vmem [shape: f32[64,256], index: 2, kind: input, shape index: {}]   ;;  %s4570_s3 = inlined_call_operand.vmem [shape: f32[1,256], index: 3, kind: input, shape index: {}]   ;;  %s4571_s4 = inlined_call_operand.hbm [shape: f32[128,256], index: 4, kind: input, shape index: {}]   ;;  %s4572_s5 = inlined_call_operand.hbm [shape: f32[64,256], index: 5, kind: input, shape index: {}]   ;;  %s4573_s6 = inlined_call_operand.vmem [shape: f32[1,256], index: 6, kind: input, shape index: {}]   ;;  %s4574_s7 = inlined_call_operand.hbm [shape: f32[64,128], index: 7, kind: input, shape index: {}]   ;;  %s4575_s8 = inlined_call_operand.vmem [shape: f32[1,128], index: 8, kind: input, shape index: {}]   ;;  %s4576_s9 = inlined_call_operand.vmem [shape: f32[8,2,128], index: 9, kind: output, shape index: {}]  }
   0x1   :  { %15 = vsyncpa [#allocation9], 0  ;;  %s3699_s30 = smov [#allocation8]   ;;  %s3700_s11 = smov [#allocation6]  }
   0x2   :  { %s41_s10 = sshll.u32 %s3699_s30, 4  ;;  %s29_s12 = sshll.u32 %s3700_s11, 4  ;;  %s42_s10 = int_to_ptr.vmem [resolvable:$true] %s41_s10  ;;  %s30_s12 = int_to_ptr.vmem [resolvable:$true] %s29_s12 }
   0x3   :  { %s3643_s13 = scalar_lea.vmem %s42_s10, 2048  ;;  %p3648_p1 = scmp.lt.s32.totalorder %s42_s10, %s42_s10 }
   0x4   :  { %p3644_p0 = scmp.ne.s32.totalorder %s42_s10, %s3643_s13  ;;  %p3649_p2 = scmp.lt.s32.totalorder %s3643_s13, %s3643_s13 }
   0x6   :  { %p3650_p3 = por %p3649_p2, %p3648_p1 }
   0x8   :  { %p3651_p4 = pnand %p3650_p3, %p3644_p0 }
   0xa   :  { %3654 = shalt.err (!%p3651_p4)
}
   0xb   :  { %s3701_s14 = smov 256   ;;  %s3702_s15 = smov 16  }
   0xc   :  { %47 = dma.hbm_to_vmem [thread:$0]  %s4572_s5, 2048, %s42_s10, [#allocation9], %s3701_s14, %s3701_s14, %s3702_s15  }
   0xd   :  { %s3663_s18 = scalar_lea.vmem %s30_s12, 4096  ;;  %p3668_p6 = scmp.lt.s32.totalorder %s30_s12, %s30_s12 }
   0xe   :  { %p3664_p5 = scmp.ne.s32.totalorder %s30_s12, %s3663_s18  ;;  %p3669_p7 = scmp.lt.s32.totalorder %s3663_s18, %s3663_s18 }
  0x10   :  { %p3670_p8 = por %p3669_p7, %p3668_p6 }
  0x12   :  { %p3671_p9 = pnand %p3670_p8, %p3664_p5 }
  0x14   :  { %3674 = shalt.err (!%p3671_p9)
}
  0x15   :  { %35 = dma.hbm_to_vmem [thread:$0]  %s4571_s4, 4096, %s30_s12, [#allocation7], %s3701_s14, %s3701_s14, %s3702_s15  }
  0x16   :  { %s3703_s21 = smov [#allocation10]  }
  0x17   :  { %s55_s22 = sshll.u32 %s3703_s21, 4  ;;  %s56_s22 = int_to_ptr.vmem [resolvable:$true] %s55_s22 }
  0x18   :  { %s3683_s23 = scalar_lea.vmem %s56_s22, 1024  ;;  %p3688_p11 = scmp.lt.s32.totalorder %s56_s22, %s56_s22 }
  0x19   :  { %p3684_p10 = scmp.ne.s32.totalorder %s56_s22, %s3683_s23  ;;  %p3689_p12 = scmp.lt.s32.totalorder %s3683_s23, %s3683_s23 }
  0x1b   :  { %p3690_p13 = por %p3689_p12, %p3688_p11 }
  0x1d   :  { %p3691_p0 = pnand %p3690_p13, %p3684_p10 }
  0x1f   :  { %3694 = shalt.err (!%p3691_p0)
}
  0x20   :  { %s3704_s5 = smov 128   ;;  %s3705_s24 = smov 8  }
  0x21   :  { %61 = dma.hbm_to_vmem [thread:$0]  %s4574_s7, 1024, %s56_s22, [#allocation9], %s3704_s5, %s3704_s5, %s3705_s24  }
  0x22   :  { %3695 = dma.done.wait [#allocation7], 4096  }
  0x23   :  { %3696 = vsyncadd [#allocation7], 4294963200 }
  0x24   :  { %3697 = dma.done.wait [#allocation9], 3072  }
  0x25   :  { %3698 = vsyncadd [#allocation9], 4294964224  ;;  %v3706_v0 = vmov 0.0   ;;  %v3707_v1 = vmov 1983009808   ;;  %v119_v3 = vlaneseq  ;;  %v76_v6 = vld [vmem:[%s4568_s1 + $0x18] sm:$0xff] }
  0x26   :  { %217 = vmatprep.mubr.f32.mxu0 %v3706_v0  ;;  %342 = vmatprep.mubr.f32.mxu1 %v3706_v0  ;;  %v117_v2 = vunpack.c.l.s4 %v3707_v1  ;;  %v75_v7 = vld [vmem:[%s4568_s1 + $0x10] sm:$0xff]  ;;  %v80_v8 = vld [vmem:[%s4568_s1 + $0x38] sm:$0xff]  ;;  %v74_v9 = vld [vmem:[%s4568_s1 + $0x8] sm:$0xff]  ;;  %vm148_vm0 = vcmask 130048   ;;  %vm552_vm1 = vcmask 254976   ;;  %vm437_vm2 = vcmask 523264  }
  0x27   :  { %v3771_v5 = vshrl.u32 %v119_v3, 7  ;;  %181 = vmatprep.subr.mxu0 %v76_v6  ;;  %306 = vmatprep.subr.mxu1 %v80_v8  ;;  %v79_v10 = vld [vmem:[%s4568_s1 + $0x30] sm:$0xff]  ;;  %v73_v11 = vld [vmem:[%s4568_s1] sm:$0xff]  ;;  %v78_v12 = vld [vmem:[%s4568_s1 + $0x28] sm:$0xff]  ;;  %vm1569_vm3 = vcmask 261120   ;;  %s3709_s17 = smov 96  }
  0x28   :  { %v118_v4 = vunpack.c.0.s8 %v117_v2  ;;  %182 = vmatpush1.msra.mxu0 %v75_v7  ;;  %307 = vmatpush1.msra.mxu1 %v79_v10  ;;  %v77_v13 = vld [vmem:[%s4568_s1 + $0x20] sm:$0xff]  ;;  %v3800_v14 = vld [vmem:[%s4569_s2 + $0x78] sm:$0xff]  ;;  %v102_v22 = vld [vmem:[%s4567_s0 + $0x8] sm:$0x3] }
  0x29   :  { %183 = vmatprep.subr.mxu0 %v74_v9  ;;  %308 = vmatprep.subr.mxu1 %v78_v12  ;;  %v98_v16 = vld [vmem:[%s4567_s0] sm:$0x3]  ;;  %v99_v17 = vld [vmem:[%s4567_s0 + $0x2] sm:$0x3]  ;;  %v100_v18 = vld [vmem:[%s4567_s0 + $0x4] sm:$0x3] }
  0x2a   :  { %v3803_v15 = vsub.s32 %v118_v4, %v3771_v5  ;;  %184 = vmatpush1.msra.mxu0 %v73_v11  ;;  %309 = vmatpush1.msra.mxu1 %v77_v13  ;;  %v101_v19 = vld [vmem:[%s4567_s0 + $0x6] sm:$0x3]  ;;  %v114_v20 = vcombine.low %v98_v16, %v99_v17  ;;  %v103_v24 = vld [vmem:[%s4567_s0 + $0xa] sm:$0x3]  ;;  %v104_v25 = vld [vmem:[%s4567_s0 + $0xc] sm:$0x3] }
  0x2b   :  { %457 = vmatprep.subr.mxu0 %v3800_v14  ;;  %v115_v21 = vcombine.low %v100_v18, %v101_v19  ;;  %585 = vmatprep.subr.mxu1 %v3800_v14  ;;  %v105_v26 = vld [vmem:[%s4567_s0 + $0xe] sm:$0x3]  ;;  %v131_v28 = vcombine.low %v102_v22, %v103_v24  ;;  %v3836_v31 = vld [vmem:[%s4569_s2 + $0x70] sm:$0xff]  ;;  %v3850_v35 = vld [vmem:[%s4569_s2 + $0x60] sm:$0xff]  ;;  %v407_v49 = vsub.s32 0, %v3771_v5  ;;  %v411_v50 = vsub.s32 1, %v3771_v5 }
  0x2c   :  { %v122_v23 = vrot.slane %v114_v20, %v3803_v15  ;;  %v132_v29 = vcombine.low %v104_v25, %v105_v26  ;;  %v3843_v34 = vld [vmem:[%s4569_s2 + $0x68] sm:$0xff]  ;;  %v3857_v37 = vld [vmem:[%s4569_s2 + $0x58] sm:$0xff]  ;;  %v3864_v38 = vld [vmem:[%s4569_s2 + $0x50] sm:$0xff] }
  0x2d   :  { %v129_v27 = vrot.slane %v115_v21, %v3803_v15  ;;  %v139_v32 = vrot.slane %v131_v28, %v3803_v15  ;;  %v3870_v39 = vld [vmem:[%s4569_s2 + $0x48] sm:$0xff]  ;;  %v3878_v40 = vld [vmem:[%s4569_s2 + $0x40] sm:$0xff]  ;;  %v3885_v41 = vld [vmem:[%s4569_s2 + $0x38] sm:$0xff] }
  0x2e   :  { %v146_v33 = vrot.slane %v132_v29, %v3803_v15  ;;  %v3891_v42 = vld [vmem:[%s4569_s2 + $0x30] sm:$0xff]  ;;  %v3898_v43 = vld [vmem:[%s4569_s2 + $0x28] sm:$0xff]  ;;  %v3905_v44 = vld [vmem:[%s4569_s2 + $0x20] sm:$0xff] }
  0x2f   :  { %v130_v30 = vcombine.low %v122_v23, %v129_v27  ;;  %v3912_v45 = vld [vmem:[%s4569_s2 + $0x18] sm:$0xff]  ;;  %v3919_v46 = vld [vmem:[%s4569_s2 + $0x10] sm:$0xff]  ;;  %v3926_v47 = vld [vmem:[%s4569_s2 + $0x8] sm:$0xff] }
  0x30   :  { %v147_v36 = vcombine.low %v139_v32, %v146_v33  ;;  %v3933_v48 = vld [vmem:[%s4569_s2] sm:$0xff] }
  0x31   :  { %3411 = vmatmul.mubr.msk.f32.vlgmr.msra.gmra.mxu0 %vm148_vm0, %v130_v30  ;;  %3413 = vmatmul.mubr.msk.f32.vlgmr.msra.gmra.mxu1 %vm148_vm0, %v130_v30  ;;  %v97_v51 = vld [vmem:[%s4570_s3] sm:$0x3]  ;;  %s3708_s3 = smov 64  }
  0x32   :  { %458 = vmatpush1.msra.mxu0 %v3836_v31  ;;  %223 = vmatprep.mubr.f32.mxu0 %v3706_v0  ;;  %v408_v54 = vrot.slane %v97_v51, %v407_v49  ;;  %v412_v55 = vrot.slane %v97_v51, %v411_v50 }
  0x33   :  { %459 = vmatprep.subr.mxu0 %v3843_v34  ;;  %348 = vmatprep.mubr.f32.mxu1 %v3706_v0 }
  0x34   :  { %460 = vmatpush1.msra.mxu0 %v3850_v35  ;;  %586 = vmatpush1.msra.mxu1 %v3836_v31  ;;  %v413_v3 = vcombine.low %v408_v54, %v412_v55 }
  0x35   :  { %461 = vmatprep.subr.mxu0 %v3857_v37  ;;  %3412 = vmatmul.mubr.msk.f32.gmra.mxu0 %vm148_vm0, %v147_v36 }
  0x36   :  { %3414 = vmatmul.mubr.msk.f32.gmra.mxu1 %vm148_vm0, %v147_v36  ;;  %462 = vmatpush1.msra.mxu0 %v3864_v38  ;;  %v420_v17 = vrot.slane %v413_v3, %v3803_v15 }
  0x37   :  { %463 = vmatprep.subr.mxu0 %v3870_v39  ;;  %505 = vmatprep.mubr.f32.mxu0 %v3706_v0 }
  0x38   :  { %464 = vmatpush1.msra.mxu0 %v3878_v40  ;;  %587 = vmatprep.subr.mxu1 %v3843_v34 }
  0x39   :  { %465 = vmatprep.subr.mxu0 %v3885_v41  ;;  %588 = vmatpush1.msra.mxu1 %v3850_v35 }
  0x3a   :  { %466 = vmatpush1.msra.mxu0 %v3891_v42  ;;  %589 = vmatprep.subr.mxu1 %v3857_v37 }
  0x3b   :  { %467 = vmatprep.subr.mxu0 %v3898_v43  ;;  %590 = vmatpush1.msra.mxu1 %v3864_v38 }
  0x3c   :  { %468 = vmatpush1.msra.mxu0 %v3905_v44  ;;  %591 = vmatprep.subr.mxu1 %v3870_v39 }
  0x3d   :  { %469 = vmatprep.subr.mxu0 %v3912_v45  ;;  %592 = vmatpush1.msra.mxu1 %v3878_v40 }
  0x3e   :  { %470 = vmatpush1.msra.mxu0 %v3919_v46  ;;  %593 = vmatprep.subr.mxu1 %v3885_v41 }
  0x3f   :  { %471 = vmatprep.subr.mxu0 %v3926_v47  ;;  %594 = vmatpush1.msra.mxu1 %v3891_v42 }
  0x40   :  { %472 = vmatpush1.msra.mxu0 %v3933_v48  ;;  %595 = vmatprep.subr.mxu1 %v3898_v43 }
  0x41   :  { %506 = vmatmul.mubr.f32.vlgmr.msra.gmra.mxu0 %v3706_v0  ;;  %596 = vmatpush1.msra.mxu1 %v3905_v44 }
  0x42   :  { %597 = vmatprep.subr.mxu1 %v3912_v45  ;;  %633 = vmatprep.mubr.f32.mxu1 %v3706_v0 }
  0x43   :  { %598 = vmatpush1.msra.mxu1 %v3919_v46  ;;  %713 = vmatprep.subr.mxu0 %v3800_v14 }
  0x44   :  { %599 = vmatprep.subr.mxu1 %v3926_v47  ;;  %714 = vmatpush1.msra.mxu0 %v3836_v31 }
  0x45   :  { %600 = vmatpush1.msra.mxu1 %v3933_v48  ;;  %715 = vmatprep.subr.mxu0 %v3843_v34 }
  0x46   :  { %716 = vmatpush1.msra.mxu0 %v3850_v35  ;;  %761 = vmatprep.mubr.f32.mxu0 %v3706_v0 }
  0x47   :  { %717 = vmatprep.subr.mxu0 %v3857_v37  ;;  %841 = vmatprep.subr.mxu1 %v3800_v14 }
  0x48   :  { %718 = vmatpush1.msra.mxu0 %v3864_v38 }
  0x49   :  { %719 = vmatprep.subr.mxu0 %v3870_v39 }
  0x4a   :  { %720 = vmatpush1.msra.mxu0 %v3878_v40 }
  0x4b   :  { %721 = vmatprep.subr.mxu0 %v3885_v41 }
  0x4c   :  { %722 = vmatpush1.msra.mxu0 %v3891_v42 }
  0x4d   :  { %723 = vmatprep.subr.mxu0 %v3898_v43 }
  0x4e   :  { %724 = vmatpush1.msra.mxu0 %v3905_v44 }
  0x4f   :  { %725 = vmatprep.subr.mxu0 %v3912_v45 }
  0x50   :  { %726 = vmatpush1.msra.mxu0 %v3919_v46 }
  0x51   :  { %727 = vmatprep.subr.mxu0 %v3926_v47 }
  0x52   :  { %728 = vmatpush1.msra.mxu0 %v3933_v48 }
  0x53   :  { %969 = vmatprep.subr.mxu0 %v3800_v14 }
  0xf1   :  { %v219_v52 = vpop.f32.mrf.mxu0  ;;  %v344_v53 = vpop.f32.mrf.mxu1 }
  0xf3   :  { %v221_v56 = vpop.f32.mrf.mxu0  ;;  %v346_v57 = vpop.f32.mrf.mxu1 }
  0xf4   :  { %v234_v58 = vcombine.low %v219_v52, %v221_v56  ;;  %v235_v59 = vcombine.high %v219_v52, %v221_v56  ;;  %v359_v60 = vcombine.low %v344_v53, %v346_v57  ;;  %v360_v61 = vcombine.high %v344_v53, %v346_v57 }
  0xf5   :  { %v225_v62 = vpop.f32.mrf.mxu0 }
  0xf6   :  { %v367_v63 = vrot.slane %v359_v60, %v3803_v15  ;;  %v374_v1 = vrot.slane %v360_v61, %v3803_v15  ;;  %v350_v2 = vpop.f32.mrf.mxu1  ;;  %v242_v6 = vrot.slane %v234_v58, %v3803_v15  ;;  %v249_v7 = vrot.slane %v235_v59, %v3803_v15 }
  0xf7   :  { %v227_v4 = vpop.f32.mrf.mxu0 }
  0xf8   :  { %v375_v8 = vcombine.high %v367_v63, %v367_v63  ;;  %v376_v9 = vcombine.high %v374_v1, %v374_v1  ;;  %v352_v10 = vpop.f32.mrf.mxu1  ;;  %v252_v11 = vcombine.low %v225_v62, %v227_v4  ;;  %v253_v12 = vcombine.high %v225_v62, %v227_v4 }
  0xf9   :  { %v377_v13 = vcombine.low %v350_v2, %v352_v10  ;;  %v378_v16 = vcombine.high %v350_v2, %v352_v10  ;;  %v250_v22 = vcombine.high %v242_v6, %v242_v6  ;;  %v251_v23 = vcombine.high %v249_v7, %v249_v7 }
  0xfa   :  { %v260_v18 = vrot.slane %v252_v11, %v3803_v15  ;;  %v267_v19 = vrot.slane %v253_v12, %v3803_v15 }
  0xfb   :  { %v385_v20 = vrot.slane %v377_v13, %v3803_v15  ;;  %v392_v21 = vrot.slane %v378_v16, %v3803_v15 }
  0xfc   :  { %v268_v24 = vcombine.high %v260_v18, %v260_v18  ;;  %v269_v25 = vcombine.high %v267_v19, %v267_v19  ;;  %v429_v26 = vadd.f32 %v376_v9, %v260_v18  ;;  %v433_v27 = vadd.f32 %v375_v8, %v267_v19 }
  0xfd   :  { %v393_v28 = vcombine.high %v385_v20, %v385_v20  ;;  %v394_v29 = vcombine.high %v392_v21, %v392_v21  ;;  %v423_v30 = vadd.f32 %v392_v21, %v250_v22  ;;  %v427_v32 = vadd.f32 %v385_v20, %v251_v23 }
  0xfe   :  { %v431_v33 = vadd.f32 %v374_v1, %v268_v24  ;;  %v435_v36 = vadd.f32 %v367_v63, %v269_v25  ;;  %v3986_v51 = vadd.f32 %v429_v26, %v420_v17  ;;  %v3988_v52 = vadd.f32 %v433_v27, %v420_v17 }
  0xff   :  { %v425_v53 = vadd.f32 %v393_v28, %v249_v7  ;;  %v424_v54 = vadd.f32 %v423_v30, %v420_v17  ;;  %v3990_v55 = vadd.f32 %v427_v32, %v420_v17  ;;  %v403_v59 = vadd.f32 %v394_v29, %v242_v6 }
 0x100   :  { %v3992_v57 = vadd.f32 %v431_v33, %v420_v17  ;;  %v3994_v58 = vadd.f32 %v435_v36, %v420_v17 }
 0x101   :  { %v507_v56 = vpop.f32.mrf.mxu0  ;;  %v3996_v60 = vadd.f32 %v425_v53, %v420_v17  ;;  %v422_v1 = vadd.f32 %v420_v17, %v403_v59 }
 0x103   :  { %v509_v61 = vpop.f32.mrf.mxu0 }
 0x104   :  { %v514_v62 = vcombine.low %v507_v56, %v509_v61 }
 0x106   :  { %v521_v63 = vrot.slane %v514_v62, %v3803_v15 }
 0x108   :  { %v523_v2 = vadd.f32 %v521_v63, %v422_v1 }
 0x10a   :  { %531 = vrot.lane.b32.xlu0 %v523_v2, %s3708_s3  ;;  %v3415_v3 = vmul.f32 -1.442695, %v523_v2 }
 0x10c   :  { %3507 = vpow2.f32 %v3415_v3 }
 0x119   :  { %v3508_v4 = vpop.eup %3507 }
 0x11a   :  { %v527_v7 = vadd.f32 1.0, %v3508_v4 }
 0x11c   :  { %3509 = vrcp.f32 %v527_v7 }
 0x129   :  { %v3510_v6 = vpop.eup %3509 }
 0x12a   :  { %v536_v12 = vmul.f32 0.0, %v3510_v6  ;;  %v545_v18 = vrot.slane %v3510_v6, 2 }
 0x17c   :  { %v532_v8 = vpop.permute.xlu0 %531 }
 0x17d   :  { %v533_v9 = vrot.slane %v532_v8, 2 }
 0x17f   :  { %3511 = vtanh.f32 %v533_v9 }
 0x18c   :  { %v3512_v10 = vpop.eup %3511 }
 0x18d   :  { %v537_v11 = vmul.f32 %v3512_v10, %v3510_v6 }
 0x18f   :  { %539 = vrot.lane.b32.xlu0 %v537_v11, %s3708_s3 }
 0x201   :  { %v540_v13 = vpop.permute.xlu0 %539 }
 0x202   :  { %v542_v16 = vadd.f32 %v540_v13, %v536_v12 }
 0x204   :  { %3513 = vtanh.f32 %v542_v16 }
 0x211   :  { %v3514_v17 = vpop.eup %3513 }
 0x212   :  { %548 = vrot.lane.b32.xlu1 %v3514_v17, %s3708_s3 }
 0x284   :  { %v549_v19 = vpop.permute.xlu1 %548 }
 0x285   :  { %v4002_v20 = vmul.f32 %v549_v19, %v545_v18 }
 0x287   :  { %553 = vst.msk [vmem:[#allocation2] sm:$0x3] %vm552_vm1, %v4002_v20  ;;  %3416 = vmatmul.mubr.msk.f32.vlgmr.msra.gmra.mxu1 %vm437_vm2, %v4002_v20 }
 0x288   :  { %842 = vmatpush1.msra.mxu1 %v3836_v31  ;;  %889 = vmatprep.mubr.f32.mxu1 %v3706_v0 }
 0x289   :  { %843 = vmatprep.subr.mxu1 %v3843_v34 }
 0x28a   :  { %844 = vmatpush1.msra.mxu1 %v3850_v35 }
 0x28b   :  { %845 = vmatprep.subr.mxu1 %v3857_v37 }
 0x28c   :  { %846 = vmatpush1.msra.mxu1 %v3864_v38 }
 0x28d   :  { %847 = vmatprep.subr.mxu1 %v3870_v39 }
 0x28e   :  { %848 = vmatpush1.msra.mxu1 %v3878_v40 }
 0x28f   :  { %849 = vmatprep.subr.mxu1 %v3885_v41 }
 0x290   :  { %850 = vmatpush1.msra.mxu1 %v3891_v42 }
 0x291   :  { %851 = vmatprep.subr.mxu1 %v3898_v43 }
 0x292   :  { %852 = vmatpush1.msra.mxu1 %v3905_v44 }
 0x293   :  { %853 = vmatprep.subr.mxu1 %v3912_v45 }
 0x294   :  { %854 = vmatpush1.msra.mxu1 %v3919_v46 }
 0x295   :  { %855 = vmatprep.subr.mxu1 %v3926_v47 }
 0x296   :  { %856 = vmatpush1.msra.mxu1 %v3933_v48 }
 0x297   :  { %1097 = vmatprep.subr.mxu1 %v3800_v14 }
 0x347   :  { %v635_v21 = vpop.f32.mrf.mxu1 }
 0x349   :  { %v637_v22 = vpop.f32.mrf.mxu1 }
 0x34a   :  { %v642_v23 = vcombine.low %v635_v21, %v637_v22 }
 0x34c   :  { %v649_v24 = vrot.slane %v642_v23, %v3803_v15 }
 0x34e   :  { %v651_v25 = vadd.f32 %v649_v24, %v424_v54 }
 0x350   :  { %659 = vrot.lane.b32.xlu1 %v651_v25, %s3708_s3  ;;  %v3417_v26 = vmul.f32 -1.442695, %v651_v25 }
 0x352   :  { %3515 = vpow2.f32 %v3417_v26 }
 0x35f   :  { %v3516_v27 = vpop.eup %3515 }
 0x360   :  { %v655_v28 = vadd.f32 1.0, %v3516_v27 }
 0x362   :  { %3517 = vrcp.f32 %v655_v28 }
 0x36f   :  { %v3518_v32 = vpop.eup %3517 }
 0x370   :  { %v664_v53 = vmul.f32 %v3518_v32, %v542_v16  ;;  %v673_v61 = vrot.slane %v3518_v32, 2 }
 0x3c2   :  { %v660_v29 = vpop.permute.xlu1 %659 }
 0x3c3   :  { %v661_v30 = vrot.slane %v660_v29, 2 }
 0x3c5   :  { %3519 = vtanh.f32 %v661_v30 }
 0x3d2   :  { %v3520_v33 = vpop.eup %3519 }
 0x3d3   :  { %v665_v36 = vmul.f32 %v3520_v33, %v3518_v32 }
 0x3d5   :  { %667 = vrot.lane.b32.xlu0 %v665_v36, %s3708_s3 }
 0x447   :  { %v668_v56 = vpop.permute.xlu0 %667 }
 0x448   :  { %v670_v59 = vadd.f32 %v668_v56, %v664_v53 }
 0x44a   :  { %3521 = vtanh.f32 %v670_v59 }
 0x457   :  { %v3522_v54 = vpop.eup %3521 }
 0x458   :  { %676 = vrot.lane.b32.xlu1 %v3522_v54, %s3708_s3 }
 0x4ca   :  { %v677_v62 = vpop.permute.xlu1 %676 }
 0x4cb   :  { %v4029_v63 = vmul.f32 %v677_v62, %v673_v61 }
 0x4cd   :  { %681 = vst.msk [vmem:[#allocation2 + $0x2] sm:$0x3] %vm552_vm1, %v4029_v63  ;;  %3418 = vmatmul.mubr.msk.f32.vlgmr.msra.gmra.mxu0 %vm437_vm2, %v4029_v63 }
 0x4ce   :  { %970 = vmatpush1.msra.mxu0 %v3836_v31  ;;  %1017 = vmatprep.mubr.f32.mxu0 %v3706_v0 }
 0x4cf   :  { %971 = vmatprep.subr.mxu0 %v3843_v34 }
 0x4d0   :  { %972 = vmatpush1.msra.mxu0 %v3850_v35 }
 0x4d1   :  { %973 = vmatprep.subr.mxu0 %v3857_v37 }
 0x4d2   :  { %974 = vmatpush1.msra.mxu0 %v3864_v38 }
 0x4d3   :  { %975 = vmatprep.subr.mxu0 %v3870_v39 }
 0x4d4   :  { %976 = vmatpush1.msra.mxu0 %v3878_v40 }
 0x4d5   :  { %977 = vmatprep.subr.mxu0 %v3885_v41 }
 0x4d6   :  { %978 = vmatpush1.msra.mxu0 %v3891_v42 }
 0x4d7   :  { %979 = vmatprep.subr.mxu0 %v3898_v43 }
 0x4d8   :  { %980 = vmatpush1.msra.mxu0 %v3905_v44 }
 0x4d9   :  { %981 = vmatprep.subr.mxu0 %v3912_v45 }
 0x4da   :  { %982 = vmatpush1.msra.mxu0 %v3919_v46 }
 0x4db   :  { %983 = vmatprep.subr.mxu0 %v3926_v47 }
 0x4dc   :  { %984 = vmatpush1.msra.mxu0 %v3933_v48 }
 0x4dd   :  { %1225 = vmatprep.subr.mxu0 %v3800_v14 }
 0x58d   :  { %v763_v1 = vpop.f32.mrf.mxu0 }
 0x58f   :  { %v765_v2 = vpop.f32.mrf.mxu0 }
 0x590   :  { %v770_v3 = vcombine.low %v763_v1, %v765_v2 }
 0x592   :  { %v777_v4 = vrot.slane %v770_v3, %v3803_v15 }
 0x594   :  { %v779_v7 = vadd.f32 %v777_v4, %v3996_v60 }
 0x596   :  { %787 = vrot.lane.b32.xlu0 %v779_v7, %s3708_s3  ;;  %v3419_v8 = vmul.f32 -1.442695, %v779_v7 }
 0x598   :  { %3523 = vpow2.f32 %v3419_v8 }
 0x5a5   :  { %v3524_v9 = vpop.eup %3523 }
 0x5a6   :  { %v783_v6 = vadd.f32 1.0, %v3524_v9 }
 0x5a8   :  { %3525 = vrcp.f32 %v783_v6 }
 0x5b5   :  { %v3526_v12 = vpop.eup %3525 }
 0x5b6   :  { %v792_v17 = vmul.f32 %v3526_v12, %v670_v59  ;;  %v801_v21 = vrot.slane %v3526_v12, 2 }
 0x608   :  { %v788_v10 = vpop.permute.xlu0 %787 }
 0x609   :  { %v789_v11 = vrot.slane %v788_v10, 2 }
 0x60b   :  { %3527 = vtanh.f32 %v789_v11 }
 0x618   :  { %v3528_v13 = vpop.eup %3527 }
 0x619   :  { %v793_v16 = vmul.f32 %v3528_v13, %v3526_v12 }
 0x61b   :  { %795 = vrot.lane.b32.xlu1 %v793_v16, %s3708_s3 }
 0x68d   :  { %v796_v18 = vpop.permute.xlu1 %795 }
 0x68e   :  { %v798_v19 = vadd.f32 %v796_v18, %v792_v17 }
 0x690   :  { %3529 = vtanh.f32 %v798_v19 }
 0x69d   :  { %v3530_v60 = vpop.eup %3529 }
 0x69e   :  { %804 = vrot.lane.b32.xlu0 %v3530_v60, %s3708_s3 }
 0x710   :  { %v805_v22 = vpop.permute.xlu0 %804 }
 0x711   :  { %v4057_v23 = vmul.f32 %v805_v22, %v801_v21 }
 0x713   :  { %809 = vst.msk [vmem:[#allocation2 + $0x4] sm:$0x3] %vm552_vm1, %v4057_v23  ;;  %3420 = vmatmul.mubr.msk.f32.vlgmr.msra.gmra.mxu1 %vm437_vm2, %v4057_v23 }
 0x714   :  { %1098 = vmatpush1.msra.mxu1 %v3836_v31  ;;  %1145 = vmatprep.mubr.f32.mxu1 %v3706_v0 }
 0x715   :  { %1099 = vmatprep.subr.mxu1 %v3843_v34 }
 0x716   :  { %1100 = vmatpush1.msra.mxu1 %v3850_v35 }
 0x717   :  { %1101 = vmatprep.subr.mxu1 %v3857_v37 }
 0x718   :  { %1102 = vmatpush1.msra.mxu1 %v3864_v38 }
 0x719   :  { %1103 = vmatprep.subr.mxu1 %v3870_v39 }
 0x71a   :  { %1104 = vmatpush1.msra.mxu1 %v3878_v40 }
 0x71b   :  { %1105 = vmatprep.subr.mxu1 %v3885_v41 }
 0x71c   :  { %1106 = vmatpush1.msra.mxu1 %v3891_v42 }
 0x71d   :  { %1107 = vmatprep.subr.mxu1 %v3898_v43 }
 0x71e   :  { %1108 = vmatpush1.msra.mxu1 %v3905_v44 }
 0x71f   :  { %1109 = vmatprep.subr.mxu1 %v3912_v45 }
 0x720   :  { %1110 = vmatpush1.msra.mxu1 %v3919_v46 }
 0x721   :  { %1111 = vmatprep.subr.mxu1 %v3926_v47 }
 0x722   :  { %1112 = vmatpush1.msra.mxu1 %v3933_v48 }
 0x723   :  { %1353 = vmatprep.subr.mxu1 %v3800_v14 }
 0x7d3   :  { %v891_v24 = vpop.f32.mrf.mxu1 }
 0x7d5   :  { %v893_v25 = vpop.f32.mrf.mxu1 }
 0x7d6   :  { %v898_v26 = vcombine.low %v891_v24, %v893_v25 }
 0x7d8   :  { %v905_v27 = vrot.slane %v898_v26, %v3803_v15 }
 0x7da   :  { %v907_v28 = vadd.f32 %v905_v27, %v3990_v55 }
 0x7dc   :  { %915 = vrot.lane.b32.xlu1 %v907_v28, %s3708_s3  ;;  %v3421_v29 = vmul.f32 -1.442695, %v907_v28 }
 0x7de   :  { %3531 = vpow2.f32 %v3421_v29 }
 0x7eb   :  { %v3532_v30 = vpop.eup %3531 }
 0x7ec   :  { %v911_v32 = vadd.f32 1.0, %v3532_v30 }
 0x7ee   :  { %3533 = vrcp.f32 %v911_v32 }
 0x7fb   :  { %v3534_v53 = vpop.eup %3533 }
 0x7fc   :  { %v920_v59 = vmul.f32 %v3534_v53, %v798_v19  ;;  %v929_v62 = vrot.slane %v3534_v53, 2 }
 0x84e   :  { %v916_v33 = vpop.permute.xlu1 %915 }
 0x84f   :  { %v917_v36 = vrot.slane %v916_v33, 2 }
 0x851   :  { %3535 = vtanh.f32 %v917_v36 }
 0x85e   :  { %v3536_v56 = vpop.eup %3535 }
 0x85f   :  { %v921_v14 = vmul.f32 %v3536_v56, %v3534_v53 }
 0x861   :  { %923 = vrot.lane.b32.xlu0 %v921_v14, %s3708_s3 }
 0x8d3   :  { %v924_v54 = vpop.permute.xlu0 %923 }
 0x8d4   :  { %v926_v61 = vadd.f32 %v924_v54, %v920_v59 }
 0x8d6   :  { %3537 = vtanh.f32 %v926_v61 }
 0x8e3   :  { %v3538_v55 = vpop.eup %3537 }
 0x8e4   :  { %932 = vrot.lane.b32.xlu1 %v3538_v55, %s3708_s3 }
 0x956   :  { %v933_v1 = vpop.permute.xlu1 %932 }
 0x957   :  { %v4085_v2 = vmul.f32 %v933_v1, %v929_v62 }
 0x959   :  { %937 = vst.msk [vmem:[#allocation2 + $0x6] sm:$0x3] %vm552_vm1, %v4085_v2  ;;  %3422 = vmatmul.mubr.msk.f32.vlgmr.msra.gmra.mxu0 %vm437_vm2, %v4085_v2 }
 0x95a   :  { %1226 = vmatpush1.msra.mxu0 %v3836_v31  ;;  %1273 = vmatprep.mubr.f32.mxu0 %v3706_v0 }
 0x95b   :  { %1227 = vmatprep.subr.mxu0 %v3843_v34 }
 0x95c   :  { %1228 = vmatpush1.msra.mxu0 %v3850_v35 }
 0x95d   :  { %1229 = vmatprep.subr.mxu0 %v3857_v37 }
 0x95e   :  { %1230 = vmatpush1.msra.mxu0 %v3864_v38 }
 0x95f   :  { %1231 = vmatprep.subr.mxu0 %v3870_v39 }
 0x960   :  { %1232 = vmatpush1.msra.mxu0 %v3878_v40 }
 0x961   :  { %1233 = vmatprep.subr.mxu0 %v3885_v41 }
 0x962   :  { %1234 = vmatpush1.msra.mxu0 %v3891_v42 }
 0x963   :  { %1235 = vmatprep.subr.mxu0 %v3898_v43 }
 0x964   :  { %1236 = vmatpush1.msra.mxu0 %v3905_v44 }
 0x965   :  { %1237 = vmatprep.subr.mxu0 %v3912_v45 }
 0x966   :  { %1238 = vmatpush1.msra.mxu0 %v3919_v46 }
 0x967   :  { %1239 = vmatprep.subr.mxu0 %v3926_v47 }
 0x968   :  { %1240 = vmatpush1.msra.mxu0 %v3933_v48 }
 0xa19   :  { %v1019_v3 = vpop.f32.mrf.mxu0 }
 0xa1b   :  { %v1021_v4 = vpop.f32.mrf.mxu0 }
 0xa1c   :  { %v1026_v7 = vcombine.low %v1019_v3, %v1021_v4 }
 0xa1e   :  { %v1033_v8 = vrot.slane %v1026_v7, %v3803_v15 }
 0xa20   :  { %v1035_v9 = vadd.f32 %v1033_v8, %v3986_v51 }
 0xa22   :  { %1043 = vrot.lane.b32.xlu0 %v1035_v9, %s3708_s3  ;;  %v3423_v6 = vmul.f32 -1.442695, %v1035_v9  ;;  %v1514_v9 = vld [vmem:[#allocation2 + $0x6] sm:$0x3] }
 0xa24   :  { %3539 = vpow2.f32 %v3423_v6 }
 0xa31   :  { %v3540_v10 = vpop.eup %3539 }
 0xa32   :  { %v1039_v11 = vadd.f32 1.0, %v3540_v10 }
 0xa34   :  { %3541 = vrcp.f32 %v1039_v11  ;;  %v1512_v11 = vld [vmem:[#allocation2 + $0x2] sm:$0x3] }
 0xa41   :  { %v3542_v16 = vpop.eup %3541 }
 0xa42   :  { %v1048_v19 = vmul.f32 %v3542_v16, %v926_v61  ;;  %v1057_v22 = vrot.slane %v3542_v16, 2 }
 0xa94   :  { %v1044_v12 = vpop.permute.xlu0 %1043 }
 0xa95   :  { %v1045_v13 = vrot.slane %v1044_v12, 2  ;;  %v1513_v12 = vld [vmem:[#allocation2 + $0x4] sm:$0x3] }
 0xa97   :  { %3543 = vtanh.f32 %v1045_v13 }
 0xaa4   :  { %v3544_v17 = vpop.eup %3543 }
 0xaa5   :  { %v1049_v18 = vmul.f32 %v3544_v17, %v3542_v16  ;;  %v1468_v16 = vld [vmem:[#allocation6 + $0x30] sm:$0xff]  ;;  %v1660_v17 = vcombine.low %v1513_v12, %v1514_v9  ;;  %v1475_v9 = vld [vmem:[#allocation6 + $0x68] sm:$0xff] }
 0xaa7   :  { %1051 = vrot.lane.b32.xlu1 %v1049_v18, %s3708_s3  ;;  %v1467_v18 = vld [vmem:[#allocation6 + $0x28] sm:$0xff] }
 0xb19   :  { %v1052_v60 = vpop.permute.xlu1 %1051 }
 0xb1a   :  { %v1054_v21 = vadd.f32 %v1052_v60, %v1048_v19  ;;  %v1511_v19 = vld [vmem:[#allocation2] sm:$0x3] }
 0xb1b   :  { %v1466_v60 = vld [vmem:[#allocation6 + $0x20] sm:$0xff] }
 0xb1c   :  { %3545 = vtanh.f32 %v1054_v21 }
 0xb29   :  { %v3546_v51 = vpop.eup %3545 }
 0xb2a   :  { %1060 = vrot.lane.b32.xlu0 %v3546_v51, %s3708_s3  ;;  %v1465_v51 = vld [vmem:[#allocation6 + $0x18] sm:$0xff] }
 0xb9c   :  { %v1061_v24 = vpop.permute.xlu0 %1060 }
 0xb9d   :  { %v4112_v25 = vmul.f32 %v1061_v24, %v1057_v22  ;;  %v1464_v22 = vld [vmem:[#allocation6 + $0x10] sm:$0xff]  ;;  %v1674_v24 = vrot.slane %v1660_v17, %v3803_v15  ;;  %v1493_v17 = vld [vmem:[#allocation6 + $0xf8] sm:$0xff] }
 0xb9f   :  { %1065 = vst.msk [vmem:[#allocation2 + $0x8] sm:$0x3] %vm552_vm1, %v4112_v25  ;;  %3424 = vmatmul.mubr.msk.f32.vlgmr.msra.gmra.mxu1 %vm437_vm2, %v4112_v25 }
 0xba0   :  { %1354 = vmatpush1.msra.mxu1 %v3836_v31  ;;  %1401 = vmatprep.mubr.f32.mxu1 %v3706_v0 }
 0xba1   :  { %1355 = vmatprep.subr.mxu1 %v3843_v34 }
 0xba2   :  { %1356 = vmatpush1.msra.mxu1 %v3850_v35 }
 0xba3   :  { %1357 = vmatprep.subr.mxu1 %v3857_v37 }
 0xba4   :  { %1358 = vmatpush1.msra.mxu1 %v3864_v38 }
 0xba5   :  { %1359 = vmatprep.subr.mxu1 %v3870_v39 }
 0xba6   :  { %1360 = vmatpush1.msra.mxu1 %v3878_v40 }
 0xba7   :  { %1361 = vmatprep.subr.mxu1 %v3885_v41 }
 0xba8   :  { %1362 = vmatpush1.msra.mxu1 %v3891_v42 }
 0xba9   :  { %1363 = vmatprep.subr.mxu1 %v3898_v43 }
 0xbaa   :  { %1364 = vmatpush1.msra.mxu1 %v3905_v44 }
 0xbab   :  { %1365 = vmatprep.subr.mxu1 %v3912_v45 }
 0xbac   :  { %1366 = vmatpush1.msra.mxu1 %v3919_v46 }
 0xbad   :  { %1367 = vmatprep.subr.mxu1 %v3926_v47 }
 0xbae   :  { %1368 = vmatpush1.msra.mxu1 %v3933_v48 }
 0xc5f   :  { %v1147_v31 = vpop.f32.mrf.mxu1 }
 0xc61   :  { %v1149_v34 = vpop.f32.mrf.mxu1 }
 0xc62   :  { %v1154_v35 = vcombine.low %v1147_v31, %v1149_v34  ;;  %v1463_v31 = vld [vmem:[#allocation6 + $0x8] sm:$0xff]  ;;  %v1462_v34 = vld [vmem:[#allocation6] sm:$0xff] }
 0xc64   :  { %v1161_v37 = vrot.slane %v1154_v35, %v3803_v15 }
 0xc66   :  { %v1163_v38 = vadd.f32 %v1161_v37, %v3992_v57 }
 0xc68   :  { %1171 = vrot.lane.b32.xlu1 %v1163_v38, %s3708_s3  ;;  %v3425_v39 = vmul.f32 -1.442695, %v1163_v38 }
 0xc6a   :  { %3547 = vpow2.f32 %v3425_v39 }
 0xc77   :  { %v3548_v40 = vpop.eup %3547 }
 0xc78   :  { %v1167_v41 = vadd.f32 1.0, %v3548_v40 }
 0xc7a   :  { %3549 = vrcp.f32 %v1167_v41 }
 0xc87   :  { %v3550_v44 = vpop.eup %3549 }
 0xc88   :  { %v1176_v47 = vmul.f32 %v3550_v44, %v1054_v21  ;;  %v1185_v27 = vrot.slane %v3550_v44, 2  ;;  %v1659_v21 = vcombine.low %v1511_v19, %v1512_v11  ;;  %v1472_v11 = vld [vmem:[#allocation6 + $0x50] sm:$0xff] }
 0xc8a   :  { %v1667_v35 = vrot.slane %v1659_v21, %v3803_v15  ;;  %v945_v21 = vrot.slane %v4085_v2, %v3803_v15  ;;  %v4208_v2 = vld [vmem:[#allocation8 + $0x70] sm:$0xff] }
 0xc8c   :  { %v4159_v37 = vcombine.low %v1667_v35, %v1674_v24 }
 0xcda   :  { %v1172_v42 = vpop.permute.xlu1 %1171 }
 0xcdb   :  { %v1173_v43 = vrot.slane %v1172_v42, 2 }
 0xcdd   :  { %3551 = vtanh.f32 %v1173_v43 }
 0xcea   :  { %v3552_v45 = vpop.eup %3551 }
 0xceb   :  { %v1177_v46 = vmul.f32 %v3552_v45, %v3550_v44 }
 0xced   :  { %1179 = vrot.lane.b32.xlu0 %v1177_v46, %s3708_s3 }
 0xd5f   :  { %v1180_v48 = vpop.permute.xlu0 %1179 }
 0xd60   :  { %v1182_v26 = vadd.f32 %v1180_v48, %v1176_v47 }
 0xd62   :  { %3553 = vtanh.f32 %v1182_v26 }
 0xd6f   :  { %v3554_v57 = vpop.eup %3553 }
 0xd70   :  { %1188 = vrot.lane.b32.xlu1 %v3554_v57, %s3708_s3 }
 0xde2   :  { %v1189_v28 = vpop.permute.xlu1 %1188 }
 0xde3   :  { %v4139_v29 = vmul.f32 %v1189_v28, %v1185_v27  ;;  %v1073_v27 = vrot.slane %v4112_v25, %v3803_v15  ;;  %v561_v28 = vrot.slane %v4002_v20, %v3803_v15  ;;  %v1485_v20 = vld [vmem:[#allocation6 + $0xb8] sm:$0xff] }
 0xde5   :  { %1193 = vst.msk [vmem:[#allocation2 + $0xa] sm:$0x3] %vm552_vm1, %v4139_v29  ;;  %3426 = vmatmul.mubr.msk.f32.vlgmr.msra.gmra.mxu0 %vm437_vm2, %v4139_v29 }
 0xde6   :  { %1638 = vmatprep.mubr.f32.mxu0 %v3706_v0 }
 0xea5   :  { %v1275_v30 = vpop.f32.mrf.mxu0 }
 0xea7   :  { %v1277_v32 = vpop.f32.mrf.mxu0 }
 0xea8   :  { %v1282_v33 = vcombine.low %v1275_v30, %v1277_v32  ;;  %v817_v30 = vrot.slane %v4057_v23, %v3803_v15  ;;  %v1482_v23 = vld [vmem:[#allocation6 + $0xa0] sm:$0xff] }
 0xeaa   :  { %v1289_v36 = vrot.slane %v1282_v33, %v3803_v15 }
 0xeac   :  { %v1291_v53 = vadd.f32 %v1289_v36, %v3988_v52  ;;  %v1469_v52 = vld [vmem:[#allocation6 + $0x38] sm:$0xff] }
 0xead   :  { %1721 = vmatprep.subr.mxu1 %v1469_v52  ;;  %v1477_v52 = vld [vmem:[#allocation6 + $0x78] sm:$0xff] }
 0xeae   :  { %1299 = vrot.lane.b32.xlu0 %v1291_v53, %s3708_s3  ;;  %v3427_v56 = vmul.f32 -1.442695, %v1291_v53  ;;  %1598 = vmatprep.subr.mxu0 %v1477_v52  ;;  %v1491_v52 = vld [vmem:[#allocation6 + $0xe8] sm:$0xff] }
 0xeb0   :  { %3555 = vpow2.f32 %v3427_v56 }
 0xebd   :  { %v3556_v14 = vpop.eup %3555 }
 0xebe   :  { %v1295_v59 = vadd.f32 1.0, %v3556_v14  ;;  %v1484_v14 = vld [vmem:[#allocation6 + $0xb0] sm:$0xff] }
 0xec0   :  { %3557 = vrcp.f32 %v1295_v59  ;;  %v1483_v59 = vld [vmem:[#allocation6 + $0xa8] sm:$0xff] }
 0xecd   :  { %v3558_v55 = vpop.eup %3557 }
 0xece   :  { %v1304_v3 = vmul.f32 %v3558_v55, %v1182_v26  ;;  %v1313_v6 = vrot.slane %v3558_v55, 2 }
 0xf20   :  { %v1300_v54 = vpop.permute.xlu0 %1299 }
 0xf21   :  { %v1301_v61 = vrot.slane %v1300_v54, 2 }
 0xf23   :  { %3559 = vtanh.f32 %v1301_v61 }
 0xf30   :  { %v3560_v62 = vpop.eup %3559 }
 0xf31   :  { %v1305_v1 = vmul.f32 %v3560_v62, %v3558_v55  ;;  %v1201_v55 = vrot.slane %v4139_v29, %v3803_v15  ;;  %v1481_v62 = vld [vmem:[#allocation6 + $0x98] sm:$0xff]  ;;  %v1474_v29 = vld [vmem:[#allocation6 + $0x60] sm:$0xff] }
 0xf33   :  { %1307 = vrot.lane.b32.xlu1 %v1305_v1, %s3708_s3  ;;  %v1480_v1 = vld [vmem:[#allocation6 + $0x90] sm:$0xff] }
 0xfa5   :  { %v1308_v4 = vpop.permute.xlu1 %1307 }
 0xfa6   :  { %v4150_v7 = vadd.f32 %v1308_v4, %v1304_v3  ;;  %v1479_v3 = vld [vmem:[#allocation6 + $0x88] sm:$0xff]  ;;  %v1478_v4 = vld [vmem:[#allocation6 + $0x80] sm:$0xff] }
 0xfa8   :  { %3561 = vtanh.f32 %v4150_v7 }
 0xfb5   :  { %v3562_v8 = vpop.eup %3561 }
 0xfb6   :  { %1316 = vrot.lane.b32.xlu0 %v3562_v8, %s3708_s3  ;;  %v1476_v8 = vld [vmem:[#allocation6 + $0x70] sm:$0xff] }
 0xfb7   :  { %1599 = vmatpush1.msra.mxu0 %v1476_v8  ;;  %v1490_v8 = vld [vmem:[#allocation6 + $0xe0] sm:$0xff] }
 0xfb8   :  { %1600 = vmatprep.subr.mxu0 %v1475_v9 }
 0xfb9   :  { %1601 = vmatpush1.msra.mxu0 %v1474_v29 }
0x1028   :  { %v1317_v10 = vpop.permute.xlu0 %1316 }
0x1029   :  { %v1319_v13 = vmul.f32 %v1317_v10, %v1313_v6  ;;  %v1473_v6 = vld [vmem:[#allocation6 + $0x58] sm:$0xff] }
0x102a   :  { %1602 = vmatprep.subr.mxu0 %v1473_v6  ;;  %v1489_v6 = vld [vmem:[#allocation6 + $0xd8] sm:$0xff] }
0x102b   :  { %1321 = vst.msk [vmem:[#allocation2 + $0xc] sm:$0x3] %vm552_vm1, %v1319_v13  ;;  %3428 = vmatmul.mubr.msk.f32.vlgmr.msra.gmra.mxu1 %vm437_vm2, %v1319_v13  ;;  %1603 = vmatpush1.msra.mxu0 %v1472_v11  ;;  %v1488_v11 = vld [vmem:[#allocation6 + $0xd0] sm:$0xff] }
0x102c   :  { %1722 = vmatpush1.msra.mxu1 %v1468_v16  ;;  %1761 = vmatprep.mubr.f32.mxu1 %v3706_v0 }
0x102d   :  { %1723 = vmatprep.subr.mxu1 %v1467_v18 }
0x102e   :  { %1724 = vmatpush1.msra.mxu1 %v1466_v60  ;;  %v1516_v60 = vld [vmem:[#allocation2 + $0xa] sm:$0x3] }
0x102f   :  { %1725 = vmatprep.subr.mxu1 %v1465_v51 }
0x1030   :  { %1726 = vmatpush1.msra.mxu1 %v1464_v22  ;;  %v1515_v22 = vld [vmem:[#allocation2 + $0x8] sm:$0x3] }
0x1031   :  { %1727 = vmatprep.subr.mxu1 %v1463_v31  ;;  %v1676_v24 = vcombine.low %v1515_v22, %v1516_v60 }
0x1032   :  { %1728 = vmatpush1.msra.mxu1 %v1462_v34  ;;  %v1517_v31 = vld [vmem:[#allocation2 + $0xc] sm:$0x3] }
0x1033   :  { %3432 = vmatmul.mubr.msk.f32.vlgmr.msra.gmra.mxu1 %vm1569_vm3, %v4159_v37  ;;  %1923 = vmatprep.subr.mxu1 %v1485_v20 }
0x1034   :  { %1767 = vmatprep.mubr.f32.mxu1 %v3706_v0  ;;  %1924 = vmatpush1.msra.mxu1 %v1484_v14 }
0x1035   :  { %1925 = vmatprep.subr.mxu1 %v1483_v59 }
0x1036   :  { %1926 = vmatpush1.msra.mxu1 %v1482_v23 }
0x1037   :  { %1927 = vmatprep.subr.mxu1 %v1481_v62 }
0x1038   :  { %1928 = vmatpush1.msra.mxu1 %v1480_v1 }
0x1039   :  { %1929 = vmatprep.subr.mxu1 %v1479_v3 }
0x103a   :  { %1930 = vmatpush1.msra.mxu1 %v1478_v4  ;;  %v1492_v4 = vld [vmem:[#allocation6 + $0xf0] sm:$0xff] }
0x10eb   :  { %v1403_v38 = vpop.f32.mrf.mxu1 }
0x10ed   :  { %v1405_v39 = vpop.f32.mrf.mxu1 }
0x10ee   :  { %v1410_v40 = vcombine.low %v1403_v38, %v1405_v39  ;;  %v1684_v38 = vrot.slane %v1676_v24, %v3803_v15  ;;  %v1510_v24 = vld [vmem:[%s4573_s6] sm:$0x3] }
0x10f0   :  { %v1417_v41 = vrot.slane %v1410_v40, %v3803_v15  ;;  %v4201_v40 = vld [vmem:[#allocation8 + $0x78] sm:$0xff] }
0x10f1   :  { %2201 = vmatprep.subr.mxu1 %v4201_v40 }
0x10f2   :  { %v1419_v42 = vadd.f32 %v1417_v41, %v3994_v58  ;;  %v1329_v58 = vrot.slane %v1319_v13, %v3803_v15  ;;  %v1471_v13 = vld [vmem:[#allocation6 + $0x48] sm:$0xff] }
0x10f3   :  { %1604 = vmatprep.subr.mxu0 %v1471_v13  ;;  %v1486_v13 = vld [vmem:[#allocation6 + $0xc0] sm:$0xff] }
0x10f4   :  { %1427 = vrot.lane.b32.xlu1 %v1419_v42, %s3708_s3  ;;  %v3429_v43 = vmul.f32 -1.442695, %v1419_v42  ;;  %v4211_v42 = vld [vmem:[#allocation8 + $0x68] sm:$0xff] }
0x10f6   :  { %3563 = vpow2.f32 %v3429_v43  ;;  %v4214_v43 = vld [vmem:[#allocation8 + $0x60] sm:$0xff] }
0x1103   :  { %v3564_v44 = vpop.eup %3563 }
0x1104   :  { %v1423_v45 = vadd.f32 1.0, %v3564_v44  ;;  %v4217_v44 = vld [vmem:[#allocation8 + $0x58] sm:$0xff] }
0x1106   :  { %3565 = vrcp.f32 %v1423_v45  ;;  %v4221_v45 = vld [vmem:[#allocation8 + $0x50] sm:$0xff] }
0x1113   :  { %v3566_v48 = vpop.eup %3565 }
0x1114   :  { %v1432_v32 = vmul.f32 %v3566_v48, %v4150_v7  ;;  %v689_v7 = vrot.slane %v4029_v63, %v3803_v15  ;;  %v1441_v10 = vrot.slane %v3566_v48, 2  ;;  %v1470_v63 = vld [vmem:[#allocation6 + $0x40] sm:$0xff] }
0x1115   :  { %1605 = vmatpush1.msra.mxu0 %v1470_v63 }
0x1116   :  { %1846 = vmatprep.subr.mxu0 %v1493_v17 }
0x1166   :  { %v1428_v46 = vpop.permute.xlu1 %1427 }
0x1167   :  { %v1429_v47 = vrot.slane %v1428_v46, 2  ;;  %v4228_v46 = vld [vmem:[#allocation8 + $0x40] sm:$0xff] }
0x1169   :  { %3567 = vtanh.f32 %v1429_v47  ;;  %v4231_v47 = vld [vmem:[#allocation8 + $0x38] sm:$0xff] }
0x1176   :  { %v3568_v26 = vpop.eup %3567 }
0x1177   :  { %v1433_v57 = vmul.f32 %v3568_v26, %v3566_v48  ;;  %v4234_v48 = vld [vmem:[#allocation8 + $0x30] sm:$0xff]  ;;  %v4237_v26 = vld [vmem:[#allocation8 + $0x28] sm:$0xff] }
0x1179   :  { %1435 = vrot.lane.b32.xlu0 %v1433_v57, %s3708_s3  ;;  %v4240_v57 = vld [vmem:[#allocation8 + $0x20] sm:$0xff] }
0x117d   :  { %1074 = vrot.lane.b32.xlu0 %v1073_v27, %s3709_s17  ;;  %v4243_v27 = vld [vmem:[#allocation8 + $0x18] sm:$0xff] }
0x1181   :  { %1330 = vrot.lane.b32.xlu0 %v1329_v58, %s3709_s17  ;;  %v4246_v58 = vld [vmem:[#allocation8 + $0x10] sm:$0xff] }
0x1185   :  { %562 = vrot.lane.b32.xlu0 %v561_v28, %s3709_s17  ;;  %v4249_v28 = vld [vmem:[#allocation8 + $0x8] sm:$0xff] }
0x1189   :  { %818 = vrot.lane.b32.xlu0 %v817_v30, %s3709_s17  ;;  %v4252_v30 = vld [vmem:[#allocation8] sm:$0xff] }
0x11eb   :  { %v1436_v25 = vpop.permute.xlu0 %1435 }
0x11ec   :  { %v1438_v33 = vadd.f32 %v1436_v25, %v1432_v32 }
0x11ee   :  { %3569 = vtanh.f32 %v1438_v33 }
0x11ef   :  { %v1075_v36 = vpop.permute.xlu0 %1074 }
0x11f0   :  { %1078 = vst.msk [vmem:[#allocation3 + $0x6] sm:$0x3] %vm552_vm1, %v1075_v36 }
0x11f3   :  { %v1331_v53 = vpop.permute.xlu0 %1330 }
0x11f4   :  { %1334 = vst.msk [vmem:[#allocation3 + $0x2] sm:$0x3] %vm552_vm1, %v1331_v53 }
0x11f7   :  { %v563_v56 = vpop.permute.xlu0 %562  ;;  %v1522_v36 = vld [vmem:[#allocation3 + $0x6] sm:$0x3] }
0x11f8   :  { %566 = vst.msk [vmem:[#allocation3 + $0xe] sm:$0x3] %vm552_vm1, %v563_v56 }
0x11fb   :  { %v3570_v54 = vpop.eup %3569  ;;  %v819_v61 = vpop.permute.xlu0 %818  ;;  %v1520_v20 = vld [vmem:[#allocation3 + $0x2] sm:$0x3] }
0x11fc   :  { %822 = vst.msk [vmem:[#allocation3 + $0xa] sm:$0x3] %vm552_vm1, %v819_v61  ;;  %1444 = vrot.lane.b32.xlu1 %v3570_v54, %s3708_s3 }
0x11ff   :  { %v1526_v23 = vld [vmem:[#allocation3 + $0xe] sm:$0x3] }
0x1200   :  { %1202 = vrot.lane.b32.xlu1 %v1201_v55, %s3709_s17 }
0x1203   :  { %v1524_v1 = vld [vmem:[#allocation3 + $0xa] sm:$0x3] }
0x1204   :  { %690 = vrot.lane.b32.xlu1 %v689_v7, %s3709_s17 }
0x126e   :  { %v1445_v12 = vpop.permute.xlu1 %1444 }
0x126f   :  { %v1447_v16 = vmul.f32 %v1445_v12, %v1441_v10  ;;  %v1487_v12 = vld [vmem:[#allocation6 + $0xc8] sm:$0xff] }
0x1271   :  { %1449 = vst.msk [vmem:[#allocation2 + $0xe] sm:$0x3] %vm552_vm1, %v1447_v16  ;;  %v1457_v18 = vrot.slane %v1447_v16, %v3803_v15  ;;  %v1763_v16 = vpop.f32.mrf.mxu1 }
0x1272   :  { %v1203_v19 = vpop.permute.xlu1 %1202 }
0x1273   :  { %1206 = vst.msk [vmem:[#allocation3 + $0x4] sm:$0x3] %vm552_vm1, %v1203_v19  ;;  %1458 = vrot.lane.b32.xlu1 %v1457_v18, %s3709_s17  ;;  %v1765_v63 = vpop.f32.mrf.mxu1 }
0x1276   :  { %v691_v51 = vpop.permute.xlu1 %690 }
0x1277   :  { %694 = vst.msk [vmem:[#allocation3 + $0xc] sm:$0x3] %vm552_vm1, %v691_v51  ;;  %946 = vrot.lane.b32.xlu1 %v945_v21, %s3709_s17 }
0x1278   :  { %v1518_v34 = vld [vmem:[#allocation2 + $0xe] sm:$0x3] }
0x1279   :  { %v1677_v35 = vcombine.low %v1517_v31, %v1518_v34 }
0x127a   :  { %v1521_v33 = vld [vmem:[#allocation3 + $0x4] sm:$0x3] }
0x127b   :  { %v1691_v39 = vrot.slane %v1677_v35, %v3803_v15  ;;  %v1536_v53 = vcombine.low %v1521_v33, %v1522_v36 }
0x127d   :  { %v1692_v41 = vcombine.low %v1684_v38, %v1691_v39  ;;  %v1550_v61 = vrot.slane %v1536_v53, %v3803_v15  ;;  %v2029_v39 = vrot.slane %v1510_v24, %v407_v49 }
0x127e   :  { %v1525_v14 = vld [vmem:[#allocation3 + $0xc] sm:$0x3] }
0x127f   :  { %3433 = vmatmul.mubr.msk.f32.gmra.mxu1 %vm1569_vm3, %v1692_v41  ;;  %v1553_v55 = vcombine.low %v1525_v14, %v1526_v23 }
0x1280   :  { %1963 = vmatprep.mubr.f32.mxu1 %v3706_v0 }
0x1281   :  { %v1567_v29 = vrot.slane %v1553_v55, %v3803_v15 }
0x1283   :  { %3436 = vmatmul.mubr.msk.f32.vlgmr.msra.gmra.mxu1 %vm1569_vm3, %v4159_v37  ;;  %v4224_v37 = vld [vmem:[#allocation8 + $0x48] sm:$0xff] }
0x1284   :  { %1969 = vmatprep.mubr.f32.mxu1 %v3706_v0  ;;  %2202 = vmatpush1.msra.mxu1 %v4208_v2 }
0x1285   :  { %2203 = vmatprep.subr.mxu1 %v4211_v42 }
0x1286   :  { %2204 = vmatpush1.msra.mxu1 %v4214_v43 }
0x1287   :  { %3437 = vmatmul.mubr.msk.f32.gmra.mxu1 %vm1569_vm3, %v1692_v41  ;;  %2205 = vmatprep.subr.mxu1 %v4217_v44  ;;  %v2033_v41 = vrot.slane %v1510_v24, %v411_v50 }
0x1288   :  { %2206 = vmatpush1.msra.mxu1 %v4221_v45  ;;  %2249 = vmatprep.mubr.f32.mxu1 %v3706_v0 }
0x1289   :  { %2207 = vmatprep.subr.mxu1 %v4224_v37  ;;  %v2034_v14 = vcombine.low %v2029_v39, %v2033_v41 }
0x128a   :  { %2208 = vmatpush1.msra.mxu1 %v4228_v46 }
0x128b   :  { %2209 = vmatprep.subr.mxu1 %v4231_v47 }
0x128c   :  { %2210 = vmatpush1.msra.mxu1 %v4234_v48 }
0x128d   :  { %2211 = vmatprep.subr.mxu1 %v4237_v26 }
0x128e   :  { %2212 = vmatpush1.msra.mxu1 %v4240_v57 }
0x128f   :  { %2213 = vmatprep.subr.mxu1 %v4243_v27 }
0x1290   :  { %2214 = vmatpush1.msra.mxu1 %v4246_v58 }
0x1291   :  { %2215 = vmatprep.subr.mxu1 %v4249_v28 }
0x1292   :  { %2216 = vmatpush1.msra.mxu1 %v4252_v30 }
0x1293   :  { %2457 = vmatprep.subr.mxu1 %v4201_v40 }
0x12e5   :  { %v1459_v32 = vpop.permute.xlu1 %1458 }
0x12e6   :  { %1461 = vst.msk [vmem:[#allocation3] sm:$0x3] %vm552_vm1, %v1459_v32 }
0x12e9   :  { %v947_v25 = vpop.permute.xlu1 %946 }
0x12ea   :  { %950 = vst.msk [vmem:[#allocation3 + $0x8] sm:$0x3] %vm552_vm1, %v947_v25 }
0x12ed   :  { %v1519_v56 = vld [vmem:[#allocation3] sm:$0x3] }
0x12ee   :  { %v1535_v59 = vcombine.low %v1519_v56, %v1520_v20 }
0x12f0   :  { %v1543_v54 = vrot.slane %v1535_v59, %v3803_v15 }
0x12f1   :  { %v1523_v62 = vld [vmem:[#allocation3 + $0x8] sm:$0x3] }
0x12f2   :  { %v1551_v3 = vcombine.low %v1543_v54, %v1550_v61  ;;  %v1552_v7 = vcombine.low %v1523_v62, %v1524_v1 }
0x12f4   :  { %3430 = vmatmul.mubr.msk.f32.vlgmr.msra.gmra.mxu0 %vm1569_vm3, %v1551_v3  ;;  %v1560_v9 = vrot.slane %v1552_v7, %v3803_v15 }
0x12f5   :  { %1847 = vmatpush1.msra.mxu0 %v1492_v4  ;;  %1644 = vmatprep.mubr.f32.mxu0 %v3706_v0  ;;  %v2041_v4 = vrot.slane %v2034_v14, %v3803_v15 }
0x12f6   :  { %1848 = vmatprep.subr.mxu0 %v1491_v52  ;;  %v1568_v10 = vcombine.low %v1560_v9, %v1567_v29 }
0x12f7   :  { %1849 = vmatpush1.msra.mxu0 %v1490_v8 }
0x12f8   :  { %1850 = vmatprep.subr.mxu0 %v1489_v6  ;;  %3431 = vmatmul.mubr.msk.f32.gmra.mxu0 %vm1569_vm3, %v1568_v10 }
0x12f9   :  { %1851 = vmatpush1.msra.mxu0 %v1488_v11  ;;  %1886 = vmatprep.mubr.f32.mxu0 %v3706_v0 }
0x12fa   :  { %1852 = vmatprep.subr.mxu0 %v1487_v12 }
0x12fb   :  { %1853 = vmatpush1.msra.mxu0 %v1486_v13 }
0x12fc   :  { %2074 = vmatprep.subr.mxu0 %v4201_v40  ;;  %3434 = vmatmul.mubr.msk.f32.vlgmr.msra.gmra.mxu0 %vm1569_vm3, %v1551_v3 }
0x12fd   :  { %2075 = vmatpush1.msra.mxu0 %v4208_v2  ;;  %1892 = vmatprep.mubr.f32.mxu0 %v3706_v0 }
0x12fe   :  { %2076 = vmatprep.subr.mxu0 %v4211_v42 }
0x12ff   :  { %2077 = vmatpush1.msra.mxu0 %v4214_v43 }
0x1300   :  { %2078 = vmatprep.subr.mxu0 %v4217_v44  ;;  %3435 = vmatmul.mubr.msk.f32.gmra.mxu0 %vm1569_vm3, %v1568_v10 }
0x1301   :  { %2079 = vmatpush1.msra.mxu0 %v4221_v45  ;;  %2122 = vmatprep.mubr.f32.mxu0 %v3706_v0 }
0x1302   :  { %2080 = vmatprep.subr.mxu0 %v4224_v37 }
0x1303   :  { %2081 = vmatpush1.msra.mxu0 %v4228_v46 }
0x1304   :  { %2082 = vmatprep.subr.mxu0 %v4231_v47 }
0x1305   :  { %2083 = vmatpush1.msra.mxu0 %v4234_v48 }
0x1306   :  { %2084 = vmatprep.subr.mxu0 %v4237_v26 }
0x1307   :  { %2085 = vmatpush1.msra.mxu0 %v4240_v57 }
0x1308   :  { %2086 = vmatprep.subr.mxu0 %v4243_v27 }
0x1309   :  { %2087 = vmatpush1.msra.mxu0 %v4246_v58 }
0x130a   :  { %2088 = vmatprep.subr.mxu0 %v4249_v28 }
0x130b   :  { %2089 = vmatpush1.msra.mxu0 %v4252_v30 }
0x130c   :  { %2123 = vmatmul.mubr.f32.vlgmr.msra.gmra.mxu0 %v3706_v0  ;;  %2329 = vmatprep.subr.mxu0 %v4201_v40 }
0x130d   :  { %2330 = vmatpush1.msra.mxu0 %v4208_v2  ;;  %2377 = vmatprep.mubr.f32.mxu0 %v3706_v0 }
0x130e   :  { %2331 = vmatprep.subr.mxu0 %v4211_v42 }
0x130f   :  { %2332 = vmatpush1.msra.mxu0 %v4214_v43 }
0x1310   :  { %2333 = vmatprep.subr.mxu0 %v4217_v44 }
0x1311   :  { %2334 = vmatpush1.msra.mxu0 %v4221_v45 }
0x1312   :  { %2335 = vmatprep.subr.mxu0 %v4224_v37 }
0x1313   :  { %2336 = vmatpush1.msra.mxu0 %v4228_v46 }
0x1314   :  { %2337 = vmatprep.subr.mxu0 %v4231_v47 }
0x1315   :  { %2338 = vmatpush1.msra.mxu0 %v4234_v48 }
0x1316   :  { %2339 = vmatprep.subr.mxu0 %v4237_v26 }
0x1317   :  { %2340 = vmatpush1.msra.mxu0 %v4240_v57 }
0x1318   :  { %2341 = vmatprep.subr.mxu0 %v4243_v27 }
0x1319   :  { %2342 = vmatpush1.msra.mxu0 %v4246_v58 }
0x131a   :  { %2343 = vmatprep.subr.mxu0 %v4249_v28 }
0x131b   :  { %2344 = vmatpush1.msra.mxu0 %v4252_v30 }
0x131c   :  { %2585 = vmatprep.subr.mxu0 %v4201_v40 }
0x133f   :  { %v1769_v17 = vpop.f32.mrf.mxu1 }
0x1341   :  { %v1771_v18 = vpop.f32.mrf.mxu1 }
0x1343   :  { %v1965_v60 = vpop.f32.mrf.mxu1 }
0x1345   :  { %v1967_v35 = vpop.f32.mrf.mxu1 }
0x1347   :  { %v1971_v56 = vpop.f32.mrf.mxu1 }
0x1349   :  { %v1973_v5 = vpop.f32.mrf.mxu1 }
0x13b4   :  { %v1640_v19 = vpop.f32.mrf.mxu0 }
0x13b5   :  { %v1764_v51 = vadd.f32 %v1763_v16, %v1640_v19 }
0x13b6   :  { %v1642_v21 = vpop.f32.mrf.mxu0 }
0x13b7   :  { %v1766_v22 = vadd.f32 %v1765_v63, %v1642_v21 }
0x13b8   :  { %v1646_v31 = vpop.f32.mrf.mxu0 }
0x13b9   :  { %v1779_v34 = vcombine.high %v1764_v51, %v1766_v22  ;;  %v1770_v32 = vadd.f32 %v1769_v17, %v1646_v31  ;;  %v1778_v55 = vcombine.low %v1764_v51, %v1766_v22 }
0x13ba   :  { %v1648_v38 = vpop.f32.mrf.mxu0 }
0x13bb   :  { %v1772_v25 = vadd.f32 %v1771_v18, %v1648_v38  ;;  %v1786_v29 = vrot.slane %v1778_v55, %v3803_v15  ;;  %v1793_v6 = vrot.slane %v1779_v34, %v3803_v15 }
0x13bc   :  { %v1888_v33 = vpop.f32.mrf.mxu0 }
0x13bd   :  { %v1796_v36 = vcombine.low %v1770_v32, %v1772_v25  ;;  %v1797_v53 = vcombine.high %v1770_v32, %v1772_v25  ;;  %v1966_v54 = vadd.f32 %v1965_v60, %v1888_v33  ;;  %v1794_v51 = vcombine.high %v1786_v29, %v1786_v29 }
0x13be   :  { %v1890_v20 = vpop.f32.mrf.mxu0  ;;  %v1795_v22 = vcombine.high %v1793_v6, %v1793_v6 }
0x13bf   :  { %v1804_v59 = vrot.slane %v1796_v36, %v3803_v15  ;;  %v1811_v23 = vrot.slane %v1797_v53, %v3803_v15  ;;  %v1968_v61 = vadd.f32 %v1967_v35, %v1890_v20 }
0x13c0   :  { %v1894_v62 = vpop.f32.mrf.mxu0 }
0x13c1   :  { %v1980_v49 = vcombine.low %v1966_v54, %v1968_v61  ;;  %v1981_v1 = vcombine.high %v1966_v54, %v1968_v61  ;;  %v1812_v50 = vcombine.high %v1804_v59, %v1804_v59  ;;  %v1813_v7 = vcombine.high %v1811_v23, %v1811_v23 }
0x13c2   :  { %v1896_v3 = vpop.f32.mrf.mxu0  ;;  %v1972_v10 = vadd.f32 %v1971_v56, %v1894_v62 }
0x13c3   :  { %v1988_v52 = vrot.slane %v1980_v49, %v3803_v15  ;;  %v1995_v8 = vrot.slane %v1981_v1, %v3803_v15  ;;  %v1974_v9 = vadd.f32 %v1973_v5, %v1896_v3 }
0x13c5   :  { %v1996_v11 = vcombine.high %v1988_v52, %v1988_v52  ;;  %v1997_v12 = vcombine.high %v1995_v8, %v1995_v8  ;;  %v2052_v13 = vadd.f32 %v1995_v8, %v1812_v50  ;;  %v2056_v16 = vadd.f32 %v1988_v52, %v1813_v7 }
0x13c6   :  { %v1998_v63 = vcombine.low %v1972_v10, %v1974_v9  ;;  %v1999_v17 = vcombine.high %v1972_v10, %v1974_v9 }
0x13c7   :  { %v2050_v18 = vadd.f32 %v1997_v12, %v1804_v59  ;;  %v4320_v19 = vadd.f32 %v2052_v13, %v2041_v4  ;;  %v2054_v60 = vadd.f32 %v1996_v11, %v1811_v23  ;;  %v4322_v21 = vadd.f32 %v2056_v16, %v2041_v4 }
0x13c8   :  { %v2006_v24 = vrot.slane %v1998_v63, %v3803_v15  ;;  %v2013_v31 = vrot.slane %v1999_v17, %v3803_v15 }
0x13c9   :  { %v4326_v34 = vadd.f32 %v2050_v18, %v2041_v4  ;;  %v4328_v35 = vadd.f32 %v2054_v60, %v2041_v4 }
0x13ca   :  { %v2014_v38 = vcombine.high %v2006_v24, %v2006_v24  ;;  %v2015_v39 = vcombine.high %v2013_v31, %v2013_v31  ;;  %v2044_v41 = vadd.f32 %v2013_v31, %v1794_v51  ;;  %v2048_v32 = vadd.f32 %v2006_v24, %v1795_v22 }
0x13cc   :  { %v2124_v25 = vpop.f32.mrf.mxu0  ;;  %v2045_v33 = vadd.f32 %v2044_v41, %v2041_v4  ;;  %v2046_v36 = vadd.f32 %v2014_v38, %v1793_v6  ;;  %v4330_v53 = vadd.f32 %v2048_v32, %v2041_v4  ;;  %v2024_v56 = vadd.f32 %v2015_v39, %v1786_v29 }
0x13ce   :  { %v2126_v20 = vpop.f32.mrf.mxu0  ;;  %v4332_v14 = vadd.f32 %v2046_v36, %v2041_v4  ;;  %v2043_v54 = vadd.f32 %v2041_v4, %v2024_v56 }
0x13cf   :  { %v2131_v59 = vcombine.low %v2124_v25, %v2126_v20 }
0x13d1   :  { %v2138_v23 = vrot.slane %v2131_v59, %v3803_v15 }
0x13d3   :  { %v2140_v61 = vadd.f32 %v2138_v23, %v2043_v54 }
0x13d5   :  { %2148 = vrot.lane.b32.xlu0 %v2140_v61, %s3708_s3  ;;  %v3438_v55 = vmul.f32 -1.442695, %v2140_v61 }
0x13d7   :  { %3571 = vpow2.f32 %v3438_v55 }
0x13e4   :  { %v3572_v62 = vpop.eup %3571 }
0x13e5   :  { %v2144_v49 = vadd.f32 1.0, %v3572_v62 }
0x13e7   :  { %3573 = vrcp.f32 %v2144_v49 }
0x13f4   :  { %v3574_v50 = vpop.eup %3573 }
0x13f5   :  { %v2153_v52 = vmul.f32 0.0, %v3574_v50  ;;  %v2162_v29 = vrot.slane %v3574_v50, 2 }
0x1447   :  { %v2149_v1 = vpop.permute.xlu0 %2148 }
0x1448   :  { %v2150_v5 = vrot.slane %v2149_v1, 2 }
0x144a   :  { %3575 = vtanh.f32 %v2150_v5 }
0x1457   :  { %v3576_v3 = vpop.eup %3575 }
0x1458   :  { %v2154_v7 = vmul.f32 %v3576_v3, %v3574_v50 }
0x145a   :  { %2156 = vrot.lane.b32.xlu1 %v2154_v7, %s3708_s3 }
0x14cc   :  { %v2157_v8 = vpop.permute.xlu1 %2156 }
0x14cd   :  { %v2159_v9 = vadd.f32 %v2157_v8, %v2153_v52 }
0x14cf   :  { %3577 = vtanh.f32 %v2159_v9 }
0x14dc   :  { %v3578_v4 = vpop.eup %3577 }
0x14dd   :  { %2165 = vrot.lane.b32.xlu0 %v3578_v4, %s3708_s3 }
0x154f   :  { %v2166_v6 = vpop.permute.xlu0 %2165 }
0x1550   :  { %v4338_v10 = vmul.f32 %v2166_v6, %v2162_v29 }
0x1552   :  { %2169 = vst.msk [vmem:[#allocation4] sm:$0x3] %vm552_vm1, %v4338_v10  ;;  %3439 = vmatmul.mubr.msk.f32.vlgmr.msra.gmra.mxu1 %vm437_vm2, %v4338_v10 }
0x1553   :  { %2458 = vmatpush1.msra.mxu1 %v4208_v2  ;;  %2505 = vmatprep.mubr.f32.mxu1 %v3706_v0 }
0x1554   :  { %2459 = vmatprep.subr.mxu1 %v4211_v42 }
0x1555   :  { %2460 = vmatpush1.msra.mxu1 %v4214_v43 }
0x1556   :  { %2461 = vmatprep.subr.mxu1 %v4217_v44 }
0x1557   :  { %2462 = vmatpush1.msra.mxu1 %v4221_v45 }
0x1558   :  { %2463 = vmatprep.subr.mxu1 %v4224_v37 }
0x1559   :  { %2464 = vmatpush1.msra.mxu1 %v4228_v46 }
0x155a   :  { %2465 = vmatprep.subr.mxu1 %v4231_v47 }
0x155b   :  { %2466 = vmatpush1.msra.mxu1 %v4234_v48 }
0x155c   :  { %2467 = vmatprep.subr.mxu1 %v4237_v26 }
0x155d   :  { %2468 = vmatpush1.msra.mxu1 %v4240_v57 }
0x155e   :  { %2469 = vmatprep.subr.mxu1 %v4243_v27 }
0x155f   :  { %2470 = vmatpush1.msra.mxu1 %v4246_v58 }
0x1560   :  { %2471 = vmatprep.subr.mxu1 %v4249_v28 }
0x1561   :  { %2472 = vmatpush1.msra.mxu1 %v4252_v30 }
0x1562   :  { %2713 = vmatprep.subr.mxu1 %v4201_v40 }
0x1612   :  { %v2251_v11 = vpop.f32.mrf.mxu1 }
0x1614   :  { %v2253_v12 = vpop.f32.mrf.mxu1 }
0x1615   :  { %v2258_v13 = vcombine.low %v2251_v11, %v2253_v12 }
0x1617   :  { %v2265_v16 = vrot.slane %v2258_v13, %v3803_v15 }
0x1619   :  { %v2267_v63 = vadd.f32 %v2265_v16, %v2045_v33 }
0x161b   :  { %2275 = vrot.lane.b32.xlu1 %v2267_v63, %s3708_s3  ;;  %v3440_v17 = vmul.f32 -1.442695, %v2267_v63 }
0x161d   :  { %3579 = vpow2.f32 %v3440_v17 }
0x162a   :  { %v3580_v18 = vpop.eup %3579 }
0x162b   :  { %v2271_v60 = vadd.f32 1.0, %v3580_v18 }
0x162d   :  { %3581 = vrcp.f32 %v2271_v60 }
0x163a   :  { %v3582_v24 = vpop.eup %3581 }
0x163b   :  { %v2280_v39 = vmul.f32 %v3582_v24, %v2159_v9  ;;  %v2289_v33 = vrot.slane %v3582_v24, 2 }
0x168d   :  { %v2276_v51 = vpop.permute.xlu1 %2275 }
0x168e   :  { %v2277_v22 = vrot.slane %v2276_v51, 2 }
0x1690   :  { %3583 = vtanh.f32 %v2277_v22 }
0x169d   :  { %v3584_v31 = vpop.eup %3583 }
0x169e   :  { %v2281_v38 = vmul.f32 %v3584_v31, %v3582_v24 }
0x16a0   :  { %2283 = vrot.lane.b32.xlu0 %v2281_v38, %s3708_s3 }
0x1712   :  { %v2284_v41 = vpop.permute.xlu0 %2283 }
0x1713   :  { %v2286_v32 = vadd.f32 %v2284_v41, %v2280_v39 }
0x1715   :  { %3585 = vtanh.f32 %v2286_v32 }
0x1722   :  { %v3586_v25 = vpop.eup %3585 }
0x1723   :  { %2292 = vrot.lane.b32.xlu1 %v3586_v25, %s3708_s3 }
0x1795   :  { %v2293_v36 = vpop.permute.xlu1 %2292 }
0x1796   :  { %v4365_v56 = vmul.f32 %v2293_v36, %v2289_v33 }
0x1798   :  { %2297 = vst.msk [vmem:[#allocation4 + $0x2] sm:$0x3] %vm552_vm1, %v4365_v56  ;;  %3441 = vmatmul.mubr.msk.f32.vlgmr.msra.gmra.mxu0 %vm437_vm2, %v4365_v56 }
0x1799   :  { %2586 = vmatpush1.msra.mxu0 %v4208_v2  ;;  %2633 = vmatprep.mubr.f32.mxu0 %v3706_v0 }
0x179a   :  { %2587 = vmatprep.subr.mxu0 %v4211_v42 }
0x179b   :  { %2588 = vmatpush1.msra.mxu0 %v4214_v43 }
0x179c   :  { %2589 = vmatprep.subr.mxu0 %v4217_v44 }
0x179d   :  { %2590 = vmatpush1.msra.mxu0 %v4221_v45 }
0x179e   :  { %2591 = vmatprep.subr.mxu0 %v4224_v37 }
0x179f   :  { %2592 = vmatpush1.msra.mxu0 %v4228_v46 }
0x17a0   :  { %2593 = vmatprep.subr.mxu0 %v4231_v47 }
0x17a1   :  { %2594 = vmatpush1.msra.mxu0 %v4234_v48 }
0x17a2   :  { %2595 = vmatprep.subr.mxu0 %v4237_v26 }
0x17a3   :  { %2596 = vmatpush1.msra.mxu0 %v4240_v57 }
0x17a4   :  { %2597 = vmatprep.subr.mxu0 %v4243_v27 }
0x17a5   :  { %2598 = vmatpush1.msra.mxu0 %v4246_v58 }
0x17a6   :  { %2599 = vmatprep.subr.mxu0 %v4249_v28 }
0x17a7   :  { %2600 = vmatpush1.msra.mxu0 %v4252_v30 }
0x17a8   :  { %2841 = vmatprep.subr.mxu0 %v4201_v40 }
0x1858   :  { %v2379_v20 = vpop.f32.mrf.mxu0 }
0x185a   :  { %v2381_v59 = vpop.f32.mrf.mxu0 }
0x185b   :  { %v2386_v23 = vcombine.low %v2379_v20, %v2381_v59 }
0x185d   :  { %v2393_v54 = vrot.slane %v2386_v23, %v3803_v15 }
0x185f   :  { %v2395_v61 = vadd.f32 %v2393_v54, %v4332_v14 }
0x1861   :  { %2403 = vrot.lane.b32.xlu0 %v2395_v61, %s3708_s3  ;;  %v3442_v55 = vmul.f32 -1.442695, %v2395_v61 }
0x1863   :  { %3587 = vpow2.f32 %v3442_v55 }
0x1870   :  { %v3588_v62 = vpop.eup %3587 }
0x1871   :  { %v2399_v49 = vadd.f32 1.0, %v3588_v62 }
0x1873   :  { %3589 = vrcp.f32 %v2399_v49 }
0x1880   :  { %v3590_v50 = vpop.eup %3589 }
0x1881   :  { %v2408_v52 = vmul.f32 %v3590_v50, %v2286_v32  ;;  %v2417_v4 = vrot.slane %v3590_v50, 2 }
0x18d3   :  { %v2404_v1 = vpop.permute.xlu0 %2403 }
0x18d4   :  { %v2405_v5 = vrot.slane %v2404_v1, 2 }
0x18d6   :  { %3591 = vtanh.f32 %v2405_v5 }
0x18e3   :  { %v3592_v3 = vpop.eup %3591 }
0x18e4   :  { %v2409_v7 = vmul.f32 %v3592_v3, %v3590_v50 }
0x18e6   :  { %2411 = vrot.lane.b32.xlu1 %v2409_v7, %s3708_s3 }
0x1958   :  { %v2412_v8 = vpop.permute.xlu1 %2411 }
0x1959   :  { %v2414_v9 = vadd.f32 %v2412_v8, %v2408_v52 }
0x195b   :  { %3593 = vtanh.f32 %v2414_v9 }
0x1968   :  { %v3594_v14 = vpop.eup %3593 }
0x1969   :  { %2420 = vrot.lane.b32.xlu0 %v3594_v14, %s3708_s3 }
0x19db   :  { %v2421_v29 = vpop.permute.xlu0 %2420 }
0x19dc   :  { %v4393_v6 = vmul.f32 %v2421_v29, %v2417_v4 }
0x19de   :  { %2425 = vst.msk [vmem:[#allocation4 + $0x4] sm:$0x3] %vm552_vm1, %v4393_v6  ;;  %3443 = vmatmul.mubr.msk.f32.vlgmr.msra.gmra.mxu1 %vm437_vm2, %v4393_v6 }
0x19df   :  { %2714 = vmatpush1.msra.mxu1 %v4208_v2  ;;  %2761 = vmatprep.mubr.f32.mxu1 %v3706_v0 }
0x19e0   :  { %2715 = vmatprep.subr.mxu1 %v4211_v42 }
0x19e1   :  { %2716 = vmatpush1.msra.mxu1 %v4214_v43 }
0x19e2   :  { %2717 = vmatprep.subr.mxu1 %v4217_v44 }
0x19e3   :  { %2718 = vmatpush1.msra.mxu1 %v4221_v45 }
0x19e4   :  { %2719 = vmatprep.subr.mxu1 %v4224_v37 }
0x19e5   :  { %2720 = vmatpush1.msra.mxu1 %v4228_v46 }
0x19e6   :  { %2721 = vmatprep.subr.mxu1 %v4231_v47 }
0x19e7   :  { %2722 = vmatpush1.msra.mxu1 %v4234_v48 }
0x19e8   :  { %2723 = vmatprep.subr.mxu1 %v4237_v26 }
0x19e9   :  { %2724 = vmatpush1.msra.mxu1 %v4240_v57 }
0x19ea   :  { %2725 = vmatprep.subr.mxu1 %v4243_v27 }
0x19eb   :  { %2726 = vmatpush1.msra.mxu1 %v4246_v58 }
0x19ec   :  { %2727 = vmatprep.subr.mxu1 %v4249_v28 }
0x19ed   :  { %2728 = vmatpush1.msra.mxu1 %v4252_v30 }
0x19ee   :  { %2969 = vmatprep.subr.mxu1 %v4201_v40 }
0x1a9e   :  { %v2507_v11 = vpop.f32.mrf.mxu1 }
0x1aa0   :  { %v2509_v12 = vpop.f32.mrf.mxu1 }
0x1aa1   :  { %v2514_v13 = vcombine.low %v2507_v11, %v2509_v12 }
0x1aa3   :  { %v2521_v16 = vrot.slane %v2514_v13, %v3803_v15 }
0x1aa5   :  { %v2523_v63 = vadd.f32 %v2521_v16, %v4330_v53 }
0x1aa7   :  { %2531 = vrot.lane.b32.xlu1 %v2523_v63, %s3708_s3  ;;  %v3444_v17 = vmul.f32 -1.442695, %v2523_v63 }
0x1aa9   :  { %3595 = vpow2.f32 %v3444_v17 }
0x1ab6   :  { %v3596_v18 = vpop.eup %3595 }
0x1ab7   :  { %v2527_v60 = vadd.f32 1.0, %v3596_v18 }
0x1ab9   :  { %3597 = vrcp.f32 %v2527_v60 }
0x1ac6   :  { %v3598_v24 = vpop.eup %3597 }
0x1ac7   :  { %v2536_v38 = vmul.f32 %v3598_v24, %v2414_v9  ;;  %v2545_v32 = vrot.slane %v3598_v24, 2 }
0x1b19   :  { %v2532_v51 = vpop.permute.xlu1 %2531 }
0x1b1a   :  { %v2533_v22 = vrot.slane %v2532_v51, 2 }
0x1b1c   :  { %3599 = vtanh.f32 %v2533_v22 }
0x1b29   :  { %v3600_v31 = vpop.eup %3599 }
0x1b2a   :  { %v2537_v40 = vmul.f32 %v3600_v31, %v3598_v24 }
0x1b2c   :  { %2539 = vrot.lane.b32.xlu0 %v2537_v40, %s3708_s3 }
0x1b9e   :  { %v2540_v39 = vpop.permute.xlu0 %2539 }
0x1b9f   :  { %v2542_v41 = vadd.f32 %v2540_v39, %v2536_v38 }
0x1ba1   :  { %3601 = vtanh.f32 %v2542_v41 }
0x1bae   :  { %v3602_v53 = vpop.eup %3601 }
0x1baf   :  { %2548 = vrot.lane.b32.xlu1 %v3602_v53, %s3708_s3 }
0x1c21   :  { %v2549_v25 = vpop.permute.xlu1 %2548 }
0x1c22   :  { %v4421_v33 = vmul.f32 %v2549_v25, %v2545_v32 }
0x1c24   :  { %2553 = vst.msk [vmem:[#allocation4 + $0x6] sm:$0x3] %vm552_vm1, %v4421_v33  ;;  %3445 = vmatmul.mubr.msk.f32.vlgmr.msra.gmra.mxu0 %vm437_vm2, %v4421_v33 }
0x1c25   :  { %2842 = vmatpush1.msra.mxu0 %v4208_v2  ;;  %2889 = vmatprep.mubr.f32.mxu0 %v3706_v0 }
0x1c26   :  { %2843 = vmatprep.subr.mxu0 %v4211_v42 }
0x1c27   :  { %2844 = vmatpush1.msra.mxu0 %v4214_v43 }
0x1c28   :  { %2845 = vmatprep.subr.mxu0 %v4217_v44 }
0x1c29   :  { %2846 = vmatpush1.msra.mxu0 %v4221_v45 }
0x1c2a   :  { %2847 = vmatprep.subr.mxu0 %v4224_v37 }
0x1c2b   :  { %2848 = vmatpush1.msra.mxu0 %v4228_v46  ;;  %v3089_v25 = vld [vmem:[#allocation4 + $0x6] sm:$0x3] }
0x1c2c   :  { %2849 = vmatprep.subr.mxu0 %v4231_v47 }
0x1c2d   :  { %2850 = vmatpush1.msra.mxu0 %v4234_v48 }
0x1c2e   :  { %2851 = vmatprep.subr.mxu0 %v4237_v26 }
0x1c2f   :  { %2852 = vmatpush1.msra.mxu0 %v4240_v57 }
0x1c30   :  { %2853 = vmatprep.subr.mxu0 %v4243_v27 }
0x1c31   :  { %2854 = vmatpush1.msra.mxu0 %v4246_v58 }
0x1c32   :  { %2855 = vmatprep.subr.mxu0 %v4249_v28 }
0x1c33   :  { %2856 = vmatpush1.msra.mxu0 %v4252_v30 }
0x1ce4   :  { %v2635_v36 = vpop.f32.mrf.mxu0 }
0x1ce6   :  { %v2637_v20 = vpop.f32.mrf.mxu0 }
0x1ce7   :  { %v2642_v59 = vcombine.low %v2635_v36, %v2637_v20  ;;  %v3087_v36 = vld [vmem:[#allocation4 + $0x2] sm:$0x3]  ;;  %v3088_v20 = vld [vmem:[#allocation4 + $0x4] sm:$0x3] }
0x1ce9   :  { %v2649_v23 = vrot.slane %v2642_v59, %v3803_v15  ;;  %v3232_v59 = vcombine.low %v3088_v20, %v3089_v25 }
0x1ceb   :  { %v2651_v54 = vadd.f32 %v2649_v23, %v4326_v34  ;;  %v3086_v23 = vld [vmem:[#allocation4] sm:$0x3] }
0x1ced   :  { %2659 = vrot.lane.b32.xlu0 %v2651_v54, %s3708_s3  ;;  %v3446_v61 = vmul.f32 -1.442695, %v2651_v54  ;;  %v3231_v54 = vcombine.low %v3086_v23, %v3087_v36 }
0x1cef   :  { %3603 = vpow2.f32 %v3446_v61  ;;  %v3246_v61 = vrot.slane %v3232_v59, %v3803_v15 }
0x1cfc   :  { %v3604_v55 = vpop.eup %3603 }
0x1cfd   :  { %v2655_v62 = vadd.f32 1.0, %v3604_v55 }
0x1cff   :  { %3605 = vrcp.f32 %v2655_v62 }
0x1d0c   :  { %v3606_v5 = vpop.eup %3605 }
0x1d0d   :  { %v2664_v7 = vmul.f32 %v3606_v5, %v2542_v41  ;;  %v2673_v9 = vrot.slane %v3606_v5, 2 }
0x1d5f   :  { %v2660_v49 = vpop.permute.xlu0 %2659 }
0x1d60   :  { %v2661_v1 = vrot.slane %v2660_v49, 2  ;;  %v3239_v49 = vrot.slane %v3231_v54, %v3803_v15 }
0x1d62   :  { %3607 = vtanh.f32 %v2661_v1 }
0x1d6f   :  { %v3608_v50 = vpop.eup %3607 }
0x1d70   :  { %v2665_v3 = vmul.f32 %v3608_v50, %v3606_v5  ;;  %v3247_v5 = vcombine.low %v3239_v49, %v3246_v61 }
0x1d72   :  { %2667 = vrot.lane.b32.xlu1 %v2665_v3, %s3708_s3 }
0x1de4   :  { %v2668_v52 = vpop.permute.xlu1 %2667 }
0x1de5   :  { %v2670_v8 = vadd.f32 %v2668_v52, %v2664_v7 }
0x1de7   :  { %3609 = vtanh.f32 %v2670_v8 }
0x1df4   :  { %v3610_v34 = vpop.eup %3609 }
0x1df5   :  { %2676 = vrot.lane.b32.xlu0 %v3610_v34, %s3708_s3 }
0x1e67   :  { %v2677_v14 = vpop.permute.xlu0 %2676 }
0x1e68   :  { %v4448_v4 = vmul.f32 %v2677_v14, %v2673_v9 }
0x1e6a   :  { %2681 = vst.msk [vmem:[#allocation4 + $0x8] sm:$0x3] %vm552_vm1, %v4448_v4  ;;  %3447 = vmatmul.mubr.msk.f32.vlgmr.msra.gmra.mxu1 %vm437_vm2, %v4448_v4 }
0x1e6b   :  { %2970 = vmatpush1.msra.mxu1 %v4208_v2  ;;  %3017 = vmatprep.mubr.f32.mxu1 %v3706_v0 }
0x1e6c   :  { %2971 = vmatprep.subr.mxu1 %v4211_v42 }
0x1e6d   :  { %2972 = vmatpush1.msra.mxu1 %v4214_v43 }
0x1e6e   :  { %2973 = vmatprep.subr.mxu1 %v4217_v44 }
0x1e6f   :  { %2974 = vmatpush1.msra.mxu1 %v4221_v45 }
0x1e70   :  { %2975 = vmatprep.subr.mxu1 %v4224_v37 }
0x1e71   :  { %2976 = vmatpush1.msra.mxu1 %v4228_v46 }
0x1e72   :  { %2977 = vmatprep.subr.mxu1 %v4231_v47 }
0x1e73   :  { %2978 = vmatpush1.msra.mxu1 %v4234_v48 }
0x1e74   :  { %2979 = vmatprep.subr.mxu1 %v4237_v26 }
0x1e75   :  { %2980 = vmatpush1.msra.mxu1 %v4240_v57 }
0x1e76   :  { %2981 = vmatprep.subr.mxu1 %v4243_v27 }
0x1e77   :  { %2982 = vmatpush1.msra.mxu1 %v4246_v58 }
0x1e78   :  { %2983 = vmatprep.subr.mxu1 %v4249_v28 }
0x1e79   :  { %2984 = vmatpush1.msra.mxu1 %v4252_v30 }
0x1f2a   :  { %v2763_v0 = vpop.f32.mrf.mxu1 }
0x1f2c   :  { %v2765_v2 = vpop.f32.mrf.mxu1 }
0x1f2d   :  { %v2770_v42 = vcombine.low %v2763_v0, %v2765_v2 }
0x1f2f   :  { %v2777_v43 = vrot.slane %v2770_v42, %v3803_v15 }
0x1f31   :  { %v2779_v44 = vadd.f32 %v2777_v43, %v4320_v19 }
0x1f33   :  { %2787 = vrot.lane.b32.xlu1 %v2779_v44, %s3708_s3  ;;  %v3448_v45 = vmul.f32 -1.442695, %v2779_v44 }
0x1f35   :  { %3611 = vpow2.f32 %v3448_v45  ;;  %v2689_v45 = vrot.slane %v4448_v4, %v3803_v15 }
0x1f42   :  { %v3612_v37 = vpop.eup %3611 }
0x1f43   :  { %v2783_v46 = vadd.f32 1.0, %v3612_v37  ;;  %v2177_v37 = vrot.slane %v4338_v10, %v3803_v15  ;;  %v3080_v10 = vld [vmem:[#allocation10 + $0x10] sm:$0xff] }
0x1f45   :  { %3613 = vrcp.f32 %v2783_v46  ;;  %v2433_v46 = vrot.slane %v4393_v6, %v3803_v15  ;;  %v3079_v6 = vld [vmem:[#allocation10 + $0x8] sm:$0xff] }
0x1f52   :  { %v3614_v26 = vpop.eup %3613 }
0x1f53   :  { %v2792_v58 = vmul.f32 %v3614_v26, %v2670_v8  ;;  %v2801_v29 = vrot.slane %v3614_v26, 2 }
0x1fa5   :  { %v2788_v47 = vpop.permute.xlu1 %2787 }
0x1fa6   :  { %v2789_v48 = vrot.slane %v2788_v47, 2 }
0x1fa8   :  { %3615 = vtanh.f32 %v2789_v48 }
0x1fb5   :  { %v3616_v57 = vpop.eup %3615 }
0x1fb6   :  { %v2793_v27 = vmul.f32 %v3616_v57, %v3614_v26 }
0x1fb8   :  { %2795 = vrot.lane.b32.xlu0 %v2793_v27, %s3708_s3  ;;  %v3081_v27 = vld [vmem:[#allocation10 + $0x18] sm:$0xff] }
0x1fb9   :  { %3485 = vmatprep.subr.mxu1 %v3081_v27 }
0x202a   :  { %v2796_v28 = vpop.permute.xlu0 %2795 }
0x202b   :  { %v2798_v30 = vadd.f32 %v2796_v28, %v2792_v58  ;;  %v3078_v28 = vld [vmem:[#allocation10] sm:$0xff] }
0x202d   :  { %3617 = vtanh.f32 %v2798_v30 }
0x203a   :  { %v3618_v19 = vpop.eup %3617 }
0x203b   :  { %2804 = vrot.lane.b32.xlu1 %v3618_v19, %s3708_s3 }
0x20ad   :  { %v2805_v11 = vpop.permute.xlu1 %2804 }
0x20ae   :  { %v4475_v12 = vmul.f32 %v2805_v11, %v2801_v29  ;;  %v2305_v11 = vrot.slane %v4365_v56, %v3803_v15 }
0x20b0   :  { %2809 = vst.msk [vmem:[#allocation4 + $0xa] sm:$0x3] %vm552_vm1, %v4475_v12  ;;  %3449 = vmatmul.mubr.msk.f32.vlgmr.msra.gmra.mxu0 %vm437_vm2, %v4475_v12  ;;  %v2817_v29 = vrot.slane %v4475_v12, %v3803_v15 }
0x20b7   :  { %v3091_v56 = vld [vmem:[#allocation4 + $0xa] sm:$0x3] }
0x2170   :  { %v2891_v13 = vpop.f32.mrf.mxu0 }
0x2172   :  { %v2893_v16 = vpop.f32.mrf.mxu0 }
0x2173   :  { %v2898_v63 = vcombine.low %v2891_v13, %v2893_v16  ;;  %v3085_v13 = vld [vmem:[#allocation10 + $0x38] sm:$0xff]  ;;  %v3084_v16 = vld [vmem:[#allocation10 + $0x30] sm:$0xff] }
0x2174   :  { %3474 = vmatprep.subr.mxu0 %v3085_v13 }
0x2175   :  { %v2905_v17 = vrot.slane %v2898_v63, %v3803_v15  ;;  %3475 = vmatpush3.msra.mxu0 %v3085_v13  ;;  %v3083_v63 = vld [vmem:[#allocation10 + $0x28] sm:$0xff] }
0x2176   :  { %3476 = vmatprep.subr.mxu0 %v3084_v16 }
0x2177   :  { %v2907_v18 = vadd.f32 %v2905_v17, %v4328_v35  ;;  %3477 = vmatpush3.msra.mxu0 %v3084_v16 }
0x2178   :  { %3478 = vmatprep.subr.mxu0 %v3083_v63 }
0x2179   :  { %2915 = vrot.lane.b32.xlu0 %v2907_v18, %s3708_s3  ;;  %v3450_v60 = vmul.f32 -1.442695, %v2907_v18  ;;  %3479 = vmatpush3.msra.mxu0 %v3083_v63 }
0x217b   :  { %3619 = vpow2.f32 %v3450_v60 }
0x2188   :  { %v3620_v51 = vpop.eup %3619 }
0x2189   :  { %v2911_v22 = vadd.f32 1.0, %v3620_v51 }
0x218b   :  { %3621 = vrcp.f32 %v2911_v22  ;;  %v3082_v22 = vld [vmem:[#allocation10 + $0x20] sm:$0xff] }
0x218c   :  { %3480 = vmatprep.subr.mxu0 %v3082_v22 }
0x218d   :  { %3481 = vmatpush3.msra.mxu0 %v3082_v22 }
0x2198   :  { %v3622_v40 = vpop.eup %3621 }
0x2199   :  { %v2920_v41 = vmul.f32 %v3622_v40, %v2798_v30  ;;  %v2929_v55 = vrot.slane %v3622_v40, 2 }
0x21eb   :  { %v2916_v24 = vpop.permute.xlu0 %2915 }
0x21ec   :  { %v2917_v31 = vrot.slane %v2916_v24, 2  ;;  %v2561_v24 = vrot.slane %v4421_v33, %v3803_v15 }
0x21ee   :  { %3623 = vtanh.f32 %v2917_v31 }
0x21fb   :  { %v3624_v38 = vpop.eup %3623 }
0x21fc   :  { %v2921_v39 = vmul.f32 %v3624_v38, %v3622_v40  ;;  %v3090_v40 = vld [vmem:[#allocation4 + $0x8] sm:$0x3] }
0x21fd   :  { %v3248_v38 = vcombine.low %v3090_v40, %v3091_v56 }
0x21fe   :  { %2923 = vrot.lane.b32.xlu1 %v2921_v39, %s3708_s3 }
0x2270   :  { %v2924_v53 = vpop.permute.xlu1 %2923 }
0x2271   :  { %v2926_v32 = vadd.f32 %v2924_v53, %v2920_v41 }
0x2273   :  { %3625 = vtanh.f32 %v2926_v32 }
0x2280   :  { %v3626_v35 = vpop.eup %3625 }
0x2281   :  { %2932 = vrot.lane.b32.xlu0 %v3626_v35, %s3708_s3 }
0x22f3   :  { %v2933_v62 = vpop.permute.xlu0 %2932 }
0x22f4   :  { %v2935_v1 = vmul.f32 %v2933_v62, %v2929_v55 }
0x22f6   :  { %2937 = vst.msk [vmem:[#allocation4 + $0xc] sm:$0x3] %vm552_vm1, %v2935_v1  ;;  %3451 = vmatmul.mubr.msk.f32.vlgmr.msra.gmra.mxu1 %vm437_vm2, %v2935_v1 }
0x22f7   :  { %3493 = vmatprep.mubr.msk.f32.mxu1 %vm1569_vm3, %v3247_v5  ;;  %3486 = vmatpush3.msra.mxu1 %v3081_v27 }
0x22f8   :  { %3487 = vmatprep.subr.mxu1 %v3080_v10 }
0x22f9   :  { %3488 = vmatpush3.msra.mxu1 %v3080_v10 }
0x22fa   :  { %3489 = vmatprep.subr.mxu1 %v3079_v6 }
0x22fb   :  { %3490 = vmatpush3.msra.mxu1 %v3079_v6 }
0x22fc   :  { %3491 = vmatprep.subr.mxu1 %v3078_v28 }
0x22fd   :  { %3492 = vmatpush3.msra.mxu1 %v3078_v28  ;;  %v3092_v39 = vld [vmem:[#allocation4 + $0xc] sm:$0x3] }
0x23b6   :  { %v3019_v50 = vpop.f32.mrf.mxu1 }
0x23b8   :  { %v3021_v3 = vpop.f32.mrf.mxu1 }
0x23b9   :  { %v3026_v7 = vcombine.low %v3019_v50, %v3021_v3 }
0x23bb   :  { %v3033_v52 = vrot.slane %v3026_v7, %v3803_v15 }
0x23bd   :  { %v3035_v8 = vadd.f32 %v3033_v52, %v4322_v21  ;;  %v2945_v21 = vrot.slane %v2935_v1, %v3803_v15 }
0x23bf   :  { %3043 = vrot.lane.b32.xlu1 %v3035_v8, %s3708_s3  ;;  %v3452_v34 = vmul.f32 -1.442695, %v3035_v8 }
0x23c1   :  { %3627 = vpow2.f32 %v3452_v34 }
0x23ce   :  { %v3628_v9 = vpop.eup %3627 }
0x23cf   :  { %v3039_v14 = vadd.f32 1.0, %v3628_v9 }
0x23d1   :  { %3629 = vrcp.f32 %v3039_v14 }
0x23de   :  { %v3630_v42 = vpop.eup %3629 }
0x23df   :  { %v3048_v47 = vmul.f32 %v3630_v42, %v2926_v32  ;;  %v3057_v17 = vrot.slane %v3630_v42, 2  ;;  %v3256_v32 = vrot.slane %v3248_v38, %v3803_v15 }
0x2431   :  { %v3044_v0 = vpop.permute.xlu1 %3043 }
0x2432   :  { %v3045_v2 = vrot.slane %v3044_v0, 2 }
0x2434   :  { %3631 = vtanh.f32 %v3045_v2 }
0x2441   :  { %v3632_v43 = vpop.eup %3631 }
0x2442   :  { %v3049_v44 = vmul.f32 %v3632_v43, %v3630_v42  ;;  %v3457_v42 = vld [vmem:[%s4575_s8] ss:$0 sm:$0xff] }
0x2444   :  { %3051 = vrot.lane.b32.xlu0 %v3049_v44, %s3708_s3 }
0x2448   :  { %2690 = vrot.lane.b32.xlu0 %v2689_v45, %s3709_s17 }
0x244c   :  { %2946 = vrot.lane.b32.xlu0 %v2945_v21, %s3709_s17 }
0x2450   :  { %2178 = vrot.lane.b32.xlu0 %v2177_v37, %s3709_s17 }
0x2454   :  { %2434 = vrot.lane.b32.xlu0 %v2433_v46, %s3709_s17 }
0x24b6   :  { %v3052_v48 = vpop.permute.xlu0 %3051 }
0x24b7   :  { %v3054_v26 = vadd.f32 %v3052_v48, %v3048_v47 }
0x24b9   :  { %3633 = vtanh.f32 %v3054_v26 }
0x24ba   :  { %v2691_v4 = vpop.permute.xlu0 %2690 }
0x24bb   :  { %2694 = vst.msk [vmem:[#allocation5 + $0x6] sm:$0x3] %vm552_vm1, %v2691_v4 }
0x24be   :  { %v2947_v57 = vpop.permute.xlu0 %2946 }
0x24bf   :  { %2950 = vst.msk [vmem:[#allocation5 + $0x2] sm:$0x3] %vm552_vm1, %v2947_v57 }
0x24c2   :  { %v2179_v58 = vpop.permute.xlu0 %2178  ;;  %v3097_v59 = vld [vmem:[#allocation5 + $0x6] sm:$0x3] }
0x24c3   :  { %2182 = vst.msk [vmem:[#allocation5 + $0xe] sm:$0x3] %vm552_vm1, %v2179_v58 }
0x24c6   :  { %v3634_v30 = vpop.eup %3633  ;;  %v2435_v19 = vpop.permute.xlu0 %2434  ;;  %v3095_v61 = vld [vmem:[#allocation5 + $0x2] sm:$0x3] }
0x24c7   :  { %2438 = vst.msk [vmem:[#allocation5 + $0xa] sm:$0x3] %vm552_vm1, %v2435_v19  ;;  %3060 = vrot.lane.b32.xlu1 %v3634_v30, %s3708_s3 }
0x24ca   :  { %v3101_v49 = vld [vmem:[#allocation5 + $0xe] sm:$0x3] }
0x24cb   :  { %2818 = vrot.lane.b32.xlu1 %v2817_v29, %s3709_s17 }
0x24ce   :  { %v3099_v7 = vld [vmem:[#allocation5 + $0xa] sm:$0x3] }
0x24cf   :  { %2306 = vrot.lane.b32.xlu1 %v2305_v11, %s3709_s17 }
0x2539   :  { %v3061_v18 = vpop.permute.xlu1 %3060 }
0x253a   :  { %v3063_v60 = vmul.f32 %v3061_v18, %v3057_v17 }
0x253c   :  { %3065 = vst.msk [vmem:[#allocation4 + $0xe] sm:$0x3] %vm552_vm1, %v3063_v60  ;;  %v3073_v12 = vrot.slane %v3063_v60, %v3803_v15 }
0x253d   :  { %v2819_v51 = vpop.permute.xlu1 %2818 }
0x253e   :  { %2822 = vst.msk [vmem:[#allocation5 + $0x4] sm:$0x3] %vm552_vm1, %v2819_v51  ;;  %3074 = vrot.lane.b32.xlu1 %v3073_v12, %s3709_s17 }
0x2541   :  { %v2307_v31 = vpop.permute.xlu1 %2306 }
0x2542   :  { %2310 = vst.msk [vmem:[#allocation5 + $0xc] sm:$0x3] %vm552_vm1, %v2307_v31  ;;  %2562 = vrot.lane.b32.xlu1 %v2561_v24, %s3709_s17 }
0x2543   :  { %v3093_v41 = vld [vmem:[#allocation4 + $0xe] sm:$0x3] }
0x2544   :  { %v3249_v53 = vcombine.low %v3092_v39, %v3093_v41 }
0x2545   :  { %v3096_v20 = vld [vmem:[#allocation5 + $0x4] sm:$0x3] }
0x2546   :  { %v3263_v35 = vrot.slane %v3249_v53, %v3803_v15  ;;  %v3111_v23 = vcombine.low %v3096_v20, %v3097_v59 }
0x2548   :  { %v3264_v25 = vcombine.low %v3256_v32, %v3263_v35  ;;  %v3125_v5 = vrot.slane %v3111_v23, %v3803_v15 }
0x2549   :  { %v3100_v55 = vld [vmem:[#allocation5 + $0xc] sm:$0x3] }
0x254a   :  { %3494 = vmatmul.mubr.msk.f32.vlgmr.msra.gmra.mxu1 %vm1569_vm3, %v3264_v25  ;;  %v3128_v50 = vcombine.low %v3100_v55, %v3101_v49 }
0x254c   :  { %v3142_v9 = vrot.slane %v3128_v50, %v3803_v15 }
0x25b0   :  { %v3075_v33 = vpop.permute.xlu1 %3074 }
0x25b1   :  { %3077 = vst.msk [vmem:[#allocation5] sm:$0x3] %vm552_vm1, %v3075_v33 }
0x25b4   :  { %v2563_v36 = vpop.permute.xlu1 %2562 }
0x25b5   :  { %2566 = vst.msk [vmem:[#allocation5 + $0x8] sm:$0x3] %vm552_vm1, %v2563_v36 }
0x25b8   :  { %v3094_v54 = vld [vmem:[#allocation5] sm:$0x3] }
0x25b9   :  { %v3110_v62 = vcombine.low %v3094_v54, %v3095_v61 }
0x25bb   :  { %v3118_v1 = vrot.slane %v3110_v62, %v3803_v15 }
0x25bc   :  { %v3098_v3 = vld [vmem:[#allocation5 + $0x8] sm:$0x3] }
0x25bd   :  { %v3126_v52 = vcombine.low %v3118_v1, %v3125_v5  ;;  %v3127_v8 = vcombine.low %v3098_v3, %v3099_v7 }
0x25bf   :  { %3482 = vmatprep.mubr.msk.f32.mxu0 %vm1569_vm3, %v3126_v52  ;;  %v3135_v34 = vrot.slane %v3127_v8, %v3803_v15 }
0x25c1   :  { %v3143_v14 = vcombine.low %v3135_v34, %v3142_v9 }
0x25c3   :  { %3483 = vmatmul.mubr.msk.f32.vlgmr.msra.gmra.mxu0 %vm1569_vm3, %v3143_v14 }
0x260a   :  { %v3495_v0 = vpop.f32.mrf.mxu1 }
0x260c   :  { %v3335_v44 = vpop.f32.mrf.mxu1 }
0x2683   :  { %v3484_v2 = vpop.f32.mrf.mxu0 }
0x2684   :  { %v3341_v43 = vadd.f32 %v3495_v0, %v3484_v2 }
0x2685   :  { %v3214_v45 = vpop.f32.mrf.mxu0 }
0x2686   :  { %v3352_v21 = vadd.f32 %v3457_v42, %v3341_v43  ;;  %v3336_v37 = vadd.f32 %v3335_v44, %v3214_v45 }
0x2688   :  { %v3372_v46 = vcombine.high %v3352_v21, %v3352_v21  ;;  %v3379_v47 = vrot.slane %v3352_v21, %v3803_v15  ;;  %3460 = vst.sshfl [vmem:[%s4576_s9 + $0x8] sm:$0x3 pattern:$0x76325410] %v3352_v21  ;;  %v3351_v48 = vadd.f32 %v3457_v42, %v3336_v37 }
0x268a   :  { %v3386_v26 = vrot.slane %v3372_v46, %v3803_v15  ;;  %v3387_v4 = vcombine.high %v3379_v47, %v3379_v47  ;;  %3461 = vst.sshfl [vmem:[%s4576_s9 + $0xc] sm:$0x3 pattern:$0x76325410] %v3372_v46  ;;  %v3355_v57 = vcombine.high %v3351_v48, %v3351_v48  ;;  %v3362_v27 = vrot.slane %v3351_v48, %v3803_v15 }
0x268b   :  { %3458 = vst.sshfl [vmem:[%s4576_s9] sm:$0x3 pattern:$0x76325410] %v3351_v48 }
0x268c   :  { %v3388_v58 = vcombine.high %v3386_v26, %v3386_v26  ;;  %3402 = vst [vmem:[%s4576_s9 + $0xa] sm:$0x3] %v3387_v4  ;;  %v3369_v10 = vrot.slane %v3355_v57, %v3803_v15  ;;  %v3370_v6 = vcombine.high %v3362_v27, %v3362_v27  ;;  %3459 = vst.sshfl [vmem:[%s4576_s9 + $0x4] sm:$0x3 pattern:$0x76325410] %v3355_v57 }
0x268e   :  { %3404 = vst [vmem:[%s4576_s9 + $0xe] sm:$0x3] %v3388_v58  ;;  %v3371_v28 = vcombine.high %v3369_v10, %v3369_v10  ;;  %3398 = vst [vmem:[%s4576_s9 + $0x2] sm:$0x3] %v3370_v6 }
0x2690   :  { %3400 = vst [vmem:[%s4576_s9 + $0x6] sm:$0x3] %v3371_v28 }
0x2691   :  { %3409 = vsyncpa [#allocation7], 1 }
0x2692   :  { %3410 = vsyncpa [#allocation9], 1 }

</bundles_post_ra>
